<compile_context>
chip_gen: v7x
topology: tpu7x:2x2x1
jax: 0.10.0
libtpu: 0.0.40
codegen_flags: <defaults>
</compile_context>

<pallas_src>
import functools

import jax
import jax.numpy as jnp
from jax import lax
from jax.experimental import pallas as pl
from jax.experimental.pallas import tpu as pltpu


# ----------------------------- Pallas kernel -------------------------------

def lstm_backlash_inverse_kernel(
    # inputs (time-major, batch padded to Bp, flattened over (T, Bp))
    xin_ref,    # (T*Bp, 3)  [x_curr | x_prev | u_pre]
    h0_ref,     # (L, Bp, H) initial hidden state
    c0_ref,     # (L, Bp, H) initial cell state
    wih0_ref,   # (1, 4H)   layer-0 W_ih^T (inp_dim == 1)
    whh0_ref,   # (H, 4H)   layer-0 W_hh^T
    b0_ref,     # (1, 4H)   layer-0 (b_ih + b_hh)
    wih1_ref,   # (H, 4H)   layer-1 W_ih^T
    whh1_ref,   # (H, 4H)   layer-1 W_hh^T
    b1_ref,     # (1, 4H)   layer-1 (b_ih + b_hh)
    wlin_ref,   # (H, 4)    Linear weight^T
    blin_ref,   # (1, 4)    Linear bias
    # outputs
    packed_ref, # (T*Bp, OUT_W)  col 0 = u, cols 1..4 = linear_out, rest zero
    hn_ref,     # (L, Bp, H) final hidden state
    cn_ref,     # (L, Bp, H) final cell state
    # scratch
    *scratch,   # [lstm_s (T*Bp, H)]  (+ [xg0_s (T*Bp, 4H)] when not fully unrolled)
    T, Bp, act, full_unroll, unroll, out_w, use_bf16,
):
    H = whh0_ref.shape[0]
    lstm_s = scratch[0]

    # -------- hoisted, loop-invariant values ---------------------------------
    # Exact identity tanh(z) == 2*sigmoid(2z) - 1: pre-scale the g-gate columns
    # [2H, 3H) by 2 so a single sigmoid pass over the full gate vreg suffices.
    lane = lax.broadcasted_iota(jnp.int32, (1, 4 * H), 1)
    gscale = jnp.where((lane >= 2 * H) & (lane < 3 * H), 2.0, 1.0)

    wdt = jnp.bfloat16 if use_bf16 else jnp.float32
    whh0 = (whh0_ref[...] * gscale).astype(wdt)
    wih1 = (wih1_ref[...] * gscale).astype(wdt)
    whh1 = (whh1_ref[...] * gscale).astype(wdt)
    b1b = jnp.broadcast_to(b1_ref[...] * gscale, (Bp, 4 * H))   # broadcast once

    x_all = xin_ref[:, 0:1]                                      # (T*Bp, 1)
    # Layer-0 input projection for ALL timesteps at once (inp_dim == 1 ->
    # broadcast multiply on the VPU), layer-0 bias folded in, g columns scaled.
    xg0_all = x_all * (wih0_ref[...] * gscale) + b0_ref[...] * gscale  # (T*Bp, 4H)

    def half_cell(gates, c):
        """LSTM gate math; gates (Bp, 4H) pre-activations (i, f, 2*g, o)."""
        sg = jax.nn.sigmoid(gates)           # one EUP pass over the full gate vreg
        i = sg[:, 0 * H:1 * H]
        f = sg[:, 1 * H:2 * H]
        g = 2.0 * sg[:, 2 * H:3 * H] - 1.0   # == tanh(original g pre-activation)
        o = sg[:, 3 * H:4 * H]
        c_new = f * c + i * g
        h_new = o * jnp.tanh(c_new)
        return h_new, c_new

    def step(h0, c0, h1, c1, gates0_x):
        # layer 0: input contribution precomputed, one K=H matmul on the chain
        gates0 = gates0_x + jnp.dot(h0.astype(wdt), whh0,
                                    preferred_element_type=jnp.float32)
        h0n, c0n = half_cell(gates0, c0)
        # layer 1: h1 @ W_hh1 depends only on the previous step and overlaps
        # with layer-0 compute under unrolling.
        gates1 = (jnp.dot(h0n.astype(wdt), wih1, preferred_element_type=jnp.float32)
                  + jnp.dot(h1.astype(wdt), whh1, preferred_element_type=jnp.float32)
                  + b1b)
        h1n, c1n = half_cell(gates1, c1)
        return h0n, c0n, h1n, c1n

    h0, c0 = h0_ref[0], c0_ref[0]
    h1, c1 = h0_ref[1], c0_ref[1]

    if full_unroll:
        # Short sequences: trace-time unroll; layer-0 gates stay in vregs and are
        # sliced with static (sublane-aligned) indices per step.
        for t in range(T):
            row = t * Bp
            h0, c0, h1, c1 = step(h0, c0, h1, c1, xg0_all[row:row + Bp, :])
            lstm_s[row:row + Bp, :] = h1
    else:
        xg0_s = scratch[1]
        xg0_s[...] = xg0_all

        def body(t, carry):
            h0, c0, h1, c1 = carry
            row = pl.multiple_of(t * Bp, Bp)   # Bp is a multiple of 8 -> aligned
            h0n, c0n, h1n, c1n = step(h0, c0, h1, c1, xg0_s[pl.ds(row, Bp), :])
            lstm_s[pl.ds(row, Bp), :] = h1n
            return (h0n, c0n, h1n, c1n)

        h0, c0, h1, c1 = lax.fori_loop(0, T, body, (h0, c0, h1, c1), unroll=unroll)

    # Final states written once.
    hn_ref[0] = h0
    hn_ref[1] = h1
    cn_ref[0] = c0
    cn_ref[1] = c1

    # -------- hoisted epilogue: activation, Linear(H, 4), BacklashInv --------
    lstm_all = lstm_s[...]                                   # (T*Bp, H)
    if act == "tanh":
        lstm_all = jnp.tanh(lstm_all)
    elif act == "relu":
        lstm_all = jnp.maximum(lstm_all, 0.0)

    lin = jnp.dot(lstm_all, wlin_ref[...],
                  preferred_element_type=jnp.float32) + blin_ref[...]  # (T*Bp, 4)

    x = x_all
    xp = xin_ref[:, 1:2]
    up = xin_ref[:, 2:3]
    m_lo = lin[:, 0:1]
    m_up = lin[:, 1:2]
    c_lo = lin[:, 2:3]
    c_up = lin[:, 3:4]
    f1 = jnp.where(x - xp > 0, 1.0, 0.0)   # h(x_curr - x_prev)
    f2 = jnp.where(xp - x > 0, 1.0, 0.0)   # h(x_prev - x_curr)
    u = ((x / m_up - c_up) * f1
         + (x / m_lo - c_lo) * f2
         + up * (1.0 - f1) * (1.0 - f2))

    # Lane-dense packed store: one unmasked (T*Bp, out_w) slab instead of two
    # masked 1-wide / 4-wide stores.  Wrapper slices cols [0] and [1:5].
    col = lax.broadcasted_iota(jnp.int32, (T * Bp, out_w), 1)
    packed = jnp.where(col == 0, u, 0.0)
    packed = packed + jnp.where(col == 1, m_lo, 0.0)
    packed = packed + jnp.where(col == 2, m_up, 0.0)
    packed = packed + jnp.where(col == 3, c_lo, 0.0)
    packed = packed + jnp.where(col == 4, c_up, 0.0)
    packed_ref[...] = packed


# ------------------------------- Wrapper ------------------------------------

def lstm_backlash_inverse_forward(x_curr, x_prev, u_pre, hidden, params, act=None,
                                  use_bf16_matmul=False):
    """Mirrors LSTMBacklashInverseNet.forward.

    x_curr, x_prev, u_pre: (B, T, 1) float32
    hidden: (h0, c0), each (num_layers=2, B, H) float32
    returns (custom_output (B,T,1), (h_n, c_n), dynamic_weights (B,T,4)).
    """
    h0, c0 = hidden
    B, T, I = x_curr.shape
    L, _, H = h0.shape
    assert L == 2, "kernel is specialized to num_layers=2"
    assert I == 1, "BacklashInv layer implies inp_dim == 1"

    h0 = h0.astype(jnp.float32)
    c0 = c0.astype(jnp.float32)

    if T == 0:   # degenerate sequence: states pass through, empty outputs
        return (jnp.zeros((B, 0, 1), jnp.float32), (h0, c0),
                jnp.zeros((B, 0, 4), jnp.float32))

    Bp = ((B + 7) // 8) * 8      # sublane-align the batch
    pad_b = Bp - B
    OUT_W = 128                  # lane-dense packed output width

    # One fused stack + transpose (+ pad) for the three (B, T, 1) inputs.
    xin = jnp.concatenate(
        [x_curr.astype(jnp.float32), x_prev.astype(jnp.float32),
         u_pre.astype(jnp.float32)], axis=-1)            # (B, T, 3)
    xin = jnp.transpose(xin, (1, 0, 2))                   # (T, B, 3)
    if pad_b:
        xin = jnp.pad(xin, ((0, 0), (0, pad_b), (0, 0)))
        h0 = jnp.pad(h0, ((0, 0), (0, pad_b), (0, 0)))
        c0 = jnp.pad(c0, ((0, 0), (0, pad_b), (0, 0)))
    xin = xin.reshape(T * Bp, 3)

    full_unroll = T <= 16
    unroll = 8   # long-sequence fori_loop unroll (carry is only a few vregs)

    vmem = pl.BlockSpec(memory_space=pltpu.MemorySpace.VMEM)
    inputs = (
        xin, h0, c0,
        params["wih0_t"], params["whh0_t"], params["b0"],
        params["wih1_t"], params["whh1_t"], params["b1"],
        params["wlin_t"], params["blin"],
    )
    out_shapes = (
        jax.ShapeDtypeStruct((T * Bp, OUT_W), jnp.float32),  # packed u | linear_out
        jax.ShapeDtypeStruct((L, Bp, H), jnp.float32),       # h_n (padded batch)
        jax.ShapeDtypeStruct((L, Bp, H), jnp.float32),       # c_n (padded batch)
    )
    scratch = [pltpu.VMEM((T * Bp, H), jnp.float32)]
    if not full_unroll:
        scratch.append(pltpu.VMEM((T * Bp, 4 * H), jnp.float32))

    # Conservative VMEM bound for the fully-resident strategy.
    est = 4 * (T * Bp * 3 + 4 * L * Bp * H
               + (1 + 3 * H) * 4 * H + 2 * 4 * H + H * 4 + 4
               + T * Bp * OUT_W + T * Bp * H
               + (0 if full_unroll else T * Bp * 4 * H))
    vmem_limit = int(min(max(4 * est, 16 * 1024 * 1024), 32 * 1024 * 1024))

    fn = pl.pallas_call(
        functools.partial(lstm_backlash_inverse_kernel,
                          T=T, Bp=Bp, act=act, full_unroll=full_unroll,
                          unroll=unroll, out_w=OUT_W, use_bf16=use_bf16_matmul),
        out_shape=out_shapes,
        in_specs=[vmem] * len(inputs),
        out_specs=(vmem, vmem, vmem),
        scratch_shapes=scratch,
        compiler_params=pltpu.CompilerParams(vmem_limit_bytes=vmem_limit),
    )
    packed, h_n_p, c_n_p = fn(*inputs)

    pk = packed.reshape(T, Bp, OUT_W)[:, :B, :5]          # (T, B, 5)
    pk = jnp.transpose(pk, (1, 0, 2))                     # (B, T, 5)
    custom_output = pk[..., 0:1]                          # (B, T, 1)
    dynamic_weights = pk[..., 1:5]                        # (B, T, 4)
    h_n = h_n_p[:, :B, :]
    c_n = c_n_p[:, :B, :]
    return custom_output, (h_n, c_n), dynamic_weights


# ------------------------- Pure-JAX reference -------------------------------

def reference_forward(x_curr, x_prev, u_pre, hidden, params, act=None):
    h0, c0 = hidden
    B, T, _ = x_curr.shape
    H = h0.shape[-1]

    def cell(x_t, h, c, w_ih_t, w_hh_t, b):
        gates = x_t @ w_ih_t + h @ w_hh_t + b
        i = jax.nn.sigmoid(gates[:, 0 * H:1 * H])
        f = jax.nn.sigmoid(gates[:, 1 * H:2 * H])
        g = jnp.tanh(gates[:, 2 * H:3 * H])
        o = jax.nn.sigmoid(gates[:, 3 * H:4 * H])
        c_new = f * c + i * g
        return o * jnp.tanh(c_new), c_new

    h0s, c0s = h0[0], c0[0]
    h1s, c1s = h0[1], c0[1]
    outs = []
    for t in range(T):
        x_t = x_curr[:, t, :]
        h0s, c0s = cell(x_t, h0s, c0s, params["wih0_t"], params["whh0_t"], params["b0"])
        h1s, c1s = cell(h0s, h1s, c1s, params["wih1_t"], params["whh1_t"], params["b1"])
        outs.append(h1s)
    lstm_out = jnp.stack(outs, axis=1)                     # (B, T, H)
    if act == "tanh":
        lstm_out = jnp.tanh(lstm_out)
    elif act == "relu":
        lstm_out = jnp.maximum(lstm_out, 0.0)
    linear_out = lstm_out @ params["wlin_t"] + params["blin"]   # (B, T, 4)

    m_lo = linear_out[..., 0:1]
    m_up = linear_out[..., 1:2]
    c_lo = linear_out[..., 2:3]
    c_up = linear_out[..., 3:4]
    f1 = (x_curr - x_prev > 0).astype(jnp.float32)
    f2 = (x_prev - x_curr > 0).astype(jnp.float32)
    u = ((x_curr / m_up - c_up) * f1
         + (x_curr / m_lo - c_lo) * f2
         + u_pre * (1.0 - f1) * (1.0 - f2))
    h_n = jnp.stack([h0s, h1s], axis=0)
    c_n = jnp.stack([c0s, c1s], axis=0)
    return u, (h_n, c_n), linear_out


# --------------------------------- Main --------------------------------------

if __name__ == "__main__":
    B, T, I, H, L = 2, 8, 1, 32, 2   # 4H = 128 fills one vreg lane row

    key = jax.random.PRNGKey(0)
    ks = jax.random.split(key, 16)
    stdv = 1.0 / jnp.sqrt(jnp.float32(H))

    def u(k, shape):
        return jax.random.uniform(k, shape, jnp.float32, -stdv, stdv)

    # PyTorch nn.LSTM / nn.Linear parameter shapes, stored pre-transposed for the
    # kernel (x @ W^T convention folded in), biases combined per layer.
    w_ih0 = u(ks[0], (4 * H, I)); w_hh0 = u(ks[1], (4 * H, H))
    b_ih0 = u(ks[2], (4 * H,));   b_hh0 = u(ks[3], (4 * H,))
    w_ih1 = u(ks[4], (4 * H, H)); w_hh1 = u(ks[5], (4 * H, H))
    b_ih1 = u(ks[6], (4 * H,));   b_hh1 = u(ks[7], (4 * H,))
    w_lin = u(ks[8], (4, H));     b_lin = u(ks[9], (4,))

    params = {
        "wih0_t": w_ih0.T,                              # (1, 4H)
        "whh0_t": w_hh0.T,                              # (H, 4H)
        "b0": (b_ih0 + b_hh0)[None, :],                 # (1, 4H)
        "wih1_t": w_ih1.T,                              # (H, 4H)
        "whh1_t": w_hh1.T,                              # (H, 4H)
        "b1": (b_ih1 + b_hh1)[None, :],                 # (1, 4H)
        "wlin_t": w_lin.T,                              # (H, 4)
        "blin": b_lin[None, :],                         # (1, 4)
    }

    # Deterministic example inputs.
    x_curr = jax.random.normal(ks[10], (B, T, I), jnp.float32)
    x_prev = jax.random.normal(ks[11], (B, T, I), jnp.float32)
    u_pre = jax.random.normal(ks[12], (B, T, I), jnp.float32)
    h0 = jax.random.normal(ks[13], (L, B, H), jnp.float32)
    c0 = jax.random.normal(ks[14], (L, B, H), jnp.float32)

    output, (h_n, c_n), dyn_w = lstm_backlash_inverse_forward(
        x_curr, x_prev, u_pre, (h0, c0), params, act=None)
    jax.block_until_ready((output, h_n, c_n, dyn_w))

    # Numerical check against the pure-JAX reference.
    r_out, (r_hn, r_cn), r_w = reference_forward(
        x_curr, x_prev, u_pre, (h0, c0), params, act=None)
    assert output.shape == (B, T, 1) and dyn_w.shape == (B, T, 4)
    assert jnp.allclose(dyn_w, r_w, atol=1e-4, rtol=1e-4)
    assert jnp.allclose(h_n, r_hn, atol=1e-4, rtol=1e-4)
    assert jnp.allclose(c_n, r_cn, atol=1e-4, rtol=1e-4)
    # custom_output contains x / linear_out terms -> division amplifies tiny
    # accumulation-order differences; use a slightly looser tolerance.
    assert jnp.allclose(output, r_out, atol=1e-3, rtol=1e-3)

    print("KERNEL_OK")
</pallas_src>

<mosaic_0001>
module attributes {stable_mosaic.version = 11 : i64} {
  func.func @lstm_backlash_inverse_kernel(%arg0: memref<64x3xf32, #tpu.memory_space<vmem>>, %arg1: memref<2x8x32xf32, #tpu.memory_space<vmem>>, %arg2: memref<2x8x32xf32, #tpu.memory_space<vmem>>, %arg3: memref<1x128xf32, #tpu.memory_space<vmem>>, %arg4: memref<32x128xf32, #tpu.memory_space<vmem>>, %arg5: memref<1x128xf32, #tpu.memory_space<vmem>>, %arg6: memref<32x128xf32, #tpu.memory_space<vmem>>, %arg7: memref<32x128xf32, #tpu.memory_space<vmem>>, %arg8: memref<1x128xf32, #tpu.memory_space<vmem>>, %arg9: memref<32x4xf32, #tpu.memory_space<vmem>>, %arg10: memref<1x4xf32, #tpu.memory_space<vmem>>, %arg11: memref<64x128xf32, #tpu.memory_space<vmem>>, %arg12: memref<2x8x32xf32, #tpu.memory_space<vmem>>, %arg13: memref<2x8x32xf32, #tpu.memory_space<vmem>>, %arg14: memref<64x32xf32, #tpu.memory_space<vmem>>) attributes {dimension_semantics = [], scalar_prefetch = 0 : i64, scratch_operands = 1 : i64, tpu.core_type = #tpu.core_type<tc>} {
    %0 = tpu.iota {dimensions = array<i32: 1>} : vector<1x128xi32>
    %c64_i32 = arith.constant 64 : i32
    %1 = vector.broadcast %c64_i32 : i32 to vector<1x128xi32>
    %2 = arith.cmpi sge, %0, %1 : vector<1x128xi32>
    %c96_i32 = arith.constant 96 : i32
    %3 = vector.broadcast %c96_i32 : i32 to vector<1x128xi32>
    %4 = arith.cmpi slt, %0, %3 : vector<1x128xi32>
    %5 = arith.andi %2, %4 : vector<1x128xi1>
    %cst = arith.constant 2.000000e+00 : f32
    %cst_0 = arith.constant 1.000000e+00 : f32
    %6 = vector.broadcast %cst : f32 to vector<1x128xf32>
    %7 = vector.broadcast %cst_0 : f32 to vector<1x128xf32>
    %8 = arith.select %5, %6, %7 : vector<1x128xi1>, vector<1x128xf32>
    %c0 = arith.constant 0 : index
    %c0_1 = arith.constant 0 : index
    %9 = vector.load %arg4[%c0, %c0_1] : memref<32x128xf32, #tpu.memory_space<vmem>>, vector<32x128xf32>
    %10 = vector.broadcast %8 : vector<1x128xf32> to vector<32x128xf32>
    %11 = arith.mulf %9, %10 : vector<32x128xf32>
    %c0_2 = arith.constant 0 : index
    %c0_3 = arith.constant 0 : index
    %12 = vector.load %arg6[%c0_2, %c0_3] : memref<32x128xf32, #tpu.memory_space<vmem>>, vector<32x128xf32>
    %13 = vector.broadcast %8 : vector<1x128xf32> to vector<32x128xf32>
    %14 = arith.mulf %12, %13 : vector<32x128xf32>
    %c0_4 = arith.constant 0 : index
    %c0_5 = arith.constant 0 : index
    %15 = vector.load %arg7[%c0_4, %c0_5] : memref<32x128xf32, #tpu.memory_space<vmem>>, vector<32x128xf32>
    %16 = vector.broadcast %8 : vector<1x128xf32> to vector<32x128xf32>
    %17 = arith.mulf %15, %16 : vector<32x128xf32>
    %c0_6 = arith.constant 0 : index
    %c0_7 = arith.constant 0 : index
    %18 = vector.load %arg8[%c0_6, %c0_7] : memref<1x128xf32, #tpu.memory_space<vmem>>, vector<1x128xf32>
    %19 = arith.mulf %18, %8 : vector<1x128xf32>
    %20 = vector.shape_cast %19 : vector<1x128xf32> to vector<1x128xf32>
    %21 = vector.broadcast %20 : vector<1x128xf32> to vector<8x128xf32>
    %c0_8 = arith.constant 0 : index
    %c0_9 = arith.constant 0 : index
    %22 = vector.load %arg0[%c0_8, %c0_9] : memref<64x3xf32, #tpu.memory_space<vmem>>, vector<64x1xf32>
    %c0_10 = arith.constant 0 : index
    %c0_11 = arith.constant 0 : index
    %23 = vector.load %arg3[%c0_10, %c0_11] : memref<1x128xf32, #tpu.memory_space<vmem>>, vector<1x128xf32>
    %24 = arith.mulf %23, %8 : vector<1x128xf32>
    %25 = vector.broadcast %22 : vector<64x1xf32> to vector<64x128xf32>
    %26 = vector.broadcast %24 : vector<1x128xf32> to vector<64x128xf32>
    %27 = arith.mulf %25, %26 : vector<64x128xf32>
    %c0_12 = arith.constant 0 : index
    %c0_13 = arith.constant 0 : index
    %28 = vector.load %arg5[%c0_12, %c0_13] : memref<1x128xf32, #tpu.memory_space<vmem>>, vector<1x128xf32>
    %29 = arith.mulf %28, %8 : vector<1x128xf32>
    %30 = vector.broadcast %29 : vector<1x128xf32> to vector<64x128xf32>
    %31 = arith.addf %27, %30 : vector<64x128xf32>
    %c0_14 = arith.constant 0 : index
    %c0_15 = arith.constant 0 : index
    %c0_16 = arith.constant 0 : index
    %32 = vector.load %arg1[%c0_14, %c0_15, %c0_16] : memref<2x8x32xf32, #tpu.memory_space<vmem>>, vector<1x8x32xf32>
    %33 = vector.shape_cast %32 : vector<1x8x32xf32> to vector<8x32xf32>
    %c0_17 = arith.constant 0 : index
    %c0_18 = arith.constant 0 : index
    %c0_19 = arith.constant 0 : index
    %34 = vector.load %arg2[%c0_17, %c0_18, %c0_19] : memref<2x8x32xf32, #tpu.memory_space<vmem>>, vector<1x8x32xf32>
    %35 = vector.shape_cast %34 : vector<1x8x32xf32> to vector<8x32xf32>
    %c1 = arith.constant 1 : index
    %c0_20 = arith.constant 0 : index
    %c0_21 = arith.constant 0 : index
    %36 = vector.load %arg1[%c1, %c0_20, %c0_21] : memref<2x8x32xf32, #tpu.memory_space<vmem>>, vector<1x8x32xf32>
    %37 = vector.shape_cast %36 : vector<1x8x32xf32> to vector<8x32xf32>
    %c1_22 = arith.constant 1 : index
    %c0_23 = arith.constant 0 : index
    %c0_24 = arith.constant 0 : index
    %38 = vector.load %arg2[%c1_22, %c0_23, %c0_24] : memref<2x8x32xf32, #tpu.memory_space<vmem>>, vector<1x8x32xf32>
    %39 = vector.shape_cast %38 : vector<1x8x32xf32> to vector<8x32xf32>
    %40 = vector.extract_strided_slice %31 {offsets = [0, 0], sizes = [8, 128], strides = [1, 1]} : vector<64x128xf32> to vector<8x128xf32>
    %cst_25 = arith.constant dense<0.000000e+00> : vector<8x128xf32>
    %41 = tpu.matmul %33, %11, %cst_25 {dimension_numbers = #tpu.dot_dimension_numbers<[1], [0], [0], [1], [0, 0, 1, 1], [], []>} : vector<8x32xf32>, vector<32x128xf32>, vector<8x128xf32> -> vector<8x128xf32>
    %42 = arith.addf %40, %41 : vector<8x128xf32>
    %43 = arith.negf %42 : vector<8x128xf32>
    %44 = math.exp %43 : vector<8x128xf32>
    %cst_26 = arith.constant 1.000000e+00 : f32
    %45 = vector.broadcast %cst_26 : f32 to vector<8x128xf32>
    %46 = arith.addf %45, %44 : vector<8x128xf32>
    %47 = arith.divf %45, %46 : vector<8x128xf32>
    %48 = vector.extract_strided_slice %47 {offsets = [0, 0], sizes = [8, 32], strides = [1, 1]} : vector<8x128xf32> to vector<8x32xf32>
    %49 = vector.extract_strided_slice %47 {offsets = [0, 32], sizes = [8, 32], strides = [1, 1]} : vector<8x128xf32> to vector<8x32xf32>
    %50 = vector.extract_strided_slice %47 {offsets = [0, 64], sizes = [8, 32], strides = [1, 1]} : vector<8x128xf32> to vector<8x32xf32>
    %cst_27 = arith.constant 2.000000e+00 : f32
    %51 = vector.broadcast %cst_27 : f32 to vector<8x32xf32>
    %52 = arith.mulf %51, %50 : vector<8x32xf32>
    %cst_28 = arith.constant 1.000000e+00 : f32
    %53 = vector.broadcast %cst_28 : f32 to vector<8x32xf32>
    %54 = arith.subf %52, %53 : vector<8x32xf32>
    %55 = vector.extract_strided_slice %47 {offsets = [0, 96], sizes = [8, 32], strides = [1, 1]} : vector<8x128xf32> to vector<8x32xf32>
    %56 = arith.mulf %49, %35 : vector<8x32xf32>
    %57 = arith.mulf %48, %54 : vector<8x32xf32>
    %58 = arith.addf %56, %57 : vector<8x32xf32>
    %59 = math.tanh %58 : vector<8x32xf32>
    %60 = arith.mulf %55, %59 : vector<8x32xf32>
    %cst_29 = arith.constant dense<0.000000e+00> : vector<8x128xf32>
    %61 = tpu.matmul %60, %14, %cst_29 {dimension_numbers = #tpu.dot_dimension_numbers<[1], [0], [0], [1], [0, 0, 1, 1], [], []>} : vector<8x32xf32>, vector<32x128xf32>, vector<8x128xf32> -> vector<8x128xf32>
    %cst_30 = arith.constant dense<0.000000e+00> : vector<8x128xf32>
    %62 = tpu.matmul %37, %17, %cst_30 {dimension_numbers = #tpu.dot_dimension_numbers<[1], [0], [0], [1], [0, 0, 1, 1], [], []>} : vector<8x32xf32>, vector<32x128xf32>, vector<8x128xf32> -> vector<8x128xf32>
    %63 = arith.addf %61, %62 : vector<8x128xf32>
    %64 = arith.addf %63, %21 : vector<8x128xf32>
    %65 = arith.negf %64 : vector<8x128xf32>
    %66 = math.exp %65 : vector<8x128xf32>
    %cst_31 = arith.constant 1.000000e+00 : f32
    %67 = vector.broadcast %cst_31 : f32 to vector<8x128xf32>
    %68 = arith.addf %67, %66 : vector<8x128xf32>
    %69 = arith.divf %67, %68 : vector<8x128xf32>
    %70 = vector.extract_strided_slice %69 {offsets = [0, 0], sizes = [8, 32], strides = [1, 1]} : vector<8x128xf32> to vector<8x32xf32>
    %71 = vector.extract_strided_slice %69 {offsets = [0, 32], sizes = [8, 32], strides = [1, 1]} : vector<8x128xf32> to vector<8x32xf32>
    %72 = vector.extract_strided_slice %69 {offsets = [0, 64], sizes = [8, 32], strides = [1, 1]} : vector<8x128xf32> to vector<8x32xf32>
    %cst_32 = arith.constant 2.000000e+00 : f32
    %73 = vector.broadcast %cst_32 : f32 to vector<8x32xf32>
    %74 = arith.mulf %73, %72 : vector<8x32xf32>
    %cst_33 = arith.constant 1.000000e+00 : f32
    %75 = vector.broadcast %cst_33 : f32 to vector<8x32xf32>
    %76 = arith.subf %74, %75 : vector<8x32xf32>
    %77 = vector.extract_strided_slice %69 {offsets = [0, 96], sizes = [8, 32], strides = [1, 1]} : vector<8x128xf32> to vector<8x32xf32>
    %78 = arith.mulf %71, %39 : vector<8x32xf32>
    %79 = arith.mulf %70, %76 : vector<8x32xf32>
    %80 = arith.addf %78, %79 : vector<8x32xf32>
    %81 = math.tanh %80 : vector<8x32xf32>
    %82 = arith.mulf %77, %81 : vector<8x32xf32>
    %c0_34 = arith.constant 0 : index
    %c0_35 = arith.constant 0 : index
    %83 = vector.load %arg14[%c0_34, %c0_35] : memref<64x32xf32, #tpu.memory_space<vmem>>, vector<8x32xf32>
    tpu.vector_store %arg14[%c0_34, %c0_35], %82 {strides = array<i32>} : memref<64x32xf32, #tpu.memory_space<vmem>>, vector<8x32xf32>,
    %84 = vector.extract_strided_slice %31 {offsets = [8, 0], sizes = [8, 128], strides = [1, 1]} : vector<64x128xf32> to vector<8x128xf32>
    %cst_36 = arith.constant dense<0.000000e+00> : vector<8x128xf32>
    %85 = tpu.matmul %60, %11, %cst_36 {dimension_numbers = #tpu.dot_dimension_numbers<[1], [0], [0], [1], [0, 0, 1, 1], [], []>} : vector<8x32xf32>, vector<32x128xf32>, vector<8x128xf32> -> vector<8x128xf32>
    %86 = arith.addf %84, %85 : vector<8x128xf32>
    %87 = arith.negf %86 : vector<8x128xf32>
    %88 = math.exp %87 : vector<8x128xf32>
    %cst_37 = arith.constant 1.000000e+00 : f32
    %89 = vector.broadcast %cst_37 : f32 to vector<8x128xf32>
    %90 = arith.addf %89, %88 : vector<8x128xf32>
    %91 = arith.divf %89, %90 : vector<8x128xf32>
    %92 = vector.extract_strided_slice %91 {offsets = [0, 0], sizes = [8, 32], strides = [1, 1]} : vector<8x128xf32> to vector<8x32xf32>
    %93 = vector.extract_strided_slice %91 {offsets = [0, 32], sizes = [8, 32], strides = [1, 1]} : vector<8x128xf32> to vector<8x32xf32>
    %94 = vector.extract_strided_slice %91 {offsets = [0, 64], sizes = [8, 32], strides = [1, 1]} : vector<8x128xf32> to vector<8x32xf32>
    %cst_38 = arith.constant 2.000000e+00 : f32
    %95 = vector.broadcast %cst_38 : f32 to vector<8x32xf32>
    %96 = arith.mulf %95, %94 : vector<8x32xf32>
    %cst_39 = arith.constant 1.000000e+00 : f32
    %97 = vector.broadcast %cst_39 : f32 to vector<8x32xf32>
    %98 = arith.subf %96, %97 : vector<8x32xf32>
    %99 = vector.extract_strided_slice %91 {offsets = [0, 96], sizes = [8, 32], strides = [1, 1]} : vector<8x128xf32> to vector<8x32xf32>
    %100 = arith.mulf %93, %58 : vector<8x32xf32>
    %101 = arith.mulf %92, %98 : vector<8x32xf32>
    %102 = arith.addf %100, %101 : vector<8x32xf32>
    %103 = math.tanh %102 : vector<8x32xf32>
    %104 = arith.mulf %99, %103 : vector<8x32xf32>
    %cst_40 = arith.constant dense<0.000000e+00> : vector<8x128xf32>
    %105 = tpu.matmul %104, %14, %cst_40 {dimension_numbers = #tpu.dot_dimension_numbers<[1], [0], [0], [1], [0, 0, 1, 1], [], []>} : vector<8x32xf32>, vector<32x128xf32>, vector<8x128xf32> -> vector<8x128xf32>
    %cst_41 = arith.constant dense<0.000000e+00> : vector<8x128xf32>
    %106 = tpu.matmul %82, %17, %cst_41 {dimension_numbers = #tpu.dot_dimension_numbers<[1], [0], [0], [1], [0, 0, 1, 1], [], []>} : vector<8x32xf32>, vector<32x128xf32>, vector<8x128xf32> -> vector<8x128xf32>
    %107 = arith.addf %105, %106 : vector<8x128xf32>
    %108 = arith.addf %107, %21 : vector<8x128xf32>
    %109 = arith.negf %108 : vector<8x128xf32>
    %110 = math.exp %109 : vector<8x128xf32>
    %cst_42 = arith.constant 1.000000e+00 : f32
    %111 = vector.broadcast %cst_42 : f32 to vector<8x128xf32>
    %112 = arith.addf %111, %110 : vector<8x128xf32>
    %113 = arith.divf %111, %112 : vector<8x128xf32>
    %114 = vector.extract_strided_slice %113 {offsets = [0, 0], sizes = [8, 32], strides = [1, 1]} : vector<8x128xf32> to vector<8x32xf32>
    %115 = vector.extract_strided_slice %113 {offsets = [0, 32], sizes = [8, 32], strides = [1, 1]} : vector<8x128xf32> to vector<8x32xf32>
    %116 = vector.extract_strided_slice %113 {offsets = [0, 64], sizes = [8, 32], strides = [1, 1]} : vector<8x128xf32> to vector<8x32xf32>
    %cst_43 = arith.constant 2.000000e+00 : f32
    %117 = vector.broadcast %cst_43 : f32 to vector<8x32xf32>
    %118 = arith.mulf %117, %116 : vector<8x32xf32>
    %cst_44 = arith.constant 1.000000e+00 : f32
    %119 = vector.broadcast %cst_44 : f32 to vector<8x32xf32>
    %120 = arith.subf %118, %119 : vector<8x32xf32>
    %121 = vector.extract_strided_slice %113 {offsets = [0, 96], sizes = [8, 32], strides = [1, 1]} : vector<8x128xf32> to vector<8x32xf32>
    %122 = arith.mulf %115, %80 : vector<8x32xf32>
    %123 = arith.mulf %114, %120 : vector<8x32xf32>
    %124 = arith.addf %122, %123 : vector<8x32xf32>
    %125 = math.tanh %124 : vector<8x32xf32>
    %126 = arith.mulf %121, %125 : vector<8x32xf32>
    %c8 = arith.constant 8 : index
    %c0_45 = arith.constant 0 : index
    %127 = vector.load %arg14[%c8, %c0_45] : memref<64x32xf32, #tpu.memory_space<vmem>>, vector<8x32xf32>
    tpu.vector_store %arg14[%c8, %c0_45], %126 {strides = array<i32>} : memref<64x32xf32, #tpu.memory_space<vmem>>, vector<8x32xf32>,
    %128 = vector.extract_strided_slice %31 {offsets = [16, 0], sizes = [8, 128], strides = [1, 1]} : vector<64x128xf32> to vector<8x128xf32>
    %cst_46 = arith.constant dense<0.000000e+00> : vector<8x128xf32>
    %129 = tpu.matmul %104, %11, %cst_46 {dimension_numbers = #tpu.dot_dimension_numbers<[1], [0], [0], [1], [0, 0, 1, 1], [], []>} : vector<8x32xf32>, vector<32x128xf32>, vector<8x128xf32> -> vector<8x128xf32>
    %130 = arith.addf %128, %129 : vector<8x128xf32>
    %131 = arith.negf %130 : vector<8x128xf32>
    %132 = math.exp %131 : vector<8x128xf32>
    %cst_47 = arith.constant 1.000000e+00 : f32
    %133 = vector.broadcast %cst_47 : f32 to vector<8x128xf32>
    %134 = arith.addf %133, %132 : vector<8x128xf32>
    %135 = arith.divf %133, %134 : vector<8x128xf32>
    %136 = vector.extract_strided_slice %135 {offsets = [0, 0], sizes = [8, 32], strides = [1, 1]} : vector<8x128xf32> to vector<8x32xf32>
    %137 = vector.extract_strided_slice %135 {offsets = [0, 32], sizes = [8, 32], strides = [1, 1]} : vector<8x128xf32> to vector<8x32xf32>
    %138 = vector.extract_strided_slice %135 {offsets = [0, 64], sizes = [8, 32], strides = [1, 1]} : vector<8x128xf32> to vector<8x32xf32>
    %cst_48 = arith.constant 2.000000e+00 : f32
    %139 = vector.broadcast %cst_48 : f32 to vector<8x32xf32>
    %140 = arith.mulf %139, %138 : vector<8x32xf32>
    %cst_49 = arith.constant 1.000000e+00 : f32
    %141 = vector.broadcast %cst_49 : f32 to vector<8x32xf32>
    %142 = arith.subf %140, %141 : vector<8x32xf32>
    %143 = vector.extract_strided_slice %135 {offsets = [0, 96], sizes = [8, 32], strides = [1, 1]} : vector<8x128xf32> to vector<8x32xf32>
    %144 = arith.mulf %137, %102 : vector<8x32xf32>
    %145 = arith.mulf %136, %142 : vector<8x32xf32>
    %146 = arith.addf %144, %145 : vector<8x32xf32>
    %147 = math.tanh %146 : vector<8x32xf32>
    %148 = arith.mulf %143, %147 : vector<8x32xf32>
    %cst_50 = arith.constant dense<0.000000e+00> : vector<8x128xf32>
    %149 = tpu.matmul %148, %14, %cst_50 {dimension_numbers = #tpu.dot_dimension_numbers<[1], [0], [0], [1], [0, 0, 1, 1], [], []>} : vector<8x32xf32>, vector<32x128xf32>, vector<8x128xf32> -> vector<8x128xf32>
    %cst_51 = arith.constant dense<0.000000e+00> : vector<8x128xf32>
    %150 = tpu.matmul %126, %17, %cst_51 {dimension_numbers = #tpu.dot_dimension_numbers<[1], [0], [0], [1], [0, 0, 1, 1], [], []>} : vector<8x32xf32>, vector<32x128xf32>, vector<8x128xf32> -> vector<8x128xf32>
    %151 = arith.addf %149, %150 : vector<8x128xf32>
    %152 = arith.addf %151, %21 : vector<8x128xf32>
    %153 = arith.negf %152 : vector<8x128xf32>
    %154 = math.exp %153 : vector<8x128xf32>
    %cst_52 = arith.constant 1.000000e+00 : f32
    %155 = vector.broadcast %cst_52 : f32 to vector<8x128xf32>
    %156 = arith.addf %155, %154 : vector<8x128xf32>
    %157 = arith.divf %155, %156 : vector<8x128xf32>
    %158 = vector.extract_strided_slice %157 {offsets = [0, 0], sizes = [8, 32], strides = [1, 1]} : vector<8x128xf32> to vector<8x32xf32>
    %159 = vector.extract_strided_slice %157 {offsets = [0, 32], sizes = [8, 32], strides = [1, 1]} : vector<8x128xf32> to vector<8x32xf32>
    %160 = vector.extract_strided_slice %157 {offsets = [0, 64], sizes = [8, 32], strides = [1, 1]} : vector<8x128xf32> to vector<8x32xf32>
    %cst_53 = arith.constant 2.000000e+00 : f32
    %161 = vector.broadcast %cst_53 : f32 to vector<8x32xf32>
    %162 = arith.mulf %161, %160 : vector<8x32xf32>
    %cst_54 = arith.constant 1.000000e+00 : f32
    %163 = vector.broadcast %cst_54 : f32 to vector<8x32xf32>
    %164 = arith.subf %162, %163 : vector<8x32xf32>
    %165 = vector.extract_strided_slice %157 {offsets = [0, 96], sizes = [8, 32], strides = [1, 1]} : vector<8x128xf32> to vector<8x32xf32>
    %166 = arith.mulf %159, %124 : vector<8x32xf32>
    %167 = arith.mulf %158, %164 : vector<8x32xf32>
    %168 = arith.addf %166, %167 : vector<8x32xf32>
    %169 = math.tanh %168 : vector<8x32xf32>
    %170 = arith.mulf %165, %169 : vector<8x32xf32>
    %c16 = arith.constant 16 : index
    %c0_55 = arith.constant 0 : index
    %171 = vector.load %arg14[%c16, %c0_55] : memref<64x32xf32, #tpu.memory_space<vmem>>, vector<8x32xf32>
    tpu.vector_store %arg14[%c16, %c0_55], %170 {strides = array<i32>} : memref<64x32xf32, #tpu.memory_space<vmem>>, vector<8x32xf32>,
    %172 = vector.extract_strided_slice %31 {offsets = [24, 0], sizes = [8, 128], strides = [1, 1]} : vector<64x128xf32> to vector<8x128xf32>
    %cst_56 = arith.constant dense<0.000000e+00> : vector<8x128xf32>
    %173 = tpu.matmul %148, %11, %cst_56 {dimension_numbers = #tpu.dot_dimension_numbers<[1], [0], [0], [1], [0, 0, 1, 1], [], []>} : vector<8x32xf32>, vector<32x128xf32>, vector<8x128xf32> -> vector<8x128xf32>
    %174 = arith.addf %172, %173 : vector<8x128xf32>
    %175 = arith.negf %174 : vector<8x128xf32>
    %176 = math.exp %175 : vector<8x128xf32>
    %cst_57 = arith.constant 1.000000e+00 : f32
    %177 = vector.broadcast %cst_57 : f32 to vector<8x128xf32>
    %178 = arith.addf %177, %176 : vector<8x128xf32>
    %179 = arith.divf %177, %178 : vector<8x128xf32>
    %180 = vector.extract_strided_slice %179 {offsets = [0, 0], sizes = [8, 32], strides = [1, 1]} : vector<8x128xf32> to vector<8x32xf32>
    %181 = vector.extract_strided_slice %179 {offsets = [0, 32], sizes = [8, 32], strides = [1, 1]} : vector<8x128xf32> to vector<8x32xf32>
    %182 = vector.extract_strided_slice %179 {offsets = [0, 64], sizes = [8, 32], strides = [1, 1]} : vector<8x128xf32> to vector<8x32xf32>
    %cst_58 = arith.constant 2.000000e+00 : f32
    %183 = vector.broadcast %cst_58 : f32 to vector<8x32xf32>
    %184 = arith.mulf %183, %182 : vector<8x32xf32>
    %cst_59 = arith.constant 1.000000e+00 : f32
    %185 = vector.broadcast %cst_59 : f32 to vector<8x32xf32>
    %186 = arith.subf %184, %185 : vector<8x32xf32>
    %187 = vector.extract_strided_slice %179 {offsets = [0, 96], sizes = [8, 32], strides = [1, 1]} : vector<8x128xf32> to vector<8x32xf32>
    %188 = arith.mulf %181, %146 : vector<8x32xf32>
    %189 = arith.mulf %180, %186 : vector<8x32xf32>
    %190 = arith.addf %188, %189 : vector<8x32xf32>
    %191 = math.tanh %190 : vector<8x32xf32>
    %192 = arith.mulf %187, %191 : vector<8x32xf32>
    %cst_60 = arith.constant dense<0.000000e+00> : vector<8x128xf32>
    %193 = tpu.matmul %192, %14, %cst_60 {dimension_numbers = #tpu.dot_dimension_numbers<[1], [0], [0], [1], [0, 0, 1, 1], [], []>} : vector<8x32xf32>, vector<32x128xf32>, vector<8x128xf32> -> vector<8x128xf32>
    %cst_61 = arith.constant dense<0.000000e+00> : vector<8x128xf32>
    %194 = tpu.matmul %170, %17, %cst_61 {dimension_numbers = #tpu.dot_dimension_numbers<[1], [0], [0], [1], [0, 0, 1, 1], [], []>} : vector<8x32xf32>, vector<32x128xf32>, vector<8x128xf32> -> vector<8x128xf32>
    %195 = arith.addf %193, %194 : vector<8x128xf32>
    %196 = arith.addf %195, %21 : vector<8x128xf32>
    %197 = arith.negf %196 : vector<8x128xf32>
    %198 = math.exp %197 : vector<8x128xf32>
    %cst_62 = arith.constant 1.000000e+00 : f32
    %199 = vector.broadcast %cst_62 : f32 to vector<8x128xf32>
    %200 = arith.addf %199, %198 : vector<8x128xf32>
    %201 = arith.divf %199, %200 : vector<8x128xf32>
    %202 = vector.extract_strided_slice %201 {offsets = [0, 0], sizes = [8, 32], strides = [1, 1]} : vector<8x128xf32> to vector<8x32xf32>
    %203 = vector.extract_strided_slice %201 {offsets = [0, 32], sizes = [8, 32], strides = [1, 1]} : vector<8x128xf32> to vector<8x32xf32>
    %204 = vector.extract_strided_slice %201 {offsets = [0, 64], sizes = [8, 32], strides = [1, 1]} : vector<8x128xf32> to vector<8x32xf32>
    %cst_63 = arith.constant 2.000000e+00 : f32
    %205 = vector.broadcast %cst_63 : f32 to vector<8x32xf32>
    %206 = arith.mulf %205, %204 : vector<8x32xf32>
    %cst_64 = arith.constant 1.000000e+00 : f32
    %207 = vector.broadcast %cst_64 : f32 to vector<8x32xf32>
    %208 = arith.subf %206, %207 : vector<8x32xf32>
    %209 = vector.extract_strided_slice %201 {offsets = [0, 96], sizes = [8, 32], strides = [1, 1]} : vector<8x128xf32> to vector<8x32xf32>
    %210 = arith.mulf %203, %168 : vector<8x32xf32>
    %211 = arith.mulf %202, %208 : vector<8x32xf32>
    %212 = arith.addf %210, %211 : vector<8x32xf32>
    %213 = math.tanh %212 : vector<8x32xf32>
    %214 = arith.mulf %209, %213 : vector<8x32xf32>
    %c24 = arith.constant 24 : index
    %c0_65 = arith.constant 0 : index
    %215 = vector.load %arg14[%c24, %c0_65] : memref<64x32xf32, #tpu.memory_space<vmem>>, vector<8x32xf32>
    tpu.vector_store %arg14[%c24, %c0_65], %214 {strides = array<i32>} : memref<64x32xf32, #tpu.memory_space<vmem>>, vector<8x32xf32>,
    %216 = vector.extract_strided_slice %31 {offsets = [32, 0], sizes = [8, 128], strides = [1, 1]} : vector<64x128xf32> to vector<8x128xf32>
    %cst_66 = arith.constant dense<0.000000e+00> : vector<8x128xf32>
    %217 = tpu.matmul %192, %11, %cst_66 {dimension_numbers = #tpu.dot_dimension_numbers<[1], [0], [0], [1], [0, 0, 1, 1], [], []>} : vector<8x32xf32>, vector<32x128xf32>, vector<8x128xf32> -> vector<8x128xf32>
    %218 = arith.addf %216, %217 : vector<8x128xf32>
    %219 = arith.negf %218 : vector<8x128xf32>
    %220 = math.exp %219 : vector<8x128xf32>
    %cst_67 = arith.constant 1.000000e+00 : f32
    %221 = vector.broadcast %cst_67 : f32 to vector<8x128xf32>
    %222 = arith.addf %221, %220 : vector<8x128xf32>
    %223 = arith.divf %221, %222 : vector<8x128xf32>
    %224 = vector.extract_strided_slice %223 {offsets = [0, 0], sizes = [8, 32], strides = [1, 1]} : vector<8x128xf32> to vector<8x32xf32>
    %225 = vector.extract_strided_slice %223 {offsets = [0, 32], sizes = [8, 32], strides = [1, 1]} : vector<8x128xf32> to vector<8x32xf32>
    %226 = vector.extract_strided_slice %223 {offsets = [0, 64], sizes = [8, 32], strides = [1, 1]} : vector<8x128xf32> to vector<8x32xf32>
    %cst_68 = arith.constant 2.000000e+00 : f32
    %227 = vector.broadcast %cst_68 : f32 to vector<8x32xf32>
    %228 = arith.mulf %227, %226 : vector<8x32xf32>
    %cst_69 = arith.constant 1.000000e+00 : f32
    %229 = vector.broadcast %cst_69 : f32 to vector<8x32xf32>
    %230 = arith.subf %228, %229 : vector<8x32xf32>
    %231 = vector.extract_strided_slice %223 {offsets = [0, 96], sizes = [8, 32], strides = [1, 1]} : vector<8x128xf32> to vector<8x32xf32>
    %232 = arith.mulf %225, %190 : vector<8x32xf32>
    %233 = arith.mulf %224, %230 : vector<8x32xf32>
    %234 = arith.addf %232, %233 : vector<8x32xf32>
    %235 = math.tanh %234 : vector<8x32xf32>
    %236 = arith.mulf %231, %235 : vector<8x32xf32>
    %cst_70 = arith.constant dense<0.000000e+00> : vector<8x128xf32>
    %237 = tpu.matmul %236, %14, %cst_70 {dimension_numbers = #tpu.dot_dimension_numbers<[1], [0], [0], [1], [0, 0, 1, 1], [], []>} : vector<8x32xf32>, vector<32x128xf32>, vector<8x128xf32> -> vector<8x128xf32>
    %cst_71 = arith.constant dense<0.000000e+00> : vector<8x128xf32>
    %238 = tpu.matmul %214, %17, %cst_71 {dimension_numbers = #tpu.dot_dimension_numbers<[1], [0], [0], [1], [0, 0, 1, 1], [], []>} : vector<8x32xf32>, vector<32x128xf32>, vector<8x128xf32> -> vector<8x128xf32>
    %239 = arith.addf %237, %238 : vector<8x128xf32>
    %240 = arith.addf %239, %21 : vector<8x128xf32>
    %241 = arith.negf %240 : vector<8x128xf32>
    %242 = math.exp %241 : vector<8x128xf32>
    %cst_72 = arith.constant 1.000000e+00 : f32
    %243 = vector.broadcast %cst_72 : f32 to vector<8x128xf32>
    %244 = arith.addf %243, %242 : vector<8x128xf32>
    %245 = arith.divf %243, %244 : vector<8x128xf32>
    %246 = vector.extract_strided_slice %245 {offsets = [0, 0], sizes = [8, 32], strides = [1, 1]} : vector<8x128xf32> to vector<8x32xf32>
    %247 = vector.extract_strided_slice %245 {offsets = [0, 32], sizes = [8, 32], strides = [1, 1]} : vector<8x128xf32> to vector<8x32xf32>
    %248 = vector.extract_strided_slice %245 {offsets = [0, 64], sizes = [8, 32], strides = [1, 1]} : vector<8x128xf32> to vector<8x32xf32>
    %cst_73 = arith.constant 2.000000e+00 : f32
    %249 = vector.broadcast %cst_73 : f32 to vector<8x32xf32>
    %250 = arith.mulf %249, %248 : vector<8x32xf32>
    %cst_74 = arith.constant 1.000000e+00 : f32
    %251 = vector.broadcast %cst_74 : f32 to vector<8x32xf32>
    %252 = arith.subf %250, %251 : vector<8x32xf32>
    %253 = vector.extract_strided_slice %245 {offsets = [0, 96], sizes = [8, 32], strides = [1, 1]} : vector<8x128xf32> to vector<8x32xf32>
    %254 = arith.mulf %247, %212 : vector<8x32xf32>
    %255 = arith.mulf %246, %252 : vector<8x32xf32>
    %256 = arith.addf %254, %255 : vector<8x32xf32>
    %257 = math.tanh %256 : vector<8x32xf32>
    %258 = arith.mulf %253, %257 : vector<8x32xf32>
    %c32 = arith.constant 32 : index
    %c0_75 = arith.constant 0 : index
    %259 = vector.load %arg14[%c32, %c0_75] : memref<64x32xf32, #tpu.memory_space<vmem>>, vector<8x32xf32>
    tpu.vector_store %arg14[%c32, %c0_75], %258 {strides = array<i32>} : memref<64x32xf32, #tpu.memory_space<vmem>>, vector<8x32xf32>,
    %260 = vector.extract_strided_slice %31 {offsets = [40, 0], sizes = [8, 128], strides = [1, 1]} : vector<64x128xf32> to vector<8x128xf32>
    %cst_76 = arith.constant dense<0.000000e+00> : vector<8x128xf32>
    %261 = tpu.matmul %236, %11, %cst_76 {dimension_numbers = #tpu.dot_dimension_numbers<[1], [0], [0], [1], [0, 0, 1, 1], [], []>} : vector<8x32xf32>, vector<32x128xf32>, vector<8x128xf32> -> vector<8x128xf32>
    %262 = arith.addf %260, %261 : vector<8x128xf32>
    %263 = arith.negf %262 : vector<8x128xf32>
    %264 = math.exp %263 : vector<8x128xf32>
    %cst_77 = arith.constant 1.000000e+00 : f32
    %265 = vector.broadcast %cst_77 : f32 to vector<8x128xf32>
    %266 = arith.addf %265, %264 : vector<8x128xf32>
    %267 = arith.divf %265, %266 : vector<8x128xf32>
    %268 = vector.extract_strided_slice %267 {offsets = [0, 0], sizes = [8, 32], strides = [1, 1]} : vector<8x128xf32> to vector<8x32xf32>
    %269 = vector.extract_strided_slice %267 {offsets = [0, 32], sizes = [8, 32], strides = [1, 1]} : vector<8x128xf32> to vector<8x32xf32>
    %270 = vector.extract_strided_slice %267 {offsets = [0, 64], sizes = [8, 32], strides = [1, 1]} : vector<8x128xf32> to vector<8x32xf32>
    %cst_78 = arith.constant 2.000000e+00 : f32
    %271 = vector.broadcast %cst_78 : f32 to vector<8x32xf32>
    %272 = arith.mulf %271, %270 : vector<8x32xf32>
    %cst_79 = arith.constant 1.000000e+00 : f32
    %273 = vector.broadcast %cst_79 : f32 to vector<8x32xf32>
    %274 = arith.subf %272, %273 : vector<8x32xf32>
    %275 = vector.extract_strided_slice %267 {offsets = [0, 96], sizes = [8, 32], strides = [1, 1]} : vector<8x128xf32> to vector<8x32xf32>
    %276 = arith.mulf %269, %234 : vector<8x32xf32>
    %277 = arith.mulf %268, %274 : vector<8x32xf32>
    %278 = arith.addf %276, %277 : vector<8x32xf32>
    %279 = math.tanh %278 : vector<8x32xf32>
    %280 = arith.mulf %275, %279 : vector<8x32xf32>
    %cst_80 = arith.constant dense<0.000000e+00> : vector<8x128xf32>
    %281 = tpu.matmul %280, %14, %cst_80 {dimension_numbers = #tpu.dot_dimension_numbers<[1], [0], [0], [1], [0, 0, 1, 1], [], []>} : vector<8x32xf32>, vector<32x128xf32>, vector<8x128xf32> -> vector<8x128xf32>
    %cst_81 = arith.constant dense<0.000000e+00> : vector<8x128xf32>
    %282 = tpu.matmul %258, %17, %cst_81 {dimension_numbers = #tpu.dot_dimension_numbers<[1], [0], [0], [1], [0, 0, 1, 1], [], []>} : vector<8x32xf32>, vector<32x128xf32>, vector<8x128xf32> -> vector<8x128xf32>
    %283 = arith.addf %281, %282 : vector<8x128xf32>
    %284 = arith.addf %283, %21 : vector<8x128xf32>
    %285 = arith.negf %284 : vector<8x128xf32>
    %286 = math.exp %285 : vector<8x128xf32>
    %cst_82 = arith.constant 1.000000e+00 : f32
    %287 = vector.broadcast %cst_82 : f32 to vector<8x128xf32>
    %288 = arith.addf %287, %286 : vector<8x128xf32>
    %289 = arith.divf %287, %288 : vector<8x128xf32>
    %290 = vector.extract_strided_slice %289 {offsets = [0, 0], sizes = [8, 32], strides = [1, 1]} : vector<8x128xf32> to vector<8x32xf32>
    %291 = vector.extract_strided_slice %289 {offsets = [0, 32], sizes = [8, 32], strides = [1, 1]} : vector<8x128xf32> to vector<8x32xf32>
    %292 = vector.extract_strided_slice %289 {offsets = [0, 64], sizes = [8, 32], strides = [1, 1]} : vector<8x128xf32> to vector<8x32xf32>
    %cst_83 = arith.constant 2.000000e+00 : f32
    %293 = vector.broadcast %cst_83 : f32 to vector<8x32xf32>
    %294 = arith.mulf %293, %292 : vector<8x32xf32>
    %cst_84 = arith.constant 1.000000e+00 : f32
    %295 = vector.broadcast %cst_84 : f32 to vector<8x32xf32>
    %296 = arith.subf %294, %295 : vector<8x32xf32>
    %297 = vector.extract_strided_slice %289 {offsets = [0, 96], sizes = [8, 32], strides = [1, 1]} : vector<8x128xf32> to vector<8x32xf32>
    %298 = arith.mulf %291, %256 : vector<8x32xf32>
    %299 = arith.mulf %290, %296 : vector<8x32xf32>
    %300 = arith.addf %298, %299 : vector<8x32xf32>
    %301 = math.tanh %300 : vector<8x32xf32>
    %302 = arith.mulf %297, %301 : vector<8x32xf32>
    %c40 = arith.constant 40 : index
    %c0_85 = arith.constant 0 : index
    %303 = vector.load %arg14[%c40, %c0_85] : memref<64x32xf32, #tpu.memory_space<vmem>>, vector<8x32xf32>
    tpu.vector_store %arg14[%c40, %c0_85], %302 {strides = array<i32>} : memref<64x32xf32, #tpu.memory_space<vmem>>, vector<8x32xf32>,
    %304 = vector.extract_strided_slice %31 {offsets = [48, 0], sizes = [8, 128], strides = [1, 1]} : vector<64x128xf32> to vector<8x128xf32>
    %cst_86 = arith.constant dense<0.000000e+00> : vector<8x128xf32>
    %305 = tpu.matmul %280, %11, %cst_86 {dimension_numbers = #tpu.dot_dimension_numbers<[1], [0], [0], [1], [0, 0, 1, 1], [], []>} : vector<8x32xf32>, vector<32x128xf32>, vector<8x128xf32> -> vector<8x128xf32>
    %306 = arith.addf %304, %305 : vector<8x128xf32>
    %307 = arith.negf %306 : vector<8x128xf32>
    %308 = math.exp %307 : vector<8x128xf32>
    %cst_87 = arith.constant 1.000000e+00 : f32
    %309 = vector.broadcast %cst_87 : f32 to vector<8x128xf32>
    %310 = arith.addf %309, %308 : vector<8x128xf32>
    %311 = arith.divf %309, %310 : vector<8x128xf32>
    %312 = vector.extract_strided_slice %311 {offsets = [0, 0], sizes = [8, 32], strides = [1, 1]} : vector<8x128xf32> to vector<8x32xf32>
    %313 = vector.extract_strided_slice %311 {offsets = [0, 32], sizes = [8, 32], strides = [1, 1]} : vector<8x128xf32> to vector<8x32xf32>
    %314 = vector.extract_strided_slice %311 {offsets = [0, 64], sizes = [8, 32], strides = [1, 1]} : vector<8x128xf32> to vector<8x32xf32>
    %cst_88 = arith.constant 2.000000e+00 : f32
    %315 = vector.broadcast %cst_88 : f32 to vector<8x32xf32>
    %316 = arith.mulf %315, %314 : vector<8x32xf32>
    %cst_89 = arith.constant 1.000000e+00 : f32
    %317 = vector.broadcast %cst_89 : f32 to vector<8x32xf32>
    %318 = arith.subf %316, %317 : vector<8x32xf32>
    %319 = vector.extract_strided_slice %311 {offsets = [0, 96], sizes = [8, 32], strides = [1, 1]} : vector<8x128xf32> to vector<8x32xf32>
    %320 = arith.mulf %313, %278 : vector<8x32xf32>
    %321 = arith.mulf %312, %318 : vector<8x32xf32>
    %322 = arith.addf %320, %321 : vector<8x32xf32>
    %323 = math.tanh %322 : vector<8x32xf32>
    %324 = arith.mulf %319, %323 : vector<8x32xf32>
    %cst_90 = arith.constant dense<0.000000e+00> : vector<8x128xf32>
    %325 = tpu.matmul %324, %14, %cst_90 {dimension_numbers = #tpu.dot_dimension_numbers<[1], [0], [0], [1], [0, 0, 1, 1], [], []>} : vector<8x32xf32>, vector<32x128xf32>, vector<8x128xf32> -> vector<8x128xf32>
    %cst_91 = arith.constant dense<0.000000e+00> : vector<8x128xf32>
    %326 = tpu.matmul %302, %17, %cst_91 {dimension_numbers = #tpu.dot_dimension_numbers<[1], [0], [0], [1], [0, 0, 1, 1], [], []>} : vector<8x32xf32>, vector<32x128xf32>, vector<8x128xf32> -> vector<8x128xf32>
    %327 = arith.addf %325, %326 : vector<8x128xf32>
    %328 = arith.addf %327, %21 : vector<8x128xf32>
    %329 = arith.negf %328 : vector<8x128xf32>
    %330 = math.exp %329 : vector<8x128xf32>
    %cst_92 = arith.constant 1.000000e+00 : f32
    %331 = vector.broadcast %cst_92 : f32 to vector<8x128xf32>
    %332 = arith.addf %331, %330 : vector<8x128xf32>
    %333 = arith.divf %331, %332 : vector<8x128xf32>
    %334 = vector.extract_strided_slice %333 {offsets = [0, 0], sizes = [8, 32], strides = [1, 1]} : vector<8x128xf32> to vector<8x32xf32>
    %335 = vector.extract_strided_slice %333 {offsets = [0, 32], sizes = [8, 32], strides = [1, 1]} : vector<8x128xf32> to vector<8x32xf32>
    %336 = vector.extract_strided_slice %333 {offsets = [0, 64], sizes = [8, 32], strides = [1, 1]} : vector<8x128xf32> to vector<8x32xf32>
    %cst_93 = arith.constant 2.000000e+00 : f32
    %337 = vector.broadcast %cst_93 : f32 to vector<8x32xf32>
    %338 = arith.mulf %337, %336 : vector<8x32xf32>
    %cst_94 = arith.constant 1.000000e+00 : f32
    %339 = vector.broadcast %cst_94 : f32 to vector<8x32xf32>
    %340 = arith.subf %338, %339 : vector<8x32xf32>
    %341 = vector.extract_strided_slice %333 {offsets = [0, 96], sizes = [8, 32], strides = [1, 1]} : vector<8x128xf32> to vector<8x32xf32>
    %342 = arith.mulf %335, %300 : vector<8x32xf32>
    %343 = arith.mulf %334, %340 : vector<8x32xf32>
    %344 = arith.addf %342, %343 : vector<8x32xf32>
    %345 = math.tanh %344 : vector<8x32xf32>
    %346 = arith.mulf %341, %345 : vector<8x32xf32>
    %c48 = arith.constant 48 : index
    %c0_95 = arith.constant 0 : index
    %347 = vector.load %arg14[%c48, %c0_95] : memref<64x32xf32, #tpu.memory_space<vmem>>, vector<8x32xf32>
    tpu.vector_store %arg14[%c48, %c0_95], %346 {strides = array<i32>} : memref<64x32xf32, #tpu.memory_space<vmem>>, vector<8x32xf32>,
    %348 = vector.extract_strided_slice %31 {offsets = [56, 0], sizes = [8, 128], strides = [1, 1]} : vector<64x128xf32> to vector<8x128xf32>
    %cst_96 = arith.constant dense<0.000000e+00> : vector<8x128xf32>
    %349 = tpu.matmul %324, %11, %cst_96 {dimension_numbers = #tpu.dot_dimension_numbers<[1], [0], [0], [1], [0, 0, 1, 1], [], []>} : vector<8x32xf32>, vector<32x128xf32>, vector<8x128xf32> -> vector<8x128xf32>
    %350 = arith.addf %348, %349 : vector<8x128xf32>
    %351 = arith.negf %350 : vector<8x128xf32>
    %352 = math.exp %351 : vector<8x128xf32>
    %cst_97 = arith.constant 1.000000e+00 : f32
    %353 = vector.broadcast %cst_97 : f32 to vector<8x128xf32>
    %354 = arith.addf %353, %352 : vector<8x128xf32>
    %355 = arith.divf %353, %354 : vector<8x128xf32>
    %356 = vector.extract_strided_slice %355 {offsets = [0, 0], sizes = [8, 32], strides = [1, 1]} : vector<8x128xf32> to vector<8x32xf32>
    %357 = vector.extract_strided_slice %355 {offsets = [0, 32], sizes = [8, 32], strides = [1, 1]} : vector<8x128xf32> to vector<8x32xf32>
    %358 = vector.extract_strided_slice %355 {offsets = [0, 64], sizes = [8, 32], strides = [1, 1]} : vector<8x128xf32> to vector<8x32xf32>
    %cst_98 = arith.constant 2.000000e+00 : f32
    %359 = vector.broadcast %cst_98 : f32 to vector<8x32xf32>
    %360 = arith.mulf %359, %358 : vector<8x32xf32>
    %cst_99 = arith.constant 1.000000e+00 : f32
    %361 = vector.broadcast %cst_99 : f32 to vector<8x32xf32>
    %362 = arith.subf %360, %361 : vector<8x32xf32>
    %363 = vector.extract_strided_slice %355 {offsets = [0, 96], sizes = [8, 32], strides = [1, 1]} : vector<8x128xf32> to vector<8x32xf32>
    %364 = arith.mulf %357, %322 : vector<8x32xf32>
    %365 = arith.mulf %356, %362 : vector<8x32xf32>
    %366 = arith.addf %364, %365 : vector<8x32xf32>
    %367 = math.tanh %366 : vector<8x32xf32>
    %368 = arith.mulf %363, %367 : vector<8x32xf32>
    %cst_100 = arith.constant dense<0.000000e+00> : vector<8x128xf32>
    %369 = tpu.matmul %368, %14, %cst_100 {dimension_numbers = #tpu.dot_dimension_numbers<[1], [0], [0], [1], [0, 0, 1, 1], [], []>} : vector<8x32xf32>, vector<32x128xf32>, vector<8x128xf32> -> vector<8x128xf32>
    %cst_101 = arith.constant dense<0.000000e+00> : vector<8x128xf32>
    %370 = tpu.matmul %346, %17, %cst_101 {dimension_numbers = #tpu.dot_dimension_numbers<[1], [0], [0], [1], [0, 0, 1, 1], [], []>} : vector<8x32xf32>, vector<32x128xf32>, vector<8x128xf32> -> vector<8x128xf32>
    %371 = arith.addf %369, %370 : vector<8x128xf32>
    %372 = arith.addf %371, %21 : vector<8x128xf32>
    %373 = arith.negf %372 : vector<8x128xf32>
    %374 = math.exp %373 : vector<8x128xf32>
    %cst_102 = arith.constant 1.000000e+00 : f32
    %375 = vector.broadcast %cst_102 : f32 to vector<8x128xf32>
    %376 = arith.addf %375, %374 : vector<8x128xf32>
    %377 = arith.divf %375, %376 : vector<8x128xf32>
    %378 = vector.extract_strided_slice %377 {offsets = [0, 0], sizes = [8, 32], strides = [1, 1]} : vector<8x128xf32> to vector<8x32xf32>
    %379 = vector.extract_strided_slice %377 {offsets = [0, 32], sizes = [8, 32], strides = [1, 1]} : vector<8x128xf32> to vector<8x32xf32>
    %380 = vector.extract_strided_slice %377 {offsets = [0, 64], sizes = [8, 32], strides = [1, 1]} : vector<8x128xf32> to vector<8x32xf32>
    %cst_103 = arith.constant 2.000000e+00 : f32
    %381 = vector.broadcast %cst_103 : f32 to vector<8x32xf32>
    %382 = arith.mulf %381, %380 : vector<8x32xf32>
    %cst_104 = arith.constant 1.000000e+00 : f32
    %383 = vector.broadcast %cst_104 : f32 to vector<8x32xf32>
    %384 = arith.subf %382, %383 : vector<8x32xf32>
    %385 = vector.extract_strided_slice %377 {offsets = [0, 96], sizes = [8, 32], strides = [1, 1]} : vector<8x128xf32> to vector<8x32xf32>
    %386 = arith.mulf %379, %344 : vector<8x32xf32>
    %387 = arith.mulf %378, %384 : vector<8x32xf32>
    %388 = arith.addf %386, %387 : vector<8x32xf32>
    %389 = math.tanh %388 : vector<8x32xf32>
    %390 = arith.mulf %385, %389 : vector<8x32xf32>
    %c56 = arith.constant 56 : index
    %c0_105 = arith.constant 0 : index
    %391 = vector.load %arg14[%c56, %c0_105] : memref<64x32xf32, #tpu.memory_space<vmem>>, vector<8x32xf32>
    tpu.vector_store %arg14[%c56, %c0_105], %390 {strides = array<i32>} : memref<64x32xf32, #tpu.memory_space<vmem>>, vector<8x32xf32>,
    %c0_106 = arith.constant 0 : index
    %c0_107 = arith.constant 0 : index
    %c0_108 = arith.constant 0 : index
    %392 = vector.load %arg12[%c0_106, %c0_107, %c0_108] : memref<2x8x32xf32, #tpu.memory_space<vmem>>, vector<1x8x32xf32>
    %393 = vector.shape_cast %392 : vector<1x8x32xf32> to vector<8x32xf32>
    %394 = vector.shape_cast %368 : vector<8x32xf32> to vector<1x8x32xf32>
    tpu.vector_store %arg12[%c0_106, %c0_107, %c0_108], %394 {strides = array<i32>} : memref<2x8x32xf32, #tpu.memory_space<vmem>>, vector<1x8x32xf32>,
    %c1_109 = arith.constant 1 : index
    %c0_110 = arith.constant 0 : index
    %c0_111 = arith.constant 0 : index
    %395 = vector.load %arg12[%c1_109, %c0_110, %c0_111] : memref<2x8x32xf32, #tpu.memory_space<vmem>>, vector<1x8x32xf32>
    %396 = vector.shape_cast %395 : vector<1x8x32xf32> to vector<8x32xf32>
    %397 = vector.shape_cast %390 : vector<8x32xf32> to vector<1x8x32xf32>
    tpu.vector_store %arg12[%c1_109, %c0_110, %c0_111], %397 {strides = array<i32>} : memref<2x8x32xf32, #tpu.memory_space<vmem>>, vector<1x8x32xf32>,
    %c0_112 = arith.constant 0 : index
    %c0_113 = arith.constant 0 : index
    %c0_114 = arith.constant 0 : index
    %398 = vector.load %arg13[%c0_112, %c0_113, %c0_114] : memref<2x8x32xf32, #tpu.memory_space<vmem>>, vector<1x8x32xf32>
    %399 = vector.shape_cast %398 : vector<1x8x32xf32> to vector<8x32xf32>
    %400 = vector.shape_cast %366 : vector<8x32xf32> to vector<1x8x32xf32>
    tpu.vector_store %arg13[%c0_112, %c0_113, %c0_114], %400 {strides = array<i32>} : memref<2x8x32xf32, #tpu.memory_space<vmem>>, vector<1x8x32xf32>,
    %c1_115 = arith.constant 1 : index
    %c0_116 = arith.constant 0 : index
    %c0_117 = arith.constant 0 : index
    %401 = vector.load %arg13[%c1_115, %c0_116, %c0_117] : memref<2x8x32xf32, #tpu.memory_space<vmem>>, vector<1x8x32xf32>
    %402 = vector.shape_cast %401 : vector<1x8x32xf32> to vector<8x32xf32>
    %403 = vector.shape_cast %388 : vector<8x32xf32> to vector<1x8x32xf32>
    tpu.vector_store %arg13[%c1_115, %c0_116, %c0_117], %403 {strides = array<i32>} : memref<2x8x32xf32, #tpu.memory_space<vmem>>, vector<1x8x32xf32>,
    %c0_118 = arith.constant 0 : index
    %c0_119 = arith.constant 0 : index
    %404 = vector.load %arg14[%c0_118, %c0_119] : memref<64x32xf32, #tpu.memory_space<vmem>>, vector<64x32xf32>
    %c0_120 = arith.constant 0 : index
    %c0_121 = arith.constant 0 : index
    %405 = vector.load %arg9[%c0_120, %c0_121] : memref<32x4xf32, #tpu.memory_space<vmem>>, vector<32x4xf32>
    %cst_122 = arith.constant dense<0.000000e+00> : vector<64x4xf32>
    %406 = tpu.matmul %404, %405, %cst_122 {dimension_numbers = #tpu.dot_dimension_numbers<[1], [0], [0], [1], [0, 0, 1, 1], [], []>} : vector<64x32xf32>, vector<32x4xf32>, vector<64x4xf32> -> vector<64x4xf32>
    %c0_123 = arith.constant 0 : index
    %c0_124 = arith.constant 0 : index
    %407 = vector.load %arg10[%c0_123, %c0_124] : memref<1x4xf32, #tpu.memory_space<vmem>>, vector<1x4xf32>
    %408 = vector.broadcast %407 : vector<1x4xf32> to vector<64x4xf32>
    %409 = arith.addf %406, %408 : vector<64x4xf32>
    %c0_125 = arith.constant 0 : index
    %c1_126 = arith.constant 1 : index
    %410 = vector.load %arg0[%c0_125, %c1_126] : memref<64x3xf32, #tpu.memory_space<vmem>>, vector<64x1xf32>
    %c0_127 = arith.constant 0 : index
    %c2 = arith.constant 2 : index
    %411 = vector.load %arg0[%c0_127, %c2] : memref<64x3xf32, #tpu.memory_space<vmem>>, vector<64x1xf32>
    %412 = vector.extract_strided_slice %409 {offsets = [0, 0], sizes = [64, 1], strides = [1, 1]} : vector<64x4xf32> to vector<64x1xf32>
    %413 = vector.extract_strided_slice %409 {offsets = [0, 1], sizes = [64, 1], strides = [1, 1]} : vector<64x4xf32> to vector<64x1xf32>
    %414 = vector.extract_strided_slice %409 {offsets = [0, 2], sizes = [64, 1], strides = [1, 1]} : vector<64x4xf32> to vector<64x1xf32>
    %415 = vector.extract_strided_slice %409 {offsets = [0, 3], sizes = [64, 1], strides = [1, 1]} : vector<64x4xf32> to vector<64x1xf32>
    %416 = arith.subf %22, %410 : vector<64x1xf32>
    %cst_128 = arith.constant 0.000000e+00 : f32
    %417 = vector.broadcast %cst_128 : f32 to vector<64x1xf32>
    %418 = arith.cmpf ogt, %416, %417 : vector<64x1xf32>
    %cst_129 = arith.constant 1.000000e+00 : f32
    %cst_130 = arith.constant 0.000000e+00 : f32
    %419 = vector.broadcast %cst_129 : f32 to vector<64x1xf32>
    %420 = vector.broadcast %cst_130 : f32 to vector<64x1xf32>
    %421 = arith.select %418, %419, %420 : vector<64x1xi1>, vector<64x1xf32>
    %422 = arith.subf %410, %22 : vector<64x1xf32>
    %cst_131 = arith.constant 0.000000e+00 : f32
    %423 = vector.broadcast %cst_131 : f32 to vector<64x1xf32>
    %424 = arith.cmpf ogt, %422, %423 : vector<64x1xf32>
    %cst_132 = arith.constant 1.000000e+00 : f32
    %cst_133 = arith.constant 0.000000e+00 : f32
    %425 = vector.broadcast %cst_132 : f32 to vector<64x1xf32>
    %426 = vector.broadcast %cst_133 : f32 to vector<64x1xf32>
    %427 = arith.select %424, %425, %426 : vector<64x1xi1>, vector<64x1xf32>
    %428 = arith.divf %22, %413 : vector<64x1xf32>
    %429 = arith.subf %428, %415 : vector<64x1xf32>
    %430 = arith.mulf %429, %421 : vector<64x1xf32>
    %431 = arith.divf %22, %412 : vector<64x1xf32>
    %432 = arith.subf %431, %414 : vector<64x1xf32>
    %433 = arith.mulf %432, %427 : vector<64x1xf32>
    %434 = arith.addf %430, %433 : vector<64x1xf32>
    %cst_134 = arith.constant 1.000000e+00 : f32
    %435 = vector.broadcast %cst_134 : f32 to vector<64x1xf32>
    %436 = arith.subf %435, %421 : vector<64x1xf32>
    %437 = arith.mulf %411, %436 : vector<64x1xf32>
    %cst_135 = arith.constant 1.000000e+00 : f32
    %438 = vector.broadcast %cst_135 : f32 to vector<64x1xf32>
    %439 = arith.subf %438, %427 : vector<64x1xf32>
    %440 = arith.mulf %437, %439 : vector<64x1xf32>
    %441 = arith.addf %434, %440 : vector<64x1xf32>
    %442 = tpu.iota {dimensions = array<i32: 1>} : vector<64x128xi32>
    %c0_i32 = arith.constant 0 : i32
    %443 = vector.broadcast %c0_i32 : i32 to vector<64x128xi32>
    %444 = arith.cmpi eq, %442, %443 : vector<64x128xi32>
    %cst_136 = arith.constant 0.000000e+00 : f32
    %445 = vector.shape_cast %441 : vector<64x1xf32> to vector<64x1xf32>
    %446 = vector.broadcast %445 : vector<64x1xf32> to vector<64x128xf32>
    %447 = vector.broadcast %cst_136 : f32 to vector<64x128xf32>
    %448 = arith.select %444, %446, %447 : vector<64x128xi1>, vector<64x128xf32>
    %c1_i32 = arith.constant 1 : i32
    %449 = vector.broadcast %c1_i32 : i32 to vector<64x128xi32>
    %450 = arith.cmpi eq, %442, %449 : vector<64x128xi32>
    %cst_137 = arith.constant 0.000000e+00 : f32
    %451 = vector.shape_cast %412 : vector<64x1xf32> to vector<64x1xf32>
    %452 = vector.broadcast %451 : vector<64x1xf32> to vector<64x128xf32>
    %453 = vector.broadcast %cst_137 : f32 to vector<64x128xf32>
    %454 = arith.select %450, %452, %453 : vector<64x128xi1>, vector<64x128xf32>
    %455 = arith.addf %448, %454 : vector<64x128xf32>
    %c2_i32 = arith.constant 2 : i32
    %456 = vector.broadcast %c2_i32 : i32 to vector<64x128xi32>
    %457 = arith.cmpi eq, %442, %456 : vector<64x128xi32>
    %cst_138 = arith.constant 0.000000e+00 : f32
    %458 = vector.shape_cast %413 : vector<64x1xf32> to vector<64x1xf32>
    %459 = vector.broadcast %458 : vector<64x1xf32> to vector<64x128xf32>
    %460 = vector.broadcast %cst_138 : f32 to vector<64x128xf32>
    %461 = arith.select %457, %459, %460 : vector<64x128xi1>, vector<64x128xf32>
    %462 = arith.addf %455, %461 : vector<64x128xf32>
    %c3_i32 = arith.constant 3 : i32
    %463 = vector.broadcast %c3_i32 : i32 to vector<64x128xi32>
    %464 = arith.cmpi eq, %442, %463 : vector<64x128xi32>
    %cst_139 = arith.constant 0.000000e+00 : f32
    %465 = vector.shape_cast %414 : vector<64x1xf32> to vector<64x1xf32>
    %466 = vector.broadcast %465 : vector<64x1xf32> to vector<64x128xf32>
    %467 = vector.broadcast %cst_139 : f32 to vector<64x128xf32>
    %468 = arith.select %464, %466, %467 : vector<64x128xi1>, vector<64x128xf32>
    %469 = arith.addf %462, %468 : vector<64x128xf32>
    %c4_i32 = arith.constant 4 : i32
    %470 = vector.broadcast %c4_i32 : i32 to vector<64x128xi32>
    %471 = arith.cmpi eq, %442, %470 : vector<64x128xi32>
    %cst_140 = arith.constant 0.000000e+00 : f32
    %472 = vector.shape_cast %415 : vector<64x1xf32> to vector<64x1xf32>
    %473 = vector.broadcast %472 : vector<64x1xf32> to vector<64x128xf32>
    %474 = vector.broadcast %cst_140 : f32 to vector<64x128xf32>
    %475 = arith.select %471, %473, %474 : vector<64x128xi1>, vector<64x128xf32>
    %476 = arith.addf %469, %475 : vector<64x128xf32>
    %c0_141 = arith.constant 0 : index
    %c0_142 = arith.constant 0 : index
    %477 = vector.load %arg11[%c0_141, %c0_142] : memref<64x128xf32, #tpu.memory_space<vmem>>, vector<64x128xf32>
    tpu.vector_store %arg11[%c0_141, %c0_142], %476 {strides = array<i32>} : memref<64x128xf32, #tpu.memory_space<vmem>>, vector<64x128xf32>,
    return
  }
}

</mosaic_0001>

<bundles_post_ra>
// kernel: tpu_custom_call.1
= control target key start
LH: loop header
LB: loop body
LE: loop exit
PB: predicated region body
PF: predicated region fallthrough
CT: control target
= control target key end

     0   :  { %19 = vsyncpa [#allocation4], 0  ;;  %s5440_s0 = inlined_call_operand.vmem [shape: f32[64,3], index: 0, kind: input, shape index: {}]   ;;  %s5441_s1 = inlined_call_operand.hbm [shape: f32[2,8,32], index: 1, kind: input, shape index: {}]   ;;  %s5442_s2 = inlined_call_operand.hbm [shape: f32[2,8,32], index: 2, kind: input, shape index: {}]   ;;  %s5443_s3 = inlined_call_operand.vmem [shape: f32[1,128], index: 3, kind: input, shape index: {}]   ;;  %s5444_s4 = inlined_call_operand.vmem [shape: f32[32,128], index: 4, kind: input, shape index: {}]   ;;  %s5445_s5 = inlined_call_operand.vmem [shape: f32[1,128], index: 5, kind: input, shape index: {}]   ;;  %s5446_s6 = inlined_call_operand.vmem [shape: f32[32,128], index: 6, kind: input, shape index: {}]   ;;  %s5447_s7 = inlined_call_operand.vmem [shape: f32[32,128], index: 7, kind: input, shape index: {}]   ;;  %s5448_s8 = inlined_call_operand.vmem [shape: f32[1,128], index: 8, kind: input, shape index: {}]   ;;  %s5449_s9 = inlined_call_operand.vmem [shape: f32[32,4], index: 9, kind: input, shape index: {}]   ;;  %s5450_s10 = inlined_call_operand.vmem [shape: f32[1,4], index: 10, kind: input, shape index: {}]   ;;  %s5451_s11 = inlined_call_operand.hbm [shape: f32[64,128], index: 11, kind: output, shape index: {0}]   ;;  %s5452_s12 = inlined_call_operand.hbm [shape: f32[2,8,32], index: 12, kind: output, shape index: {1}]   ;;  %s5453_s13 = inlined_call_operand.hbm [shape: f32[2,8,32], index: 13, kind: output, shape index: {2}]  }
   0x1   :  { %20 = vsyncpa [#allocation7], 0 }
   0x2   :  { %21 = vsyncpa [#allocation5], 0 }
   0x3   :  { %22 = vsyncpa [#allocation10], 0  ;;  %s4242_s25 = smov [#allocation3]   ;;  %s4124_s29 = scalar_lea.hbm %s5441_s1, 256 }
   0x4   :  { %s30_s26 = sshll.u32 %s4242_s25, 4  ;;  %p4125_p0 = scmp.ne.s32.totalorder %s5441_s1, %s4124_s29  ;;  %s31_s26 = int_to_ptr.vmem [resolvable:$true] %s30_s26 }
   0x5   :  { %p4128_p1 = scmp.lt.u32.totalorder %s4124_s29, %s5441_s1 }
   0x7   :  { %p4130_p2 = pnand %p4128_p1, %p4125_p0 }
   0x9   :  { %4133 = shalt.err (!%p4130_p2)
}
   0xa   :  { %s4134_s17 = scalar_lea.vmem %s31_s26, 256  ;;  %p4139_p4 = scmp.lt.s32.totalorder %s31_s26, %s31_s26 }
   0xb   :  { %p4135_p3 = scmp.ne.s32.totalorder %s31_s26, %s4134_s17  ;;  %p4140_p5 = scmp.lt.s32.totalorder %s4134_s17, %s4134_s17 }
   0xd   :  { %p4141_p6 = por %p4140_p5, %p4139_p4 }
   0xf   :  { %p4142_p7 = pnand %p4141_p6, %p4135_p3 }
  0x11   :  { %4145 = shalt.err (!%p4142_p7)
}
  0x12   :  { %s4243_s18 = smov 128   ;;  %s4244_s19 = smov 8  }
  0x13   :  { %36 = dma.hbm_to_vmem [thread:$0]  %s5441_s1, 256, %s31_s26, [#allocation4], %s4243_s18, %s4243_s18, %s4244_s19  }
  0x14   :  { %s4245_s22 = smov [#allocation6]   ;;  %s4146_s27 = scalar_lea.hbm %s5442_s2, 256 }
  0x15   :  { %s42_s23 = sshll.u32 %s4245_s22, 4  ;;  %p4147_p8 = scmp.ne.s32.totalorder %s5442_s2, %s4146_s27  ;;  %s43_s23 = int_to_ptr.vmem [resolvable:$true] %s42_s23 }
  0x16   :  { %p4150_p9 = scmp.lt.u32.totalorder %s4146_s27, %s5442_s2 }
  0x18   :  { %p4152_p10 = pnand %p4150_p9, %p4147_p8 }
  0x1a   :  { %4155 = shalt.err (!%p4152_p10)
}
  0x1b   :  { %s4156_s15 = scalar_lea.vmem %s43_s23, 256  ;;  %p4161_p12 = scmp.lt.s32.totalorder %s43_s23, %s43_s23 }
  0x1c   :  { %p4157_p11 = scmp.ne.s32.totalorder %s43_s23, %s4156_s15  ;;  %p4162_p13 = scmp.lt.s32.totalorder %s4156_s15, %s4156_s15 }
  0x1e   :  { %p4163_p0 = por %p4162_p13, %p4161_p12 }
  0x20   :  { %p4164_p1 = pnand %p4163_p0, %p4157_p11 }
  0x22   :  { %4167 = shalt.err (!%p4164_p1)
}
  0x23   :  { %48 = dma.hbm_to_vmem [thread:$0]  %s5442_s2, 256, %s43_s23, [#allocation7], %s4243_s18, %s4243_s18, %s4244_s19  }
  0x24   :  { %4234 = dma.done.wait [#allocation4], 256  }
  0x25   :  { %4235 = vsyncadd [#allocation4], 4294967040 }
  0x26   :  { %4236 = dma.done.wait [#allocation7], 256  }
  0x27   :  { %4237 = vsyncadd [#allocation7], 4294967040  ;;  %v71_v0 = vlaneseq  ;;  %v4246_v1 = vmov 0.0|0.0   ;;  %vm4247_vm0 = vmmov 0   ;;  %v4248_v3 = vmov 0.0   ;;  %v77_v7 = vld [vmem:[%s5444_s4] sm:$0xff] }
  0x28   :  { %3778 = vmatprep.subr.bf16.mxu1 %v4246_v1  ;;  %3790 = vmatprep.subr.bf16.mxu0 %v4246_v1  ;;  %v4249_v4 = vmov 0   ;;  %v4250_v5 = vmov 1.0   ;;  %v78_v8 = vld [vmem:[%s5444_s4 + $0x8] sm:$0xff]  ;;  %v79_v9 = vld [vmem:[%s5444_s4 + $0x10] sm:$0xff]  ;;  %v80_v12 = vld [vmem:[%s5444_s4 + $0x18] sm:$0xff]  ;;  %s4251_s28 = smov 32  }
  0x29   :  { %v4367_v2 = vand.u32 127, %v71_v0  ;;  %3502 = vmatprep.mubr.msk.f32.mxu1 %vm4247_vm0, %v4248_v3  ;;  %3953 = vset.pattern.permute.xlu0 %v4249_v4  ;;  %v109_v14 = vld [vmem:[%s5440_s0] sm:$0xff]  ;;  %v190_v16 = vld [vmem:[#allocation6] sm:$0xff]  ;;  %vm195_vm4 = vcmask 261120   ;;  %v105_v20 = vshrl.u32 %v71_v0, 7  ;;  %v110_v47 = vld [vmem:[%s5440_s0 + $0x8] sm:$0xff] }
  0x2a   :  { %3524 = vmatprep.mubr.msk.f32.mxu0 %vm4247_vm0, %v4248_v3  ;;  %3954 = vset.pattern.permute.xlu1 %v4249_v4  ;;  %v189_v19 = vld [vmem:[#allocation3] sm:$0xff]  ;;  %v94_v49 = vld [vmem:[%s5447_s7 + $0x8] sm:$0xff]  ;;  %v95_v50 = vld [vmem:[%s5447_s7 + $0x10] sm:$0xff]  ;;  %s4255_s2 = smov 1   ;;  %s4257_s20 = smov 126  }
  0x2b   :  { %vm73_vm1 = vcmp.ge.s32.totalorder %v4367_v2, 64  ;;  %vm74_vm2 = vcmp.lt.s32.totalorder %v4367_v2, 96  ;;  %121 = vperm.xlu0 %3953, %v109_v14   ;;  %279 = vrot.lane.b32.xlu1 %v190_v16, %s4251_s28  ;;  %v117_v21 = vld [vmem:[%s5443_s3] sm:$0x1]  ;;  %v4413_v22 = vsub.s32 0, %v105_v20  ;;  %s4252_s3 = smov 64  }
  0x2c   :  { %vm75_vm3 = vmand %vm73_vm1, %vm74_vm2  ;;  %v173_v24 = vld [vmem:[%s5445_s5] sm:$0x1]  ;;  %v96_v53 = vld [vmem:[%s5447_s7 + $0x18] sm:$0xff]  ;;  %s4254_s5 = smov 127   ;;  %s4258_s27 = smov 2  }
  0x2d   :  { %v4377_v6 = vsel %vm75_vm3, 2.0, %v4250_v5  ;;  %v93_v48 = vld [vmem:[%s5447_s7] sm:$0xff]  ;;  %v86_v57 = vld [vmem:[%s5446_s6 + $0x8] sm:$0xff]  ;;  %v87_v59 = vld [vmem:[%s5446_s6 + $0x10] sm:$0xff] }
  0x2e   :  { %v81_v10 = vmul.f32 %v77_v7, %v4377_v6  ;;  %v82_v11 = vmul.f32 %v78_v8, %v4377_v6  ;;  %v83_v13 = vmul.f32 %v79_v9, %v4377_v6  ;;  %v84_v15 = vmul.f32 %v80_v12, %v4377_v6  ;;  %v85_v55 = vld [vmem:[%s5446_s6] sm:$0xff]  ;;  %v88_v60 = vld [vmem:[%s5446_s6 + $0x18] sm:$0xff]  ;;  %v192_v9 = vld [vmem:[#allocation3 + $0x8] sm:$0xff] }
  0x2f   :  { %v118_v23 = vmul.f32 %v117_v21, %v4377_v6  ;;  %v174_v26 = vmul.f32 %v173_v24, %v4377_v6  ;;  %v97_v51 = vmul.f32 %v93_v48, %v4377_v6  ;;  %v98_v52 = vmul.f32 %v94_v49, %v4377_v6  ;;  %v101_v16 = vld [vmem:[%s5448_s8] sm:$0x1] }
  0x30   :  { %v4398_v17 = vpack.c.bf16 %v82_v11, %v81_v10  ;;  %v4402_v18 = vpack.c.bf16 %v84_v15, %v83_v13  ;;  %v99_v54 = vmul.f32 %v95_v50, %v4377_v6  ;;  %v100_v56 = vmul.f32 %v96_v53, %v4377_v6 }
  0x31   :  { %v4420_v25 = vrot.slane %v118_v23, %v4413_v22  ;;  %v4425_v29 = vrot.slane %v174_v26, %v4413_v22  ;;  %v89_v58 = vmul.f32 %v85_v55, %v4377_v6  ;;  %v4466_v61 = vpack.c.bf16 %v98_v52, %v97_v51 }
  0x32   :  { %3780 = vmatpush3.bf16.msra.mxu1 %v4398_v17  ;;  %v90_v62 = vmul.f32 %v86_v57, %v4377_v6  ;;  %v91_v63 = vmul.f32 %v87_v59, %v4377_v6  ;;  %v92_v0 = vmul.f32 %v88_v60, %v4377_v6  ;;  %v4472_v5 = vpack.c.bf16 %v100_v56, %v99_v54 }
  0x33   :  { %3781 = vmatprep.subr.bf16.mxu1 %v4246_v1  ;;  %v102_v20 = vmul.f32 %v101_v16, %v4377_v6 }
  0x34   :  { %v4474_v7 = vpack.c.bf16 %v90_v62, %v89_v58  ;;  %v4478_v8 = vpack.c.bf16 %v92_v0, %v91_v63  ;;  %v111_v62 = vld [vmem:[%s5440_s0 + $0x10] sm:$0xff] }
  0x35   :  { %v4513_v21 = vrot.slane %v102_v20, %v4413_v22 }
  0x36   :  { %3783 = vmatpush3.bf16.msra.mxu1 %v4402_v18  ;;  %3792 = vmatpush3.bf16.msra.mxu0 %v4474_v7 }
  0x37   :  { %3784 = vmatprep.subr.bf16.mxu1 %v4246_v1  ;;  %3793 = vmatprep.subr.bf16.mxu0 %v4246_v1 }
  0x39   :  { %3503 = vmatmul.mubr.msk.f32.vlgmr.msra.gmra.mrb[0].mxu1 %vm195_vm4, %v189_v19 }
  0x3a   :  { %3513 = vmatprep.mubr.msk.f32.mxu1 %vm4247_vm0, %v4248_v3  ;;  %3786 = vmatpush3.bf16.msra.mxu1 %v4466_v61 }
  0x3b   :  { %3787 = vmatprep.subr.bf16.mxu1 %v4246_v1  ;;  %3795 = vmatpush3.bf16.msra.mxu0 %v4478_v8 }
  0x3c   :  { %3802 = vmatprep.subr.bf16.mxu0 %v4246_v1 }
  0x3e   :  { %3789 = vmatpush3.bf16.msra.mxu1 %v4472_v5 }
  0x3f   :  { %3796 = vmatprep.subr.bf16.mxu1 %v4246_v1 }
  0x41   :  { %3514 = vmatmul.mubr.msk.f32.vlgmr.msra.gmra.mrb[2].mxu1 %vm195_vm4, %v192_v9 }
  0x42   :  { %3798 = vmatpush3.bf16.msra.mxu1 %v4398_v17  ;;  %3535 = vmatprep.mubr.msk.f32.mxu1 %vm4247_vm0, %v4248_v3 }
  0x43   :  { %3799 = vmatprep.subr.bf16.mxu1 %v4246_v1 }
  0x46   :  { %3801 = vmatpush3.bf16.msra.mxu1 %v4402_v18 }
  0x47   :  { %3808 = vmatprep.subr.bf16.mxu1 %v4246_v1 }
  0x9d   :  { %v280_v42 = vpop.permute.xlu1 %279 }
  0xaa   :  { %v122_v27 = vpop.permute.xlu0 %121 }
  0xab   :  { %v165_v28 = vmul.f32 %v4420_v25, %v122_v27 }
  0xad   :  { %v181_v30 = vadd.f32 %v4425_v29, %v165_v28 }
 0x10c   :  { %v265_v31 = vpop.f32.mrb[0].mxu1 }
 0x10d   :  { %v269_v32 = vadd.f32 %v265_v31, %v181_v30  ;;  %v3504_v33 = vpop.f32.mrb[1].mxu1 }
 0x10f   :  { %v3298_v34 = vmul.f32 -1.442695, %v269_v32 }
 0x111   :  { %3988 = vpow2.f32 %v3298_v34 }
 0x114   :  { %v368_v12 = vpop.f32.mrb[2].mxu1 }
 0x115   :  { %v3515_v13 = vpop.f32.mrb[3].mxu1 }
 0x11b   :  { %v3989_v35 = vpop.eup %3988 }
 0x11c   :  { %v273_v36 = vadd.f32 1.0, %v3989_v35 }
 0x11e   :  { %3990 = vrcp.f32 %v273_v36 }
 0x128   :  { %v3991_v37 = vpop.eup %3990 }
 0x129   :  { %v276_v38 = vmul.f32 2.0, %v3991_v37  ;;  %v282_v43 = vmul.f32 %v3991_v37, %v280_v42 }
 0x12b   :  { %v3299_v39 = vadd.f32 -1.0, %v276_v38 }
 0x12d   :  { %284 = vrot.lane.b32.xlu0 %v3299_v39, %s4252_s3 }
 0x19f   :  { %v285_v40 = vpop.permute.xlu0 %284 }
 0x1a0   :  { %v287_v41 = vmul.f32 %v3991_v37, %v285_v40 }
 0x1a2   :  { %289 = vrot.lane.b32.xlu1 %v287_v41, %s4251_s28 }
 0x214   :  { %v290_v44 = vpop.permute.xlu1 %289 }
 0x215   :  { %v4430_v45 = vadd.f32 %v290_v44, %v282_v43  ;;  %v194_v43 = vld [vmem:[#allocation6 + $0x8] sm:$0xff] }
 0x217   :  { %3992 = vtanh.f32 %v4430_v45 }
 0x221   :  { %v3993_v46 = vpop.eup %3992 }
 0x222   :  { %295 = vrot.lane.b32.xlu0 %v3993_v46, %s4252_s3 }
 0x226   :  { %126 = vperm.xlu0 %3953, %v110_v47  }
 0x294   :  { %v296_v10 = vpop.permute.xlu0 %295 }
 0x295   :  { %v298_v11 = vmul.f32 %v3991_v37, %v296_v10 }
 0x297   :  { %373 = vrot.lane.b32.xlu1 %v298_v11, %s4251_s28 }
 0x2a5   :  { %v127_v15 = vpop.permute.xlu0 %126 }
 0x2a6   :  { %v166_v19 = vmul.f32 %v4420_v25, %v127_v15 }
 0x2a8   :  { %v182_v23 = vadd.f32 %v4425_v29, %v166_v19 }
 0x309   :  { %v374_v14 = vpop.permute.xlu1 %373 }
 0x30a   :  { %3525 = vmatmul.mubr.msk.f32.vlgmr.msra.gmra.mrb[0].mxu0 %vm195_vm4, %v374_v14  ;;  %3536 = vmatmul.mubr.msk.f32.vlgmr.msra.gmra.mrb[4].mxu1 %vm195_vm4, %v374_v14 }
 0x30b   :  { %3810 = vmatpush3.bf16.msra.mxu1 %v4474_v7  ;;  %3804 = vmatpush3.bf16.msra.mxu0 %v4466_v61 }
 0x30c   :  { %3811 = vmatprep.subr.bf16.mxu1 %v4246_v1  ;;  %3805 = vmatprep.subr.bf16.mxu0 %v4246_v1 }
 0x30d   :  { %3557 = vmatprep.mubr.msk.f32.mxu1 %vm4247_vm0, %v4248_v3  ;;  %3546 = vmatprep.mubr.msk.f32.mxu0 %vm4247_vm0, %v4248_v3 }
 0x30f   :  { %3813 = vmatpush3.bf16.msra.mxu1 %v4478_v8  ;;  %3807 = vmatpush3.bf16.msra.mxu0 %v4472_v5 }
 0x310   :  { %3814 = vmatprep.subr.bf16.mxu0 %v4246_v1  ;;  %3820 = vmatprep.subr.bf16.mxu1 %v4246_v1 }
 0x3dd   :  { %v443_v24 = vpop.f32.mrb[0].mxu0  ;;  %v548_v26 = vpop.f32.mrb[4].mxu1 }
 0x3de   :  { %v444_v27 = vadd.f32 %v443_v24, %v368_v12  ;;  %v552_v28 = vadd.f32 %v548_v26, %v182_v23  ;;  %v3526_v30 = vpop.f32.mrb[1].mxu0  ;;  %v3537_v31 = vpop.f32.mrb[5].mxu1 }
 0x3e0   :  { %v447_v32 = vadd.f32 %v444_v27, %v4513_v21  ;;  %v3305_v33 = vmul.f32 -1.442695, %v552_v28 }
 0x3e2   :  { %v3302_v34 = vmul.f32 -1.442695, %v447_v32  ;;  %3994 = vpow2.f32 %v3305_v33 }
 0x3e4   :  { %3996 = vpow2.f32 %v3302_v34 }
 0x3ec   :  { %v3995_v35 = vpop.eup %3994 }
 0x3ed   :  { %v556_v36 = vadd.f32 1.0, %v3995_v35 }
 0x3ee   :  { %v3997_v6 = vpop.eup %3996 }
 0x3ef   :  { %v451_v37 = vadd.f32 1.0, %v3997_v6  ;;  %3998 = vrcp.f32 %v556_v36 }
 0x3f1   :  { %4000 = vrcp.f32 %v451_v37 }
 0x3f9   :  { %v3999_v22 = vpop.eup %3998 }
 0x3fa   :  { %v559_v38 = vmul.f32 2.0, %v3999_v22  ;;  %v561_v50 = vmul.f32 %v3999_v22, %v4430_v45 }
 0x3fb   :  { %v4001_v39 = vpop.eup %4000 }
 0x3fc   :  { %v3306_v40 = vadd.f32 -1.0, %v559_v38  ;;  %v454_v41 = vmul.f32 2.0, %v4001_v39 }
 0x3fe   :  { %563 = vrot.lane.b32.xlu0 %v3306_v40, %s4252_s3  ;;  %v3303_v42 = vadd.f32 -1.0, %v454_v41 }
 0x400   :  { %462 = vrot.lane.b32.xlu1 %v3303_v42, %s4252_s3 }
 0x404   :  { %457 = vrot.lane.b32.xlu1 %v194_v43, %s4251_s28 }
 0x470   :  { %v564_v44 = vpop.permute.xlu0 %563 }
 0x471   :  { %v566_v46 = vmul.f32 %v3999_v22, %v564_v44 }
 0x472   :  { %v463_v47 = vpop.permute.xlu1 %462 }
 0x473   :  { %v465_v48 = vmul.f32 %v4001_v39, %v463_v47  ;;  %568 = vrot.lane.b32.xlu1 %v566_v46, %s4251_s28 }
 0x475   :  { %467 = vrot.lane.b32.xlu0 %v465_v48, %s4251_s28 }
 0x476   :  { %v458_v49 = vpop.permute.xlu1 %457 }
 0x477   :  { %v460_v52 = vmul.f32 %v4001_v39, %v458_v49 }
 0x4e5   :  { %v569_v51 = vpop.permute.xlu1 %568 }
 0x4e6   :  { %v4523_v53 = vadd.f32 %v569_v51, %v561_v50 }
 0x4e7   :  { %v468_v54 = vpop.permute.xlu0 %467 }
 0x4e8   :  { %4002 = vtanh.f32 %v4523_v53  ;;  %v4526_v55 = vadd.f32 %v468_v54, %v460_v52  ;;  %v4579_v52 = vld [vmem:[%s5440_s0 + $0x18] sm:$0xff] }
 0x4ea   :  { %4004 = vtanh.f32 %v4526_v55 }
 0x4f2   :  { %v4003_v56 = vpop.eup %4002 }
 0x4f3   :  { %574 = vrot.lane.b32.xlu1 %v4003_v56, %s4252_s3 }
 0x4f4   :  { %v4005_v57 = vpop.eup %4004 }
 0x4f5   :  { %473 = vrot.lane.b32.xlu0 %v4005_v57, %s4252_s3 }
 0x565   :  { %v575_v58 = vpop.permute.xlu1 %574 }
 0x566   :  { %v577_v59 = vmul.f32 %v3999_v22, %v575_v58 }
 0x567   :  { %v474_v45 = vpop.permute.xlu0 %473 }
 0x568   :  { %v476_v60 = vmul.f32 %v4001_v39, %v474_v45  ;;  %651 = vrot.lane.b32.xlu1 %v577_v59, %s4251_s28 }
 0x56a   :  { %478 = vrot.lane.b32.xlu0 %v476_v60, %s4251_s28 }
 0x56e   :  { %131 = vperm.xlu0 %3953, %v111_v62  }
 0x5da   :  { %v652_v63 = vpop.permute.xlu1 %651 }
 0x5db   :  { %3558 = vmatmul.mubr.msk.f32.vlgmr.msra.gmra.mrb[6].mxu1 %vm195_vm4, %v652_v63 }
 0x5dc   :  { %v479_v0 = vpop.permute.xlu0 %478  ;;  %3822 = vmatpush3.bf16.msra.mxu1 %v4466_v61  ;;  %3579 = vmatprep.mubr.msk.f32.mxu1 %vm4247_vm0, %v4248_v3 }
 0x5dd   :  { %481 = vst.msk [vmem:[#allocation2] sm:$0xff] %vm195_vm4, %v479_v0  ;;  %3547 = vmatmul.mubr.msk.f32.vlgmr.msra.gmra.mrb[2].mxu0 %vm195_vm4, %v479_v0  ;;  %3823 = vmatprep.subr.bf16.mxu1 %v4246_v1 }
 0x5de   :  { %3816 = vmatpush3.bf16.msra.mxu0 %v4398_v17  ;;  %3568 = vmatprep.mubr.msk.f32.mxu0 %vm4247_vm0, %v4248_v3 }
 0x5df   :  { %3817 = vmatprep.subr.bf16.mxu0 %v4246_v1 }
 0x5e0   :  { %3825 = vmatpush3.bf16.msra.mxu1 %v4472_v5 }
 0x5e1   :  { %3832 = vmatprep.subr.bf16.mxu1 %v4246_v1 }
 0x5e2   :  { %3819 = vmatpush3.bf16.msra.mxu0 %v4402_v18 }
 0x5e3   :  { %3826 = vmatprep.subr.bf16.mxu0 %v4246_v1 }
 0x5e5   :  { %3569 = vmatmul.mubr.msk.f32.vlgmr.msra.gmra.mrb[4].mxu0 %vm195_vm4, %v652_v63 }
 0x5e6   :  { %3828 = vmatpush3.bf16.msra.mxu0 %v4474_v7  ;;  %3590 = vmatprep.mubr.msk.f32.mxu0 %vm4247_vm0, %v4248_v3 }
 0x5e7   :  { %3829 = vmatprep.subr.bf16.mxu0 %v4246_v1 }
 0x5ea   :  { %3831 = vmatpush3.bf16.msra.mxu0 %v4478_v8 }
 0x5eb   :  { %3838 = vmatprep.subr.bf16.mxu0 %v4246_v1 }
 0x5ed   :  { %v132_v11 = vpop.permute.xlu0 %131 }
 0x5ee   :  { %v167_v15 = vmul.f32 %v4420_v25, %v132_v11 }
 0x5f0   :  { %v183_v20 = vadd.f32 %v4425_v29, %v167_v15 }
 0x6ae   :  { %v721_v9 = vpop.f32.mrb[6].mxu1 }
 0x6af   :  { %v3559_v10 = vpop.f32.mrb[7].mxu1 }
 0x6b0   :  { %v646_v12 = vpop.f32.mrb[2].mxu0 }
 0x6b1   :  { %v722_v13 = vadd.f32 %v721_v9, %v646_v12  ;;  %v3548_v14 = vpop.f32.mrb[3].mxu0 }
 0x6b3   :  { %v725_v16 = vadd.f32 %v722_v13, %v4513_v21 }
 0x6b5   :  { %v3309_v19 = vmul.f32 -1.442695, %v725_v16 }
 0x6b7   :  { %4006 = vpow2.f32 %v3309_v19 }
 0x6b8   :  { %v822_v23 = vpop.f32.mrb[4].mxu0 }
 0x6b9   :  { %v826_v24 = vadd.f32 %v822_v23, %v183_v20  ;;  %v3570_v26 = vpop.f32.mrb[5].mxu0 }
 0x6bb   :  { %v3312_v27 = vmul.f32 -1.442695, %v826_v24 }
 0x6bd   :  { %4008 = vpow2.f32 %v3312_v27 }
 0x6c1   :  { %v4007_v28 = vpop.eup %4006 }
 0x6c2   :  { %v729_v30 = vadd.f32 1.0, %v4007_v28 }
 0x6c4   :  { %4010 = vrcp.f32 %v729_v30 }
 0x6c7   :  { %v4009_v31 = vpop.eup %4008 }
 0x6c8   :  { %v830_v32 = vadd.f32 1.0, %v4009_v31 }
 0x6ca   :  { %4012 = vrcp.f32 %v830_v32 }
 0x6ce   :  { %v4011_v33 = vpop.eup %4010 }
 0x6cf   :  { %v732_v34 = vmul.f32 2.0, %v4011_v33  ;;  %v734_v41 = vmul.f32 %v4011_v33, %v4526_v55 }
 0x6d1   :  { %v3310_v35 = vadd.f32 -1.0, %v732_v34 }
 0x6d3   :  { %736 = vrot.lane.b32.xlu1 %v3310_v35, %s4252_s3 }
 0x6d4   :  { %v4013_v36 = vpop.eup %4012 }
 0x6d5   :  { %v833_v6 = vmul.f32 2.0, %v4013_v36  ;;  %v835_v44 = vmul.f32 %v4013_v36, %v4523_v53 }
 0x6d7   :  { %v3313_v37 = vadd.f32 -1.0, %v833_v6 }
 0x6d9   :  { %837 = vrot.lane.b32.xlu0 %v3313_v37, %s4252_s3 }
 0x745   :  { %v737_v22 = vpop.permute.xlu1 %736 }
 0x746   :  { %v739_v38 = vmul.f32 %v4011_v33, %v737_v22 }
 0x748   :  { %741 = vrot.lane.b32.xlu1 %v739_v38, %s4251_s28 }
 0x74b   :  { %v838_v39 = vpop.permute.xlu0 %837 }
 0x74c   :  { %v840_v40 = vmul.f32 %v4013_v36, %v838_v39 }
 0x74e   :  { %842 = vrot.lane.b32.xlu0 %v840_v40, %s4251_s28 }
 0x7ba   :  { %v742_v42 = vpop.permute.xlu1 %741 }
 0x7bb   :  { %v4566_v43 = vadd.f32 %v742_v42, %v734_v41 }
 0x7bd   :  { %4014 = vtanh.f32 %v4566_v43 }
 0x7c0   :  { %v843_v46 = vpop.permute.xlu0 %842 }
 0x7c1   :  { %v4570_v47 = vadd.f32 %v843_v46, %v835_v44  ;;  %v4627_v46 = vld [vmem:[%s5440_s0 + $0x20] sm:$0xff] }
 0x7c3   :  { %4016 = vtanh.f32 %v4570_v47 }
 0x7c7   :  { %v4015_v48 = vpop.eup %4014 }
 0x7c8   :  { %747 = vrot.lane.b32.xlu1 %v4015_v48, %s4252_s3 }
 0x7cd   :  { %v4017_v49 = vpop.eup %4016 }
 0x7ce   :  { %848 = vrot.lane.b32.xlu0 %v4017_v49, %s4252_s3 }
 0x83a   :  { %v748_v50 = vpop.permute.xlu1 %747 }
 0x83b   :  { %v750_v51 = vmul.f32 %v4011_v33, %v748_v50 }
 0x83d   :  { %752 = vrot.lane.b32.xlu1 %v750_v51, %s4251_s28 }
 0x840   :  { %v849_v53 = vpop.permute.xlu0 %848 }
 0x841   :  { %v851_v54 = vmul.f32 %v4013_v36, %v849_v53  ;;  %136 = vperm.xlu1 %3954, %v4579_v52  }
 0x843   :  { %925 = vrot.lane.b32.xlu0 %v851_v54, %s4251_s28 }
 0x8af   :  { %v753_v55 = vpop.permute.xlu1 %752 }
 0x8b0   :  { %755 = vst.msk [vmem:[#allocation2 + $0x8] sm:$0xff] %vm195_vm4, %v753_v55  ;;  %3580 = vmatmul.mubr.msk.f32.vlgmr.msra.gmra.mrb[8].mxu1 %vm195_vm4, %v753_v55 }
 0x8b1   :  { %3834 = vmatpush3.bf16.msra.mxu1 %v4398_v17  ;;  %3601 = vmatprep.mubr.msk.f32.mxu1 %vm4247_vm0, %v4248_v3 }
 0x8b2   :  { %3835 = vmatprep.subr.bf16.mxu1 %v4246_v1 }
 0x8b5   :  { %v926_v56 = vpop.permute.xlu0 %925  ;;  %3837 = vmatpush3.bf16.msra.mxu1 %v4402_v18 }
 0x8b6   :  { %3591 = vmatmul.mubr.msk.f32.vlgmr.msra.gmra.mrb[6].mxu0 %vm195_vm4, %v926_v56  ;;  %3844 = vmatprep.subr.bf16.mxu1 %v4246_v1 }
 0x8b7   :  { %3840 = vmatpush3.bf16.msra.mxu0 %v4466_v61  ;;  %3612 = vmatprep.mubr.msk.f32.mxu0 %vm4247_vm0, %v4248_v3 }
 0x8b8   :  { %3602 = vmatmul.mubr.msk.f32.vlgmr.msra.gmra.mrb[10].mxu1 %vm195_vm4, %v926_v56  ;;  %3841 = vmatprep.subr.bf16.mxu0 %v4246_v1 }
 0x8b9   :  { %3846 = vmatpush3.bf16.msra.mxu1 %v4474_v7  ;;  %3623 = vmatprep.mubr.msk.f32.mxu1 %vm4247_vm0, %v4248_v3 }
 0x8ba   :  { %3847 = vmatprep.subr.bf16.mxu1 %v4246_v1 }
 0x8bb   :  { %3843 = vmatpush3.bf16.msra.mxu0 %v4472_v5 }
 0x8bc   :  { %3850 = vmatprep.subr.bf16.mxu0 %v4246_v1 }
 0x8bd   :  { %3849 = vmatpush3.bf16.msra.mxu1 %v4478_v8 }
 0x8be   :  { %3856 = vmatprep.subr.bf16.mxu1 %v4246_v1 }
 0x8c0   :  { %v137_v57 = vpop.permute.xlu1 %136 }
 0x8c1   :  { %v168_v45 = vmul.f32 %v4420_v25, %v137_v57 }
 0x8c3   :  { %v184_v60 = vadd.f32 %v4425_v29, %v168_v45 }
 0x983   :  { %v920_v58 = vpop.f32.mrb[8].mxu1 }
 0x984   :  { %v3581_v59 = vpop.f32.mrb[9].mxu1 }
 0x989   :  { %v995_v62 = vpop.f32.mrb[6].mxu0 }
 0x98a   :  { %v996_v63 = vadd.f32 %v995_v62, %v920_v58  ;;  %v3592_v0 = vpop.f32.mrb[7].mxu0 }
 0x98b   :  { %v1096_v9 = vpop.f32.mrb[10].mxu1 }
 0x98c   :  { %v999_v10 = vadd.f32 %v996_v63, %v4513_v21  ;;  %v1100_v11 = vadd.f32 %v1096_v9, %v184_v60  ;;  %v3603_v12 = vpop.f32.mrb[11].mxu1 }
 0x98e   :  { %v3316_v13 = vmul.f32 -1.442695, %v999_v10  ;;  %v3319_v14 = vmul.f32 -1.442695, %v1100_v11 }
 0x990   :  { %4018 = vpow2.f32 %v3316_v13 }
 0x991   :  { %4020 = vpow2.f32 %v3319_v14 }
 0x99a   :  { %v4019_v15 = vpop.eup %4018 }
 0x99b   :  { %v4021_v16 = vpop.eup %4020  ;;  %v1003_v19 = vadd.f32 1.0, %v4019_v15 }
 0x99c   :  { %v1104_v20 = vadd.f32 1.0, %v4021_v16 }
 0x99d   :  { %4022 = vrcp.f32 %v1003_v19 }
 0x99e   :  { %4024 = vrcp.f32 %v1104_v20 }
 0x9a7   :  { %v4023_v23 = vpop.eup %4022 }
 0x9a8   :  { %v4025_v24 = vpop.eup %4024  ;;  %v1006_v26 = vmul.f32 2.0, %v4023_v23  ;;  %v1008_v35 = vmul.f32 %v4023_v23, %v4566_v43 }
 0x9a9   :  { %v1107_v27 = vmul.f32 2.0, %v4025_v24  ;;  %v1109_v6 = vmul.f32 %v4025_v24, %v4570_v47 }
 0x9aa   :  { %v3317_v28 = vadd.f32 -1.0, %v1006_v26 }
 0x9ab   :  { %v3320_v30 = vadd.f32 -1.0, %v1107_v27 }
 0x9ac   :  { %1010 = vrot.lane.b32.xlu0 %v3317_v28, %s4252_s3 }
 0x9ad   :  { %1111 = vrot.lane.b32.xlu1 %v3320_v30, %s4252_s3 }
 0xa1e   :  { %v1011_v31 = vpop.permute.xlu0 %1010 }
 0xa1f   :  { %v1013_v32 = vmul.f32 %v4023_v23, %v1011_v31  ;;  %v1112_v33 = vpop.permute.xlu1 %1111 }
 0xa20   :  { %v1114_v34 = vmul.f32 %v4025_v24, %v1112_v33 }
 0xa21   :  { %1015 = vrot.lane.b32.xlu0 %v1013_v32, %s4251_s28 }
 0xa22   :  { %1116 = vrot.lane.b32.xlu1 %v1114_v34, %s4251_s28 }
 0xa93   :  { %v1016_v36 = vpop.permute.xlu0 %1015 }
 0xa94   :  { %v4614_v37 = vadd.f32 %v1016_v36, %v1008_v35  ;;  %v1117_v22 = vpop.permute.xlu1 %1116 }
 0xa95   :  { %v4616_v38 = vadd.f32 %v1117_v22, %v1109_v6 }
 0xa96   :  { %4026 = vtanh.f32 %v4614_v37 }
 0xa97   :  { %4028 = vtanh.f32 %v4616_v38 }
 0xaa0   :  { %v4027_v39 = vpop.eup %4026 }
 0xaa1   :  { %v4029_v40 = vpop.eup %4028  ;;  %1021 = vrot.lane.b32.xlu0 %v4027_v39, %s4252_s3 }
 0xaa2   :  { %1122 = vrot.lane.b32.xlu1 %v4029_v40, %s4252_s3 }
 0xb13   :  { %v1022_v41 = vpop.permute.xlu0 %1021 }
 0xb14   :  { %v1024_v42 = vmul.f32 %v4023_v23, %v1022_v41  ;;  %v1123_v43 = vpop.permute.xlu1 %1122 }
 0xb15   :  { %v1125_v44 = vmul.f32 %v4025_v24, %v1123_v43 }
 0xb16   :  { %1026 = vrot.lane.b32.xlu0 %v1024_v42, %s4251_s28 }
 0xb17   :  { %1199 = vrot.lane.b32.xlu1 %v1125_v44, %s4251_s28 }
 0xb1a   :  { %141 = vperm.xlu0 %3953, %v4627_v46  }
 0xb88   :  { %v1027_v47 = vpop.permute.xlu0 %1026 }
 0xb89   :  { %1029 = vst.msk [vmem:[#allocation2 + $0x10] sm:$0xff] %vm195_vm4, %v1027_v47  ;;  %v1200_v48 = vpop.permute.xlu1 %1199  ;;  %3613 = vmatmul.mubr.msk.f32.vlgmr.msra.gmra.mrb[8].mxu0 %vm195_vm4, %v1027_v47 }
 0xb8a   :  { %3624 = vmatmul.mubr.msk.f32.vlgmr.msra.gmra.mrb[12].mxu1 %vm195_vm4, %v1200_v48  ;;  %3852 = vmatpush3.bf16.msra.mxu0 %v4398_v17 }
 0xb8b   :  { %3853 = vmatprep.subr.bf16.mxu0 %v4246_v1  ;;  %3634 = vmatprep.mubr.msk.f32.mxu0 %vm4247_vm0, %v4248_v3 }
 0xb8c   :  { %3858 = vmatpush3.bf16.msra.mxu1 %v4466_v61  ;;  %3645 = vmatprep.mubr.msk.f32.mxu1 %vm4247_vm0, %v4248_v3 }
 0xb8d   :  { %3859 = vmatprep.subr.bf16.mxu1 %v4246_v1 }
 0xb8e   :  { %3855 = vmatpush3.bf16.msra.mxu0 %v4402_v18 }
 0xb8f   :  { %3862 = vmatprep.subr.bf16.mxu0 %v4246_v1 }
 0xb90   :  { %3861 = vmatpush3.bf16.msra.mxu1 %v4472_v5 }
 0xb91   :  { %3635 = vmatmul.mubr.msk.f32.vlgmr.msra.gmra.mrb[10].mxu0 %vm195_vm4, %v1200_v48  ;;  %3868 = vmatprep.subr.bf16.mxu1 %v4246_v1 }
 0xb92   :  { %3864 = vmatpush3.bf16.msra.mxu0 %v4474_v7  ;;  %3656 = vmatprep.mubr.msk.f32.mxu0 %vm4247_vm0, %v4248_v3 }
 0xb93   :  { %3865 = vmatprep.subr.bf16.mxu0 %v4246_v1 }
 0xb96   :  { %3867 = vmatpush3.bf16.msra.mxu0 %v4478_v8 }
 0xb97   :  { %3874 = vmatprep.subr.bf16.mxu0 %v4246_v1 }
 0xb99   :  { %v142_v49 = vpop.permute.xlu0 %141 }
 0xb9a   :  { %v169_v56 = vmul.f32 %v4420_v25, %v142_v49 }
 0xb9c   :  { %v185_v59 = vadd.f32 %v4425_v29, %v169_v56 }
 0xc5c   :  { %v1194_v50 = vpop.f32.mrb[8].mxu0 }
 0xc5d   :  { %v1269_v51 = vpop.f32.mrb[12].mxu1  ;;  %v3614_v53 = vpop.f32.mrb[9].mxu0 }
 0xc5e   :  { %v1270_v54 = vadd.f32 %v1269_v51, %v1194_v50  ;;  %v3625_v55 = vpop.f32.mrb[13].mxu1 }
 0xc60   :  { %v1273_v57 = vadd.f32 %v1270_v54, %v4513_v21 }
 0xc62   :  { %v3323_v58 = vmul.f32 -1.442695, %v1273_v57 }
 0xc64   :  { %4030 = vpow2.f32 %v3323_v58  ;;  %v1370_v45 = vpop.f32.mrb[10].mxu0 }
 0xc65   :  { %v1374_v60 = vadd.f32 %v1370_v45, %v185_v59  ;;  %v3636_v62 = vpop.f32.mrb[11].mxu0 }
 0xc67   :  { %v3326_v63 = vmul.f32 -1.442695, %v1374_v60 }
 0xc69   :  { %4032 = vpow2.f32 %v3326_v63 }
 0xc6e   :  { %v4031_v0 = vpop.eup %4030 }
 0xc6f   :  { %v1277_v9 = vadd.f32 1.0, %v4031_v0 }
 0xc71   :  { %4034 = vrcp.f32 %v1277_v9 }
 0xc73   :  { %v4033_v10 = vpop.eup %4032 }
 0xc74   :  { %v1378_v11 = vadd.f32 1.0, %v4033_v10 }
 0xc76   :  { %4036 = vrcp.f32 %v1378_v11 }
 0xc7b   :  { %v4035_v12 = vpop.eup %4034 }
 0xc7c   :  { %v1280_v13 = vmul.f32 2.0, %v4035_v12  ;;  %v1282_v27 = vmul.f32 %v4035_v12, %v4614_v37  ;;  %v4673_v37 = vld [vmem:[%s5440_s0 + $0x28] sm:$0xff] }
 0xc7e   :  { %v3324_v14 = vadd.f32 -1.0, %v1280_v13 }
 0xc80   :  { %v4037_v15 = vpop.eup %4036  ;;  %1284 = vrot.lane.b32.xlu1 %v3324_v14, %s4252_s3 }
 0xc81   :  { %v1381_v16 = vmul.f32 2.0, %v4037_v15  ;;  %v1383_v31 = vmul.f32 %v4037_v15, %v4616_v38 }
 0xc83   :  { %v3327_v19 = vadd.f32 -1.0, %v1381_v16 }
 0xc85   :  { %1385 = vrot.lane.b32.xlu0 %v3327_v19, %s4252_s3 }
 0xcf2   :  { %v1285_v20 = vpop.permute.xlu1 %1284 }
 0xcf3   :  { %v1287_v23 = vmul.f32 %v4035_v12, %v1285_v20 }
 0xcf5   :  { %1289 = vrot.lane.b32.xlu1 %v1287_v23, %s4251_s28 }
 0xcf7   :  { %v1386_v24 = vpop.permute.xlu0 %1385 }
 0xcf8   :  { %v1388_v26 = vmul.f32 %v4037_v15, %v1386_v24 }
 0xcfa   :  { %1390 = vrot.lane.b32.xlu0 %v1388_v26, %s4251_s28 }
 0xd67   :  { %v1290_v28 = vpop.permute.xlu1 %1289 }
 0xd68   :  { %v4660_v30 = vadd.f32 %v1290_v28, %v1282_v27 }
 0xd6a   :  { %4038 = vtanh.f32 %v4660_v30 }
 0xd6c   :  { %v1391_v32 = vpop.permute.xlu0 %1390 }
 0xd6d   :  { %v4664_v33 = vadd.f32 %v1391_v32, %v1383_v31 }
 0xd6f   :  { %4040 = vtanh.f32 %v4664_v33 }
 0xd74   :  { %v4039_v34 = vpop.eup %4038 }
 0xd75   :  { %1295 = vrot.lane.b32.xlu1 %v4039_v34, %s4252_s3 }
 0xd79   :  { %v4041_v35 = vpop.eup %4040 }
 0xd7a   :  { %1396 = vrot.lane.b32.xlu0 %v4041_v35, %s4252_s3 }
 0xde7   :  { %v1296_v36 = vpop.permute.xlu1 %1295 }
 0xde8   :  { %v1298_v6 = vmul.f32 %v4035_v12, %v1296_v36 }
 0xdea   :  { %1300 = vrot.lane.b32.xlu1 %v1298_v6, %s4251_s28 }
 0xdec   :  { %v1397_v22 = vpop.permute.xlu0 %1396 }
 0xded   :  { %v1399_v38 = vmul.f32 %v4037_v15, %v1397_v22 }
 0xdee   :  { %146 = vperm.xlu1 %3954, %v4673_v37  }
 0xdef   :  { %1473 = vrot.lane.b32.xlu0 %v1399_v38, %s4251_s28 }
 0xe5c   :  { %v1301_v39 = vpop.permute.xlu1 %1300 }
 0xe5d   :  { %1303 = vst.msk [vmem:[#allocation2 + $0x18] sm:$0xff] %vm195_vm4, %v1301_v39  ;;  %3646 = vmatmul.mubr.msk.f32.vlgmr.msra.gmra.mrb[14].mxu1 %vm195_vm4, %v1301_v39 }
 0xe5e   :  { %3870 = vmatpush3.bf16.msra.mxu1 %v4398_v17  ;;  %3667 = vmatprep.mubr.msk.f32.mxu1 %vm4247_vm0, %v4248_v3 }
 0xe5f   :  { %3871 = vmatprep.subr.bf16.mxu1 %v4246_v1 }
 0xe61   :  { %v1474_v40 = vpop.permute.xlu0 %1473 }
 0xe62   :  { %3873 = vmatpush3.bf16.msra.mxu1 %v4402_v18  ;;  %3657 = vmatmul.mubr.msk.f32.vlgmr.msra.gmra.mrb[12].mxu0 %vm195_vm4, %v1474_v40 }
 0xe63   :  { %3876 = vmatpush3.bf16.msra.mxu0 %v4466_v61  ;;  %3880 = vmatprep.subr.bf16.mxu1 %v4246_v1 }
 0xe64   :  { %3877 = vmatprep.subr.bf16.mxu0 %v4246_v1  ;;  %3678 = vmatprep.mubr.msk.f32.mxu0 %vm4247_vm0, %v4248_v3 }
 0xe65   :  { %3668 = vmatmul.mubr.msk.f32.vlgmr.msra.gmra.mrb[16].mxu1 %vm195_vm4, %v1474_v40 }
 0xe66   :  { %3882 = vmatpush3.bf16.msra.mxu1 %v4474_v7  ;;  %3689 = vmatprep.mubr.msk.f32.mxu1 %vm4247_vm0, %v4248_v3 }
 0xe67   :  { %3879 = vmatpush3.bf16.msra.mxu0 %v4472_v5  ;;  %3883 = vmatprep.subr.bf16.mxu1 %v4246_v1 }
 0xe68   :  { %3886 = vmatprep.subr.bf16.mxu0 %v4246_v1 }
 0xe6a   :  { %3885 = vmatpush3.bf16.msra.mxu1 %v4478_v8 }
 0xe6b   :  { %3892 = vmatprep.subr.bf16.mxu1 %v4246_v1 }
 0xe6d   :  { %v147_v41 = vpop.permute.xlu1 %146 }
 0xe6e   :  { %v170_v44 = vmul.f32 %v4420_v25, %v147_v41 }
 0xe70   :  { %v186_v50 = vadd.f32 %v4425_v29, %v170_v44 }
 0xf30   :  { %v1468_v42 = vpop.f32.mrb[14].mxu1 }
 0xf31   :  { %v3647_v43 = vpop.f32.mrb[15].mxu1 }
 0xf35   :  { %v1543_v47 = vpop.f32.mrb[12].mxu0 }
 0xf36   :  { %v1544_v48 = vadd.f32 %v1543_v47, %v1468_v42  ;;  %v3658_v49 = vpop.f32.mrb[13].mxu0 }
 0xf38   :  { %v1547_v51 = vadd.f32 %v1544_v48, %v4513_v21  ;;  %v1644_v53 = vpop.f32.mrb[16].mxu1 }
 0xf39   :  { %v1648_v54 = vadd.f32 %v1644_v53, %v186_v50  ;;  %v3669_v55 = vpop.f32.mrb[17].mxu1 }
 0xf3a   :  { %v3330_v56 = vmul.f32 -1.442695, %v1547_v51 }
 0xf3b   :  { %v3333_v57 = vmul.f32 -1.442695, %v1648_v54 }
 0xf3c   :  { %4042 = vpow2.f32 %v3330_v56 }
 0xf3d   :  { %4044 = vpow2.f32 %v3333_v57 }
 0xf46   :  { %v4043_v58 = vpop.eup %4042 }
 0xf47   :  { %v4045_v59 = vpop.eup %4044  ;;  %v1551_v45 = vadd.f32 1.0, %v4043_v58 }
 0xf48   :  { %v1652_v60 = vadd.f32 1.0, %v4045_v59 }
 0xf49   :  { %4046 = vrcp.f32 %v1551_v45 }
 0xf4a   :  { %4048 = vrcp.f32 %v1652_v60 }
 0xf53   :  { %v4047_v62 = vpop.eup %4046 }
 0xf54   :  { %v4049_v63 = vpop.eup %4048  ;;  %v1554_v0 = vmul.f32 2.0, %v4047_v62  ;;  %v1556_v16 = vmul.f32 %v4047_v62, %v4660_v30 }
 0xf55   :  { %v1655_v9 = vmul.f32 2.0, %v4049_v63  ;;  %v1657_v20 = vmul.f32 %v4049_v63, %v4664_v33  ;;  %v4721_v33 = vld [vmem:[%s5440_s0 + $0x30] sm:$0xff] }
 0xf56   :  { %v3331_v10 = vadd.f32 -1.0, %v1554_v0 }
 0xf57   :  { %v3334_v11 = vadd.f32 -1.0, %v1655_v9 }
 0xf58   :  { %1558 = vrot.lane.b32.xlu0 %v3331_v10, %s4252_s3 }
 0xf59   :  { %1659 = vrot.lane.b32.xlu1 %v3334_v11, %s4252_s3 }
 0xfca   :  { %v1559_v12 = vpop.permute.xlu0 %1558 }
 0xfcb   :  { %v1561_v13 = vmul.f32 %v4047_v62, %v1559_v12  ;;  %v1660_v14 = vpop.permute.xlu1 %1659 }
 0xfcc   :  { %v1662_v15 = vmul.f32 %v4049_v63, %v1660_v14 }
 0xfcd   :  { %1563 = vrot.lane.b32.xlu0 %v1561_v13, %s4251_s28 }
 0xfce   :  { %1664 = vrot.lane.b32.xlu1 %v1662_v15, %s4251_s28 }
0x103f   :  { %v1564_v19 = vpop.permute.xlu0 %1563 }
0x1040   :  { %v4708_v23 = vadd.f32 %v1564_v19, %v1556_v16  ;;  %v1665_v24 = vpop.permute.xlu1 %1664 }
0x1041   :  { %v4710_v26 = vadd.f32 %v1665_v24, %v1657_v20 }
0x1042   :  { %4050 = vtanh.f32 %v4708_v23 }
0x1043   :  { %4052 = vtanh.f32 %v4710_v26 }
0x104c   :  { %v4051_v27 = vpop.eup %4050 }
0x104d   :  { %v4053_v28 = vpop.eup %4052  ;;  %1569 = vrot.lane.b32.xlu0 %v4051_v27, %s4252_s3  ;;  %v4767_v27 = vld [vmem:[%s5440_s0 + $0x38] sm:$0xff] }
0x104e   :  { %1670 = vrot.lane.b32.xlu1 %v4053_v28, %s4252_s3 }
0x10bf   :  { %v1570_v31 = vpop.permute.xlu0 %1569 }
0x10c0   :  { %v1572_v30 = vmul.f32 %v4047_v62, %v1570_v31  ;;  %v1671_v32 = vpop.permute.xlu1 %1670 }
0x10c1   :  { %v1673_v34 = vmul.f32 %v4049_v63, %v1671_v32 }
0x10c2   :  { %1574 = vrot.lane.b32.xlu0 %v1572_v30, %s4251_s28 }
0x10c3   :  { %1747 = vrot.lane.b32.xlu1 %v1673_v34, %s4251_s28 }
0x10c6   :  { %151 = vperm.xlu0 %3953, %v4721_v33  }
0x1134   :  { %v1575_v35 = vpop.permute.xlu0 %1574 }
0x1135   :  { %1577 = vst.msk [vmem:[#allocation2 + $0x20] sm:$0xff] %vm195_vm4, %v1575_v35  ;;  %v1748_v36 = vpop.permute.xlu1 %1747  ;;  %3679 = vmatmul.mubr.msk.f32.vlgmr.msra.gmra.mrb[14].mxu0 %vm195_vm4, %v1575_v35 }
0x1136   :  { %3690 = vmatmul.mubr.msk.f32.vlgmr.msra.gmra.mrb[18].mxu1 %vm195_vm4, %v1748_v36  ;;  %3888 = vmatpush3.bf16.msra.mxu0 %v4398_v17 }
0x1137   :  { %3889 = vmatprep.subr.bf16.mxu0 %v4246_v1  ;;  %3700 = vmatprep.mubr.msk.f32.mxu0 %vm4247_vm0, %v4248_v3 }
0x1138   :  { %3894 = vmatpush3.bf16.msra.mxu1 %v4466_v61  ;;  %3711 = vmatprep.mubr.msk.f32.mxu1 %vm4247_vm0, %v4248_v3 }
0x1139   :  { %3895 = vmatprep.subr.bf16.mxu1 %v4246_v1 }
0x113a   :  { %3891 = vmatpush3.bf16.msra.mxu0 %v4402_v18 }
0x113b   :  { %3898 = vmatprep.subr.bf16.mxu0 %v4246_v1 }
0x113c   :  { %3897 = vmatpush3.bf16.msra.mxu1 %v4472_v5 }
0x113d   :  { %3701 = vmatmul.mubr.msk.f32.vlgmr.msra.gmra.mrb[16].mxu0 %vm195_vm4, %v1748_v36  ;;  %3904 = vmatprep.subr.bf16.mxu1 %v4246_v1 }
0x113e   :  { %3900 = vmatpush3.bf16.msra.mxu0 %v4474_v7  ;;  %3722 = vmatprep.mubr.msk.f32.mxu0 %vm4247_vm0, %v4248_v3 }
0x113f   :  { %3901 = vmatprep.subr.bf16.mxu0 %v4246_v1 }
0x1142   :  { %3903 = vmatpush3.bf16.msra.mxu0 %v4478_v8 }
0x1143   :  { %3910 = vmatprep.subr.bf16.mxu0 %v4246_v1 }
0x1145   :  { %v152_v6 = vpop.permute.xlu0 %151 }
0x1146   :  { %v171_v42 = vmul.f32 %v4420_v25, %v152_v6 }
0x1148   :  { %v187_v47 = vadd.f32 %v4425_v29, %v171_v42 }
0x1208   :  { %v1742_v22 = vpop.f32.mrb[14].mxu0 }
0x1209   :  { %v1817_v38 = vpop.f32.mrb[18].mxu1  ;;  %v3680_v39 = vpop.f32.mrb[15].mxu0 }
0x120a   :  { %v1818_v40 = vadd.f32 %v1817_v38, %v1742_v22  ;;  %v3691_v41 = vpop.f32.mrb[19].mxu1 }
0x120c   :  { %v1821_v43 = vadd.f32 %v1818_v40, %v4513_v21 }
0x120e   :  { %v3337_v44 = vmul.f32 -1.442695, %v1821_v43 }
0x1210   :  { %4054 = vpow2.f32 %v3337_v44  ;;  %v1918_v48 = vpop.f32.mrb[16].mxu0 }
0x1211   :  { %v1922_v49 = vadd.f32 %v1918_v48, %v187_v47  ;;  %v3702_v50 = vpop.f32.mrb[17].mxu0 }
0x1213   :  { %v3340_v51 = vmul.f32 -1.442695, %v1922_v49 }
0x1215   :  { %4056 = vpow2.f32 %v3340_v51 }
0x121a   :  { %v4055_v53 = vpop.eup %4054 }
0x121b   :  { %v1825_v54 = vadd.f32 1.0, %v4055_v53 }
0x121d   :  { %4058 = vrcp.f32 %v1825_v54 }
0x121f   :  { %v4057_v55 = vpop.eup %4056 }
0x1220   :  { %v1926_v56 = vadd.f32 1.0, %v4057_v55 }
0x1222   :  { %4060 = vrcp.f32 %v1926_v56 }
0x1227   :  { %v4059_v57 = vpop.eup %4058 }
0x1228   :  { %v1828_v58 = vmul.f32 2.0, %v4059_v57  ;;  %v1830_v11 = vmul.f32 %v4059_v57, %v4708_v23 }
0x122a   :  { %v3338_v59 = vadd.f32 -1.0, %v1828_v58 }
0x122c   :  { %v4061_v45 = vpop.eup %4060  ;;  %1832 = vrot.lane.b32.xlu1 %v3338_v59, %s4252_s3 }
0x122d   :  { %v1929_v60 = vmul.f32 2.0, %v4061_v45  ;;  %v1931_v14 = vmul.f32 %v4061_v45, %v4710_v26 }
0x122f   :  { %v3341_v62 = vadd.f32 -1.0, %v1929_v60  ;;  %v2424_v60 = vld [vmem:[%s5449_s9 + $0x8] sm:$0xff] }
0x1231   :  { %1933 = vrot.lane.b32.xlu0 %v3341_v62, %s4252_s3 }
0x129e   :  { %v1833_v63 = vpop.permute.xlu1 %1832 }
0x129f   :  { %v1835_v0 = vmul.f32 %v4059_v57, %v1833_v63 }
0x12a1   :  { %1837 = vrot.lane.b32.xlu1 %v1835_v0, %s4251_s28 }
0x12a3   :  { %v1934_v9 = vpop.permute.xlu0 %1933 }
0x12a4   :  { %v1936_v10 = vmul.f32 %v4061_v45, %v1934_v9 }
0x12a6   :  { %1938 = vrot.lane.b32.xlu0 %v1936_v10, %s4251_s28 }
0x1313   :  { %v1838_v12 = vpop.permute.xlu1 %1837 }
0x1314   :  { %v4754_v13 = vadd.f32 %v1838_v12, %v1830_v11 }
0x1316   :  { %4062 = vtanh.f32 %v4754_v13 }
0x1318   :  { %v1939_v15 = vpop.permute.xlu0 %1938 }
0x1319   :  { %v4758_v16 = vadd.f32 %v1939_v15, %v1931_v14  ;;  %v2426_v14 = vld [vmem:[%s5449_s9 + $0x18] sm:$0xff] }
0x131b   :  { %4064 = vtanh.f32 %v4758_v16 }
0x1320   :  { %v4063_v19 = vpop.eup %4062 }
0x1321   :  { %1843 = vrot.lane.b32.xlu1 %v4063_v19, %s4252_s3 }
0x1325   :  { %v4065_v20 = vpop.eup %4064 }
0x1326   :  { %1944 = vrot.lane.b32.xlu0 %v4065_v20, %s4252_s3  ;;  %v2415_v20 = vld [vmem:[#allocation2] sm:$0xff] }
0x1393   :  { %v1844_v24 = vpop.permute.xlu1 %1843 }
0x1394   :  { %v1846_v23 = vmul.f32 %v4059_v57, %v1844_v24  ;;  %v2416_v24 = vld [vmem:[#allocation2 + $0x8] sm:$0xff] }
0x1396   :  { %1848 = vrot.lane.b32.xlu1 %v1846_v23, %s4251_s28  ;;  %v2417_v23 = vld [vmem:[#allocation2 + $0x10] sm:$0xff] }
0x1398   :  { %v1945_v26 = vpop.permute.xlu0 %1944 }
0x1399   :  { %v1947_v28 = vmul.f32 %v4061_v45, %v1945_v26  ;;  %v2423_v45 = vld [vmem:[%s5449_s9] sm:$0xff]  ;;  %v2418_v26 = vld [vmem:[#allocation2 + $0x18] sm:$0xff] }
0x139a   :  { %156 = vperm.xlu1 %3954, %v4767_v27   ;;  %v3922_v62 = vpack.c.bf16 %v2424_v60, %v2423_v45  ;;  %v4915_v45 = vld [vmem:[%s5440_s0 + $0x8] sm:$0xff] }
0x139b   :  { %2021 = vrot.lane.b32.xlu0 %v1947_v28, %s4251_s28  ;;  %v2419_v28 = vld [vmem:[#allocation2 + $0x20] sm:$0xff] }
0x1408   :  { %v1849_v31 = vpop.permute.xlu1 %1848 }
0x1409   :  { %1851 = vst.msk [vmem:[#allocation2 + $0x28] sm:$0xff] %vm195_vm4, %v1849_v31  ;;  %3712 = vmatmul.mubr.msk.f32.vlgmr.msra.gmra.mrb[20].mxu1 %vm195_vm4, %v1849_v31 }
0x140a   :  { %3906 = vmatpush3.bf16.msra.mxu1 %v4398_v17  ;;  %3733 = vmatprep.mubr.msk.f32.mxu1 %vm4247_vm0, %v4248_v3 }
0x140b   :  { %3907 = vmatprep.subr.bf16.mxu1 %v4246_v1 }
0x140d   :  { %v2022_v30 = vpop.permute.xlu0 %2021 }
0x140e   :  { %3909 = vmatpush3.bf16.msra.mxu1 %v4402_v18  ;;  %3723 = vmatmul.mubr.msk.f32.vlgmr.msra.gmra.mrb[18].mxu0 %vm195_vm4, %v2022_v30 }
0x140f   :  { %3912 = vmatpush3.bf16.msra.mxu0 %v4466_v61  ;;  %3916 = vmatprep.subr.bf16.mxu1 %v4246_v1 }
0x1410   :  { %3913 = vmatprep.subr.bf16.mxu0 %v4246_v1  ;;  %3744 = vmatprep.mubr.msk.f32.mxu0 %vm4247_vm0, %v4248_v3  ;;  %v2420_v31 = vld [vmem:[#allocation2 + $0x28] sm:$0xff] }
0x1411   :  { %3734 = vmatmul.mubr.msk.f32.vlgmr.msra.gmra.mrb[22].mxu1 %vm195_vm4, %v2022_v30 }
0x1412   :  { %3918 = vmatpush3.bf16.msra.mxu1 %v4474_v7  ;;  %3755 = vmatprep.mubr.msk.f32.mxu1 %vm4247_vm0, %v4248_v3 }
0x1413   :  { %3915 = vmatpush3.bf16.msra.mxu0 %v4472_v5  ;;  %3919 = vmatprep.subr.bf16.mxu1 %v4246_v1 }
0x1414   :  { %3923 = vmatprep.subr.bf16.mxu0 %v3922_v62 }
0x1416   :  { %3921 = vmatpush3.bf16.msra.mxu1 %v4478_v8 }
0x1419   :  { %v157_v17 = vpop.permute.xlu1 %156 }
0x141a   :  { %v172_v32 = vmul.f32 %v4420_v25, %v157_v17 }
0x141c   :  { %v188_v6 = vadd.f32 %v4425_v29, %v172_v32 }
0x14dc   :  { %v2016_v18 = vpop.f32.mrb[20].mxu1 }
0x14dd   :  { %v3713_v61 = vpop.f32.mrb[21].mxu1 }
0x14e1   :  { %v2091_v34 = vpop.f32.mrb[18].mxu0 }
0x14e2   :  { %v2092_v35 = vadd.f32 %v2091_v34, %v2016_v18  ;;  %v3724_v36 = vpop.f32.mrb[19].mxu0 }
0x14e4   :  { %v2095_v7 = vadd.f32 %v2092_v35, %v4513_v21  ;;  %v2192_v22 = vpop.f32.mrb[22].mxu1 }
0x14e5   :  { %v2196_v38 = vadd.f32 %v2192_v22, %v188_v6  ;;  %v3735_v39 = vpop.f32.mrb[23].mxu1 }
0x14e6   :  { %v3344_v5 = vmul.f32 -1.442695, %v2095_v7 }
0x14e7   :  { %v3347_v40 = vmul.f32 -1.442695, %v2196_v38 }
0x14e8   :  { %4066 = vpow2.f32 %v3344_v5 }
0x14e9   :  { %4068 = vpow2.f32 %v3347_v40 }
0x14f2   :  { %v4067_v1 = vpop.eup %4066 }
0x14f3   :  { %v4069_v8 = vpop.eup %4068  ;;  %v2099_v41 = vadd.f32 1.0, %v4067_v1 }
0x14f4   :  { %v2200_v42 = vadd.f32 1.0, %v4069_v8 }
0x14f5   :  { %4070 = vrcp.f32 %v2099_v41 }
0x14f6   :  { %4072 = vrcp.f32 %v2200_v42 }
0x14ff   :  { %v4071_v25 = vpop.eup %4070 }
0x1500   :  { %v4073_v43 = vpop.eup %4072  ;;  %v2102_v44 = vmul.f32 2.0, %v4071_v25  ;;  %v2104_v54 = vmul.f32 %v4071_v25, %v4754_v13  ;;  %v2425_v13 = vld [vmem:[%s5449_s9 + $0x10] sm:$0xff]  ;;  %s4253_s9 = smov 96  }
0x1501   :  { %v2203_v47 = vmul.f32 2.0, %v4073_v43  ;;  %v2205_v56 = vmul.f32 %v4073_v43, %v4758_v16  ;;  %v3926_v15 = vpack.c.bf16 %v2426_v14, %v2425_v13 }
0x1502   :  { %v3345_v29 = vadd.f32 -1.0, %v2102_v44 }
0x1503   :  { %v3348_v48 = vadd.f32 -1.0, %v2203_v47 }
0x1504   :  { %2106 = vrot.lane.b32.xlu0 %v3345_v29, %s4252_s3 }
0x1505   :  { %2207 = vrot.lane.b32.xlu1 %v3348_v48, %s4252_s3  ;;  %v4849_v48 = vld [vmem:[%s5440_s0] sm:$0xff] }
0x1576   :  { %v2107_v49 = vpop.permute.xlu0 %2106 }
0x1577   :  { %v2109_v50 = vmul.f32 %v4071_v25, %v2107_v49  ;;  %v2208_v51 = vpop.permute.xlu1 %2207  ;;  %v4856_v49 = vld [vmem:[%s5440_s0 + $0x10] sm:$0xff] }
0x1578   :  { %v2210_v53 = vmul.f32 %v4073_v43, %v2208_v51  ;;  %v4878_v51 = vld [vmem:[%s5450_s10] ss:$0 sm:$0xff]  ;;  %s4256_s10 = smov 125  }
0x1579   :  { %2111 = vrot.lane.b32.xlu0 %v2109_v50, %s4251_s28  ;;  %v4867_v50 = vld [vmem:[%s5440_s0] sm:$0xff] }
0x157a   :  { %2212 = vrot.lane.b32.xlu1 %v2210_v53, %s4251_s28 }
0x15eb   :  { %v2112_v55 = vpop.permute.xlu0 %2111 }
0x15ec   :  { %v4800_v57 = vadd.f32 %v2112_v55, %v2104_v54  ;;  %v2213_v58 = vpop.permute.xlu1 %2212 }
0x15ed   :  { %v4802_v59 = vadd.f32 %v2213_v58, %v2205_v56 }
0x15ee   :  { %4074 = vtanh.f32 %v4800_v57 }
0x15ef   :  { %4076 = vtanh.f32 %v4802_v59 }
0x15f8   :  { %v4075_v63 = vpop.eup %4074 }
0x15f9   :  { %v4077_v0 = vpop.eup %4076  ;;  %2117 = vrot.lane.b32.xlu0 %v4075_v63, %s4252_s3 }
0x15fa   :  { %2218 = vrot.lane.b32.xlu1 %v4077_v0, %s4252_s3 }
0x166b   :  { %v2118_v9 = vpop.permute.xlu0 %2117 }
0x166c   :  { %v2120_v10 = vmul.f32 %v4071_v25, %v2118_v9  ;;  %v2219_v11 = vpop.permute.xlu1 %2218  ;;  %v4932_v9 = vld [vmem:[%s5440_s0 + $0x8] sm:$0xff] }
0x166d   :  { %v2221_v12 = vmul.f32 %v4073_v43, %v2219_v11 }
0x166e   :  { %2122 = vrot.lane.b32.xlu0 %v2120_v10, %s4251_s28 }
0x166f   :  { %2295 = vrot.lane.b32.xlu1 %v2221_v12, %s4251_s28 }
0x16e0   :  { %v2123_v16 = vpop.permute.xlu0 %2122 }
0x16e1   :  { %2125 = vst.msk [vmem:[#allocation2 + $0x30] sm:$0xff] %vm195_vm4, %v2123_v16  ;;  %v2296_v19 = vpop.permute.xlu1 %2295  ;;  %3745 = vmatmul.mubr.msk.f32.vlgmr.msra.gmra.mrb[20].mxu0 %vm195_vm4, %v2123_v16 }
0x16e2   :  { %2401 = vst.msk [vmem:[#allocation9] sm:$0xff] %vm195_vm4, %v2296_v19  ;;  %3756 = vmatmul.mubr.msk.f32.vlgmr.msra.gmra.mrb[24].mxu1 %vm195_vm4, %v2296_v19  ;;  %3925 = vmatpush3.bf16.msra.mxu0 %v3922_v62 }
0x16e3   :  { %3766 = vmatprep.mubr.msk.f32.mxu0 %vm195_vm4, %v2415_v20  ;;  %3927 = vmatprep.subr.bf16.mxu0 %v3926_v15 }
0x16e6   :  { %3929 = vmatpush3.bf16.msra.mxu0 %v3926_v15 }
0x16e8   :  { %v2421_v30 = vld [vmem:[#allocation2 + $0x30] sm:$0xff] }
0x16e9   :  { %3767 = vmatmul.mubr.msk.f32.vlgmr.msra.gmra.mrb[22].mxu0 %vm195_vm4, %v2416_v24 }
0x16ea   :  { %3769 = vmatprep.mubr.msk.f32.mxu0 %vm195_vm4, %v2417_v23 }
0x16ed   :  { %3770 = vmatmul.mubr.msk.f32.gmra.mrb[24].mxu0 %vm195_vm4, %v2418_v26 }
0x16ee   :  { %3772 = vmatprep.mubr.msk.f32.mxu0 %vm195_vm4, %v2419_v28 }
0x16f1   :  { %3773 = vmatmul.mubr.msk.f32.gmra.mrb[26].mxu0 %vm195_vm4, %v2420_v31 }
0x16f2   :  { %3775 = vmatprep.mubr.msk.f32.mxu0 %vm195_vm4, %v2421_v30 }
0x17b4   :  { %v2290_v17 = vpop.f32.mrb[20].mxu0 }
0x17b5   :  { %v2365_v18 = vpop.f32.mrb[24].mxu1  ;;  %v3746_v61 = vpop.f32.mrb[21].mxu0 }
0x17b6   :  { %v2366_v32 = vadd.f32 %v2365_v18, %v2290_v17  ;;  %v3757_v34 = vpop.f32.mrb[25].mxu1 }
0x17b8   :  { %v2369_v35 = vadd.f32 %v2366_v32, %v4513_v21 }
0x17ba   :  { %v3351_v36 = vmul.f32 -1.442695, %v2369_v35 }
0x17bc   :  { %4078 = vpow2.f32 %v3351_v36  ;;  %v4834_v6 = vpop.f32.mrb[22].mxu0 }
0x17bd   :  { %v2524_v7 = vpop.f32.mrb[23].mxu0  ;;  %v4950_v14 = vadd.f32 %v4834_v6, %v4878_v51 }
0x17be   :  { %v4883_v53 = vadd.f32 %v4878_v51, %v2524_v7 }
0x17c0   :  { %v4836_v22 = vpop.f32.mrb[24].mxu0 }
0x17c1   :  { %v2534_v38 = vpop.f32.mrb[25].mxu0  ;;  %v4956_v15 = vadd.f32 %v4836_v22, %v4878_v51 }
0x17c2   :  { %v4888_v54 = vadd.f32 %v4878_v51, %v2534_v38 }
0x17c4   :  { %v4838_v39 = vpop.f32.mrb[26].mxu0 }
0x17c5   :  { %v2544_v5 = vpop.f32.mrb[27].mxu0  ;;  %v4963_v20 = vadd.f32 %v4838_v39, %v4878_v51 }
0x17c6   :  { %v4079_v40 = vpop.eup %4078  ;;  %v4893_v55 = vadd.f32 %v4878_v51, %v2544_v5 }
0x17c7   :  { %v2373_v1 = vadd.f32 1.0, %v4079_v40 }
0x17c9   :  { %4080 = vrcp.f32 %v2373_v1 }
0x17d3   :  { %v4081_v8 = vpop.eup %4080 }
0x17d4   :  { %v2376_v41 = vmul.f32 2.0, %v4081_v8  ;;  %v2378_v43 = vmul.f32 %v4081_v8, %v4800_v57 }
0x17d6   :  { %v3352_v42 = vadd.f32 -1.0, %v2376_v41 }
0x17d8   :  { %2380 = vrot.lane.b32.xlu0 %v3352_v42, %s4252_s3 }
0x184a   :  { %v2381_v21 = vpop.permute.xlu0 %2380 }
0x184b   :  { %v2383_v25 = vmul.f32 %v4081_v8, %v2381_v21 }
0x184d   :  { %2385 = vrot.lane.b32.xlu1 %v2383_v25, %s4251_s28 }
0x18bf   :  { %v2386_v44 = vpop.permute.xlu1 %2385 }
0x18c0   :  { %v2388_v47 = vadd.f32 %v2386_v44, %v2378_v43 }
0x18c2   :  { %4082 = vtanh.f32 %v2388_v47 }
0x18cc   :  { %v4083_v29 = vpop.eup %4082 }
0x18cd   :  { %2391 = vrot.lane.b32.xlu0 %v4083_v29, %s4252_s3 }
0x18d1   :  { %2405 = vrot.lane.b32.xlu0 %v4802_v59, %s4253_s9 }
0x18d5   :  { %2579 = vrot.lane.b32.xlu0 %v4849_v48, %s4254_s5 }
0x18d9   :  { %2583 = vrot.lane.b32.xlu0 %v4856_v49, %s4254_s5 }
0x18dd   :  { %2587 = vrot.lane.b32.xlu0 %v4627_v46, %s4254_s5 }
0x18e1   :  { %2591 = vrot.lane.b32.xlu0 %v4721_v33, %s4254_s5 }
0x18e5   :  { %2627 = vrot.lane.b32.xlu0 %v4867_v50, %s4255_s2 }
0x18e9   :  { %2631 = vrot.lane.b32.xlu0 %v4856_v49, %s4255_s2 }
0x18ed   :  { %2635 = vrot.lane.b32.xlu0 %v4627_v46, %s4255_s2 }
0x18f1   :  { %2639 = vrot.lane.b32.xlu0 %v4721_v33, %s4255_s2 }
0x18f5   :  { %2683 = vrot.lane.b32.xlu0 %v4883_v53, %s4254_s5 }
0x18f9   :  { %2687 = vrot.lane.b32.xlu0 %v4888_v54, %s4254_s5 }
0x18fd   :  { %2691 = vrot.lane.b32.xlu0 %v4893_v55, %s4254_s5 }
0x1901   :  { %2723 = vrot.lane.b32.xlu0 %v4883_v53, %s4256_s10 }
0x1905   :  { %2727 = vrot.lane.b32.xlu0 %v4888_v54, %s4256_s10 }
0x1909   :  { %2731 = vrot.lane.b32.xlu0 %v4893_v55, %s4256_s10 }
0x190d   :  { %2779 = vrot.lane.b32.xlu0 %v4883_v53, %s4257_s20 }
0x1911   :  { %2783 = vrot.lane.b32.xlu0 %v4888_v54, %s4257_s20 }
0x1915   :  { %2787 = vrot.lane.b32.xlu0 %v4893_v55, %s4257_s20 }
0x193f   :  { %v2392_v56 = vpop.permute.xlu0 %2391 }
0x1940   :  { %v2394_v57 = vmul.f32 %v4081_v8, %v2392_v56 }
0x1942   :  { %2396 = vrot.lane.b32.xlu1 %v2394_v57, %s4251_s28 }
0x1943   :  { %v2406_v58 = vpop.permute.xlu0 %2405 }
0x1944   :  { %2408 = vst.msk [vmem:[#allocation11] sm:$0xff] %vm195_vm4, %v2406_v58 }
0x1946   :  { %2410 = vrot.lane.b32.xlu1 %v2388_v47, %s4253_s9 }
0x1947   :  { %v2580_v59 = vpop.permute.xlu0 %2579 }
0x1948   :  { %v2603_v16 = vsub.f32 %v4867_v50, %v2580_v59 }
0x194a   :  { %2581 = vrot.lane.b32.xlu1 %v4915_v45, %s4254_s5  ;;  %vm2611_vm5 = vcmp.gt.f32.partialorder %v2603_v16, 0.0 }
0x194b   :  { %v2584_v60 = vpop.permute.xlu0 %2583  ;;  %v4970_v31 = vsel %vm2611_vm5, 1.0, %v4248_v3  ;;  %vm2995_vm5 = vcmp.eq.s32.totalorder %v4367_v2, 0 }
0x194c   :  { %v2605_v24 = vsub.f32 %v4856_v49, %v2584_v60 }
0x194e   :  { %2585 = vrot.lane.b32.xlu1 %v4579_v52, %s4254_s5  ;;  %vm2613_vm6 = vcmp.gt.f32.partialorder %v2605_v24, 0.0 }
0x194f   :  { %v2588_v62 = vpop.permute.xlu0 %2587  ;;  %v4980_v35 = vsel %vm2613_vm6, 1.0, %v4248_v3  ;;  %vm3044_vm6 = vcmp.eq.s32.totalorder %v4367_v2, 1 }
0x1950   :  { %v2607_v30 = vsub.f32 %v4627_v46, %v2588_v62 }
0x1952   :  { %2589 = vrot.lane.b32.xlu1 %v4673_v37, %s4254_s5  ;;  %vm2615_vm7 = vcmp.gt.f32.partialorder %v2607_v30, 0.0 }
0x1953   :  { %v4923_v63 = vpop.permute.xlu0 %2591  ;;  %v4989_v39 = vsel %vm2615_vm7, 1.0, %v4248_v3 }
0x1956   :  { %2593 = vrot.lane.b32.xlu1 %v4767_v27, %s4254_s5 }
0x1957   :  { %v4927_v0 = vpop.permute.xlu0 %2627 }
0x1958   :  { %v2651_v43 = vsub.f32 %v4849_v48, %v4927_v0  ;;  %v5026_v0 = vld [vmem:[%s5440_s0 + $0x18] sm:$0xff] }
0x195a   :  { %2629 = vrot.lane.b32.xlu1 %v4932_v9, %s4255_s2  ;;  %vm2659_vm8 = vcmp.gt.f32.partialorder %v2651_v43, 0.0 }
0x195b   :  { %v4936_v10 = vpop.permute.xlu0 %2631  ;;  %v5014_v57 = vsel %vm2659_vm8, 1.0, %v4248_v3 }
0x195c   :  { %v2653_v47 = vsub.f32 %v4856_v49, %v4936_v10 }
0x195e   :  { %2633 = vrot.lane.b32.xlu1 %v4579_v52, %s4255_s2  ;;  %vm2661_vm9 = vcmp.gt.f32.partialorder %v2653_v47, 0.0 }
0x195f   :  { %v4940_v11 = vpop.permute.xlu0 %2635 }
0x1960   :  { %v2655_v58 = vsub.f32 %v4627_v46, %v4940_v11 }
0x1962   :  { %2637 = vrot.lane.b32.xlu1 %v4673_v37, %s4255_s2  ;;  %vm2663_vm11 = vcmp.gt.f32.partialorder %v2655_v58, 0.0 }
0x1963   :  { %v4944_v12 = vpop.permute.xlu0 %2639  ;;  %v5042_v24 = vsel %vm2663_vm11, 1.0, %v4248_v3 }
0x1966   :  { %2641 = vrot.lane.b32.xlu1 %v4767_v27, %s4255_s2 }
0x1967   :  { %v2684_v13 = vpop.permute.xlu0 %2683 }
0x1968   :  { %4084 = vrcp.f32 %v2684_v13  ;;  %v5030_v13 = vsel %vm2661_vm9, 1.0, %v4248_v3 }
0x196a   :  { %2685 = vrot.lane.b32.xlu1 %v4950_v14, %s4254_s5 }
0x196b   :  { %v2688_v52 = vpop.permute.xlu0 %2687 }
0x196c   :  { %4086 = vrcp.f32 %v2688_v52 }
0x196e   :  { %2689 = vrot.lane.b32.xlu1 %v4956_v15, %s4254_s5 }
0x196f   :  { %v2692_v19 = vpop.permute.xlu0 %2691 }
0x1970   :  { %4088 = vrcp.f32 %v2692_v19 }
0x1972   :  { %v4085_v23 = vpop.eup %4084  ;;  %2693 = vrot.lane.b32.xlu1 %v4963_v20, %s4254_s5 }
0x1973   :  { %v2708_v26 = vmul.f32 %v4867_v50, %v4085_v23  ;;  %v2724_v28 = vpop.permute.xlu0 %2723 }
0x1975   :  { %v2747_v17 = vsub.f32 %v2708_v26, %v2724_v28 }
0x1976   :  { %v4087_v18 = vpop.eup %4086  ;;  %2725 = vrot.lane.b32.xlu1 %v4950_v14, %s4256_s10 }
0x1977   :  { %v4976_v61 = vmul.f32 %v2747_v17, %v4970_v31  ;;  %v2712_v32 = vmul.f32 %v4856_v49, %v4087_v18  ;;  %v2728_v34 = vpop.permute.xlu0 %2727 }
0x1979   :  { %v2749_v36 = vsub.f32 %v2712_v32, %v2728_v34 }
0x197a   :  { %v4089_v6 = vpop.eup %4088  ;;  %2729 = vrot.lane.b32.xlu1 %v4956_v15, %s4256_s10 }
0x197b   :  { %v4985_v7 = vmul.f32 %v2749_v36, %v4980_v35  ;;  %v2716_v22 = vmul.f32 %v4089_v6, %v4627_v46  ;;  %v2732_v38 = vpop.permute.xlu0 %2731  ;;  %v2657_v46 = vsub.f32 %v4721_v33, %v4944_v12  ;;  %v2859_v36 = vsub.f32 1.0, %v4970_v31 }
0x197c   :  { %v2861_v31 = vsub.f32 1.0, %v4980_v35 }
0x197d   :  { %v2751_v5 = vsub.f32 %v2716_v22, %v2732_v38  ;;  %vm2665_vm13 = vcmp.gt.f32.partialorder %v2657_v46, 0.0  ;;  %v2609_v38 = vsub.f32 %v4721_v33, %v4923_v63 }
0x197e   :  { %2733 = vrot.lane.b32.xlu1 %v4963_v20, %s4256_s10  ;;  %v5053_v17 = vsel %vm2665_vm13, 1.0, %v4248_v3 }
0x197f   :  { %v4994_v40 = vmul.f32 %v2751_v5, %v4989_v39  ;;  %vm2617_vm2 = vcmp.gt.f32.partialorder %v2609_v38, 0.0 }
0x1980   :  { %v5077_v35 = vsel %vm2617_vm2, 1.0, %v4248_v3 }
0x1982   :  { %2781 = vrot.lane.b32.xlu1 %v4950_v14, %s4257_s20 }
0x1986   :  { %2785 = vrot.lane.b32.xlu1 %v4956_v15, %s4257_s20 }
0x198a   :  { %2789 = vrot.lane.b32.xlu1 %v4963_v20, %s4257_s20 }
0x19b4   :  { %v2397_v1 = vpop.permute.xlu1 %2396 }
0x19b5   :  { %2399 = vst.msk [vmem:[#allocation2 + $0x38] sm:$0xff] %vm195_vm4, %v2397_v1  ;;  %2403 = vst.msk [vmem:[#allocation9 + $0x8] sm:$0xff] %vm195_vm4, %v2397_v1 }
0x19b8   :  { %v2411_v8 = vpop.permute.xlu1 %2410 }
0x19b9   :  { %2414 = vst.msk [vmem:[#allocation11 + $0x8] sm:$0xff] %vm195_vm4, %v2411_v8 }
0x19bc   :  { %v2582_v41 = vpop.permute.xlu1 %2581  ;;  %v2422_v42 = vld [vmem:[#allocation2 + $0x38] sm:$0xff] }
0x19bd   :  { %3776 = vmatmul.mubr.msk.f32.gmra.mrb[28].mxu0 %vm195_vm4, %v2422_v42  ;;  %v2604_v23 = vsub.f32 %v4932_v9, %v2582_v41 }
0x19bf   :  { %vm2612_vm15 = vcmp.gt.f32.partialorder %v2604_v23, 0.0 }
0x19c0   :  { %v2586_v21 = vpop.permute.xlu1 %2585  ;;  %v2620_v22 = vsel %vm2612_vm15, 1.0, %v4248_v3 }
0x19c1   :  { %v2606_v18 = vsub.f32 %v5026_v0, %v2586_v21  ;;  %v2860_v8 = vsub.f32 1.0, %v2620_v22  ;;  %v2863_v21 = vsub.f32 1.0, %v4989_v39 }
0x19c3   :  { %vm2614_vm1 = vcmp.gt.f32.partialorder %v2606_v18, 0.0  ;;  %v2909_v18 = vsub.f32 1.0, %v5030_v13 }
0x19c4   :  { %v2590_v25 = vpop.permute.xlu1 %2589  ;;  %v2622_v41 = vsel %vm2614_vm1, 1.0, %v4248_v3 }
0x19c5   :  { %v2608_v5 = vsub.f32 %v4673_v37, %v2590_v25  ;;  %v2862_v25 = vsub.f32 1.0, %v2622_v41 }
0x19c7   :  { %vm2616_vm3 = vcmp.gt.f32.partialorder %v2608_v5, 0.0  ;;  %v2780_v5 = vpop.permute.xlu0 %2779 }
0x19c8   :  { %v5008_v44 = vpop.permute.xlu1 %2593  ;;  %v2624_v43 = vsel %vm2616_vm3, 1.0, %v4248_v3 }
0x19c9   :  { %v2610_v63 = vsub.f32 %v4767_v27, %v5008_v44  ;;  %v2864_v58 = vsub.f32 1.0, %v2624_v43 }
0x19cb   :  { %vm2618_vm4 = vcmp.gt.f32.partialorder %v2610_v63, 0.0 }
0x19cc   :  { %v2630_v29 = vpop.permute.xlu1 %2629  ;;  %v5085_v39 = vsel %vm2618_vm4, 1.0, %v4248_v3 }
0x19cd   :  { %v2652_v56 = vsub.f32 %v4915_v45, %v2630_v29 }
0x19cf   :  { %vm2660_vm10 = vcmp.gt.f32.partialorder %v2652_v56, 0.0  ;;  %v2865_v56 = vsub.f32 1.0, %v5077_v35 }
0x19d0   :  { %v5019_v59 = vsel %vm2660_vm10, 1.0, %v4248_v3  ;;  %v2634_v60 = vpop.permute.xlu1 %2633 }
0x19d1   :  { %v3955_v62 = vpack.i.bf16 %v5019_v59, %v5014_v57  ;;  %v2654_v10 = vsub.f32 %v5026_v0, %v2634_v60 }
0x19d3   :  { %vm2662_vm12 = vcmp.gt.f32.partialorder %v2654_v10, 0.0  ;;  %3956 = vrot.lane.b32.xlu0 %v3955_v62, %s4254_s5 }
0x19d4   :  { %v5036_v11 = vsel %vm2662_vm12, 1.0, %v4248_v3  ;;  %v2638_v52 = vpop.permute.xlu1 %2637 }
0x19d5   :  { %v3960_v16 = vpack.i.bf16 %v5036_v11, %v5030_v13  ;;  %v2656_v19 = vsub.f32 %v4673_v37, %v2638_v52  ;;  %v2910_v38 = vsub.f32 1.0, %v5036_v11 }
0x19d7   :  { %vm2664_vm14 = vcmp.gt.f32.partialorder %v2656_v19, 0.0  ;;  %3961 = vrot.lane.b32.xlu1 %v3960_v16, %s4254_s5  ;;  %v2907_v16 = vsub.f32 1.0, %v5014_v57  ;;  %v2866_v19 = vsub.f32 1.0, %v5085_v39 }
0x19d8   :  { %v5047_v12 = vsel %vm2664_vm14, 1.0, %v4248_v3  ;;  %v2642_v26 = vpop.permute.xlu1 %2641 }
0x19d9   :  { %v3965_v28 = vpack.i.bf16 %v5047_v12, %v5042_v24  ;;  %v2658_v30 = vsub.f32 %v4767_v27, %v2642_v26 }
0x19db   :  { %vm2666_vm0 = vcmp.gt.f32.partialorder %v2658_v30, 0.0  ;;  %3966 = vrot.lane.b32.xlu0 %v3965_v28, %s4254_s5 }
0x19dc   :  { %v5058_v32 = vsel %vm2666_vm0, 1.0, %v4248_v3  ;;  %v2686_v34 = vpop.permute.xlu1 %2685 }
0x19dd   :  { %v3970_v6 = vpack.i.bf16 %v5058_v32, %v5053_v17  ;;  %4090 = vrcp.f32 %v2686_v34  ;;  %v2908_v34 = vsub.f32 1.0, %v5019_v59  ;;  %v2912_v59 = vsub.f32 1.0, %v5047_v12 }
0x19de   :  { %v2914_v13 = vsub.f32 1.0, %v5058_v32 }
0x19df   :  { %2875 = vrot.lane.b32.xlu0 %v2859_v36, %s4258_s27  ;;  %3971 = vrot.lane.b32.xlu1 %v3970_v6, %s4254_s5  ;;  %v4259_v6 = vmov 1  }
0x19e0   :  { %v2690_v1 = vpop.permute.xlu1 %2689  ;;  %3975 = vset.pattern.permute.xlu0 %v4259_v6 }
0x19e1   :  { %4092 = vrcp.f32 %v2690_v1 }
0x19e3   :  { %2879 = vrot.lane.b32.xlu0 %v2861_v31, %s4258_s27  ;;  %2877 = vrot.lane.b32.xlu1 %v2860_v8, %s4258_s27 }
0x19e4   :  { %v2694_v42 = vpop.permute.xlu1 %2693 }
0x19e5   :  { %4094 = vrcp.f32 %v2694_v42 }
0x19e6   :  { %4096 = vrcp.f32 %v4950_v14 }
0x19e7   :  { %v4091_v47 = vpop.eup %4090  ;;  %2883 = vrot.lane.b32.xlu0 %v2863_v21, %s4258_s27  ;;  %2881 = vrot.lane.b32.xlu1 %v2862_v25, %s4258_s27  ;;  %4098 = vrcp.f32 %v4883_v53 }
0x19e8   :  { %v2710_v44 = vmul.f32 %v4932_v9, %v4091_v47  ;;  %v2726_v29 = vpop.permute.xlu1 %2725  ;;  %4100 = vrcp.f32 %v4956_v15 }
0x19e9   :  { %4102 = vrcp.f32 %v4888_v54 }
0x19ea   :  { %v2748_v60 = vsub.f32 %v2710_v44, %v2726_v29  ;;  %4104 = vrcp.f32 %v4963_v20 }
0x19eb   :  { %v4093_v62 = vpop.eup %4092  ;;  %2887 = vrot.lane.b32.xlu0 %v2865_v56, %s4258_s27  ;;  %2885 = vrot.lane.b32.xlu1 %v2864_v58, %s4258_s27  ;;  %4106 = vrcp.f32 %v4893_v55 }
0x19ec   :  { %v5089_v10 = vmul.f32 %v2748_v60, %v2620_v22  ;;  %v2714_v46 = vmul.f32 %v5026_v0, %v4093_v62  ;;  %v2730_v52 = vpop.permute.xlu1 %2729  ;;  %v2911_v22 = vsub.f32 1.0, %v5042_v24  ;;  %v2784_v24 = vpop.permute.xlu0 %2783 }
0x19ee   :  { %v2750_v23 = vsub.f32 %v2714_v46, %v2730_v52 }
0x19ef   :  { %v4095_v26 = vpop.eup %4094  ;;  %2923 = vrot.lane.b32.xlu0 %v2907_v16, %s4255_s2  ;;  %2889 = vrot.lane.b32.xlu1 %v2866_v19, %s4258_s27 }
0x19f0   :  { %v5096_v3 = vmul.f32 %v2750_v23, %v2622_v41  ;;  %v2718_v28 = vmul.f32 %v4095_v26, %v4673_v37  ;;  %v2734_v30 = vpop.permute.xlu1 %2733  ;;  %v2913_v37 = vsub.f32 1.0, %v5053_v17  ;;  %v4097_v17 = vpop.eup %4096 }
0x19f1   :  { %v4099_v32 = vpop.eup %4098  ;;  %v2788_v1 = vpop.permute.xlu0 %2787  ;;  %v2766_v63 = vmul.f32 %v4932_v9, %v4097_v17 }
0x19f2   :  { %v2752_v36 = vsub.f32 %v2718_v28, %v2734_v30  ;;  %v4101_v31 = vpop.eup %4100  ;;  %v2764_v41 = vmul.f32 %v4867_v50, %v4099_v32  ;;  %v4120_v28 = vld [vmem:[%s5440_s0 + $0x20] sm:$0xff] }
0x19f3   :  { %2927 = vrot.lane.b32.xlu0 %v2909_v18, %s4255_s2  ;;  %2925 = vrot.lane.b32.xlu1 %v2908_v34, %s4255_s2  ;;  %v4103_v8 = vpop.eup %4102  ;;  %v2770_v58 = vmul.f32 %v5026_v0, %v4101_v31  ;;  %v4121_v18 = vld [vmem:[%s5440_s0 + $0x28] sm:$0xff] }
0x19f4   :  { %v5103_v57 = vmul.f32 %v2752_v36, %v2624_v43  ;;  %v2782_v11 = vpop.permute.xlu1 %2781  ;;  %v2803_v25 = vsub.f32 %v2764_v41, %v2780_v5  ;;  %v4105_v29 = vpop.eup %4104  ;;  %v2768_v56 = vmul.f32 %v4856_v49, %v4103_v8 }
0x19f5   :  { %v2804_v43 = vsub.f32 %v2766_v63, %v2782_v11  ;;  %v4107_v60 = vpop.eup %4106  ;;  %v2774_v34 = vmul.f32 %v4121_v18, %v4105_v29 }
0x19f6   :  { %v2805_v52 = vsub.f32 %v2768_v56, %v2784_v24  ;;  %v2772_v30 = vmul.f32 %v4120_v28, %v4107_v60 }
0x19f7   :  { %2931 = vrot.lane.b32.xlu0 %v2911_v22, %s4255_s2  ;;  %2929 = vrot.lane.b32.xlu1 %v2910_v38, %s4255_s2 }
0x19f8   :  { %v2786_v12 = vpop.permute.xlu1 %2785  ;;  %v2807_v38 = vsub.f32 %v2772_v30, %v2788_v1 }
0x19f9   :  { %v2806_v16 = vsub.f32 %v2770_v58, %v2786_v12 }
0x19fb   :  { %2933 = vrot.lane.b32.xlu1 %v2912_v59, %s4255_s2  ;;  %2935 = vrot.lane.b32.xlu0 %v2913_v37, %s4255_s2 }
0x19fc   :  { %v2790_v42 = vpop.permute.xlu1 %2789 }
0x19fd   :  { %v2808_v37 = vsub.f32 %v2774_v34, %v2790_v42 }
0x19ff   :  { %2937 = vrot.lane.b32.xlu1 %v2914_v13, %s4255_s2 }
0x1a45   :  { %v3957_v21 = vpop.permute.xlu0 %3956 }
0x1a46   :  { %v3959_v47 = vunpack.i.h.bf16 %v3957_v21  ;;  %v3958_v44 = vunpack.i.l.bf16 %v3957_v21 }
0x1a48   :  { %v2844_v62 = vmul.f32 %v3959_v47, %v2804_v43  ;;  %v2843_v46 = vmul.f32 %v3958_v44, %v2803_v25 }
0x1a49   :  { %v3962_v19 = vpop.permute.xlu1 %3961 }
0x1a4a   :  { %v3964_v50 = vunpack.i.h.bf16 %v3962_v19  ;;  %v3963_v23 = vunpack.i.l.bf16 %v3962_v19  ;;  %v5127_v9 = vadd.f32 %v2843_v46, %v4976_v61  ;;  %v5130_v26 = vadd.f32 %v2844_v62, %v5089_v10 }
0x1a4c   :  { %v2846_v36 = vmul.f32 %v3964_v50, %v2806_v16  ;;  %v2845_v22 = vmul.f32 %v3963_v23, %v2805_v52 }
0x1a4d   :  { %v3967_v59 = vpop.permute.xlu0 %3966 }
0x1a4e   :  { %v3969_v61 = vunpack.i.h.bf16 %v3967_v59  ;;  %v3968_v13 = vunpack.i.l.bf16 %v3967_v59  ;;  %v5139_v10 = vadd.f32 %v2845_v22, %v4985_v7  ;;  %v5142_v5 = vadd.f32 %v2846_v36, %v5096_v3 }
0x1a4f   :  { %v4260_v36 = vmov 3   ;;  %v4261_v22 = vmov 2  }
0x1a50   :  { %v2848_v11 = vmul.f32 %v3969_v61, %v2808_v37  ;;  %v2847_v24 = vmul.f32 %v3968_v13, %v2807_v38 }
0x1a51   :  { %v5144_v12 = vpop.permute.xlu1 %3971  ;;  %v2876_v17 = vpop.permute.xlu0 %2875 }
0x1a52   :  { %v5147_v32 = vadd.f32 %v2847_v24, %v4994_v40  ;;  %v5150_v1 = vadd.f32 %v2848_v11, %v5103_v57  ;;  %v2899_v3 = vmul.f32 %v2876_v17, %v4849_v48 }
0x1a55   :  { %v2878_v31 = vpop.permute.xlu1 %2877  ;;  %v2880_v8 = vpop.permute.xlu0 %2879 }
0x1a56   :  { %v2900_v47 = vmul.f32 %v2878_v31, %v4915_v45  ;;  %v2901_v44 = vmul.f32 %v4856_v49, %v2880_v8 }
0x1a59   :  { %v2882_v41 = vpop.permute.xlu1 %2881  ;;  %v2884_v63 = vpop.permute.xlu0 %2883 }
0x1a5a   :  { %v2902_v58 = vmul.f32 %v5026_v0, %v2882_v41  ;;  %v2903_v60 = vmul.f32 %v4120_v28, %v2884_v63 }
0x1a5d   :  { %v2886_v7 = vpop.permute.xlu1 %2885  ;;  %v2888_v42 = vpop.permute.xlu0 %2887 }
0x1a5e   :  { %v2904_v45 = vmul.f32 %v4121_v18, %v2886_v7  ;;  %v2905_v49 = vmul.f32 %v2888_v42, %v4721_v33 }
0x1a61   :  { %v2890_v21 = vpop.permute.xlu1 %2889  ;;  %v2924_v25 = vpop.permute.xlu0 %2923 }
0x1a62   :  { %v2947_v43 = vmul.f32 %v2924_v25, %v2899_v3  ;;  %v2906_v23 = vmul.f32 %v2890_v21, %v4767_v27  ;;  %v4122_v21 = vld [vmem:[%s5440_s0 + $0x30] sm:$0xff] }
0x1a64   :  { %2963 = vrot.lane.b32.xlu0 %v2947_v43, %s4257_s20 }
0x1a65   :  { %v2926_v40 = vpop.permute.xlu1 %2925  ;;  %v2928_v57 = vpop.permute.xlu0 %2927 }
0x1a66   :  { %v2948_v29 = vmul.f32 %v2926_v40, %v2900_v47  ;;  %v2949_v56 = vmul.f32 %v2928_v57, %v2901_v44  ;;  %v3973_v44 = vunpack.i.l.bf16 %v5144_v12 }
0x1a68   :  { %2965 = vrot.lane.b32.xlu1 %v2948_v29, %s4257_s20  ;;  %2967 = vrot.lane.b32.xlu0 %v2949_v56, %s4257_s20 }
0x1a69   :  { %v2930_v48 = vpop.permute.xlu1 %2929  ;;  %v2932_v62 = vpop.permute.xlu0 %2931 }
0x1a6a   :  { %v2950_v46 = vmul.f32 %v2930_v48, %v2902_v58  ;;  %v2951_v52 = vmul.f32 %v2932_v62, %v2903_v60 }
0x1a6c   :  { %2969 = vrot.lane.b32.xlu1 %v2950_v46, %s4257_s20  ;;  %2971 = vrot.lane.b32.xlu0 %v2951_v52, %s4257_s20 }
0x1a6d   :  { %v2934_v16 = vpop.permute.xlu1 %2933  ;;  %v2936_v19 = vpop.permute.xlu0 %2935 }
0x1a6e   :  { %v2952_v50 = vmul.f32 %v2934_v16, %v2904_v45  ;;  %v2953_v0 = vmul.f32 %v2936_v19, %v2905_v49 }
0x1a70   :  { %2973 = vrot.lane.b32.xlu1 %v2952_v50, %s4257_s20  ;;  %2975 = vrot.lane.b32.xlu0 %v2953_v0, %s4257_s20  ;;  %v4123_v0 = vld [vmem:[%s5440_s0 + $0x38] sm:$0xff]  ;;  %s4262_s0 = smov [#allocation9]  }
0x1a71   :  { %v2938_v28 = vpop.permute.xlu1 %2937 }
0x1a72   :  { %v2954_v30 = vmul.f32 %v2938_v28, %v2906_v23 }
0x1a74   :  { %2977 = vrot.lane.b32.xlu1 %v2954_v30, %s4257_s20  ;;  %3095 = vperm.xlu0 %3975, %v4883_v53  }
0x1a78   :  { %3107 = vperm.xlu0 %3975, %v4956_v15  }
0x1a7c   :  { %3115 = vperm.xlu0 %3975, %v4963_v20  }
0x1a90   :  { %v3777_v33 = vpop.f32.mrb[28].mxu0 }
0x1a91   :  { %v2554_v18 = vpop.f32.mrb[29].mxu0  ;;  %v5175_v27 = vadd.f32 %v3777_v33, %v4878_v51 }
0x1a92   :  { %v5170_v34 = vadd.f32 %v4878_v51, %v2554_v18 }
0x1a94   :  { %2695 = vrot.lane.b32.xlu0 %v5170_v34, %s4254_s5 }
0x1a98   :  { %3123 = vperm.xlu0 %3975, %v5175_v27  }
0x1a9c   :  { %3979 = vset.pattern.permute.xlu0 %v4260_v36 }
0x1a9d   :  { %3193 = vperm.xlu0 %3979, %v4883_v53  }
0x1aa1   :  { %2735 = vrot.lane.b32.xlu0 %v5170_v34, %s4256_s10 }
0x1aa5   :  { %2791 = vrot.lane.b32.xlu0 %v5170_v34, %s4257_s20 }
0x1aa9   :  { %3205 = vperm.xlu0 %3979, %v4956_v15  }
0x1aad   :  { %3981 = vset.pattern.permute.xlu0 %v4261_v22 }
0x1aae   :  { %3148 = vperm.xlu0 %3981, %v4950_v14  }
0x1ab2   :  { %3160 = vperm.xlu0 %3981, %v4893_v55  }
0x1ab6   :  { %3168 = vperm.xlu0 %3981, %v5170_v34  }
0x1aba   :  { %3985 = vset.pattern.permute.xlu0 %v4260_v36 }
0x1abb   :  { %3213 = vperm.xlu0 %3985, %v4963_v20  }
0x1abf   :  { %3986 = vset.pattern.permute.xlu0 %v4249_v4 }
0x1ad6   :  { %v2964_v51 = vpop.permute.xlu0 %2963 }
0x1ad7   :  { %v2987_v38 = vadd.f32 %v2964_v51, %v5127_v9 }
0x1ad9   :  { %2998 = vperm.xlu0 %3986, %v2987_v38  }
0x1ada   :  { %v2966_v37 = vpop.permute.xlu1 %2965  ;;  %v2968_v59 = vpop.permute.xlu0 %2967 }
0x1adb   :  { %v2988_v61 = vadd.f32 %v2966_v37, %v5130_v26  ;;  %v2989_v13 = vadd.f32 %v2968_v59, %v5139_v10  ;;  %v3974_v37 = vunpack.i.h.bf16 %v5144_v12 }
0x1add   :  { %3003 = vperm.xlu1 %3954, %v2988_v61   ;;  %3008 = vperm.xlu0 %3986, %v2989_v13  }
0x1ade   :  { %v2970_v11 = vpop.permute.xlu1 %2969  ;;  %v2972_v24 = vpop.permute.xlu0 %2971 }
0x1adf   :  { %v2991_v17 = vadd.f32 %v2972_v24, %v5147_v32  ;;  %v2990_v31 = vadd.f32 %v2970_v11, %v5142_v5 }
0x1ae1   :  { %2697 = vrot.lane.b32.xlu1 %v5175_v27, %s4254_s5  ;;  %3018 = vperm.xlu0 %3986, %v2991_v17   ;;  %s3265_s5 = sshll.u32 %s4262_s0, 4  ;;  %s3266_s5 = int_to_ptr.vmem [resolvable:$true] %s3265_s5 }
0x1ae2   :  { %v2974_v9 = vpop.permute.xlu1 %2973  ;;  %v2976_v10 = vpop.permute.xlu0 %2975  ;;  %s4168_s15 = scalar_lea.vmem %s3266_s5, 256  ;;  %p4173_p3 = scmp.lt.s32.totalorder %s3266_s5, %s3266_s5 }
0x1ae3   :  { %v2992_v26 = vadd.f32 %v2974_v9, %v5150_v1  ;;  %p4169_p2 = scmp.ne.s32.totalorder %s3266_s5, %s4168_s15  ;;  %p4174_p4 = scmp.lt.s32.totalorder %s4168_s15, %s4168_s15 }
0x1ae5   :  { %3013 = vperm.xlu1 %3954, %v2990_v31   ;;  %3046 = vperm.xlu0 %3986, %v4883_v53   ;;  %p4175_p5 = por %p4174_p4, %p4173_p3 }
0x1ae6   :  { %v2978_v60 = vpop.permute.xlu1 %2977 }
0x1ae7   :  { %p4176_p6 = pnand %p4175_p5, %p4169_p2 }
0x1ae9   :  { %3023 = vperm.xlu1 %3954, %v2992_v26   ;;  %3054 = vperm.xlu0 %3986, %v4888_v54  }
0x1aed   :  { %2737 = vrot.lane.b32.xlu1 %v5175_v27, %s4256_s10  ;;  %3062 = vperm.xlu0 %3986, %v4893_v55  }
0x1af1   :  { %2793 = vrot.lane.b32.xlu1 %v5175_v27, %s4257_s20  ;;  %3070 = vperm.xlu0 %3986, %v5170_v34  }
0x1af3   :  { %v5210_v5 = vpop.permute.xlu0 %3095 }
0x1af5   :  { %3050 = vperm.xlu1 %3954, %v4950_v14  }
0x1af7   :  { %v5215_v32 = vpop.permute.xlu0 %3107 }
0x1af9   :  { %3058 = vperm.xlu1 %3954, %v4956_v15  }
0x1afb   :  { %v5218_v1 = vpop.permute.xlu0 %3115 }
0x1afd   :  { %3066 = vperm.xlu1 %3954, %v4963_v20  }
0x1b01   :  { %3976 = vset.pattern.permute.xlu1 %v4259_v6 }
0x1b02   :  { %3099 = vperm.xlu1 %3976, %v4950_v14  }
0x1b06   :  { %3103 = vperm.xlu1 %3976, %v4888_v54   ;;  %v2696_v8 = vpop.permute.xlu0 %2695 }
0x1b07   :  { %4108 = vrcp.f32 %v2696_v8 }
0x1b08   :  { %4110 = vrcp.f32 %v5170_v34 }
0x1b0a   :  { %3111 = vperm.xlu1 %3976, %v4893_v55  }
0x1b0e   :  { %3977 = vset.pattern.permute.xlu1 %v4249_v4 }
0x1b0f   :  { %3074 = vperm.xlu1 %3977, %v5175_v27  }
0x1b11   :  { %v4109_v7 = vpop.eup %4108 }
0x1b12   :  { %v4111_v42 = vpop.eup %4110 }
0x1b13   :  { %3978 = vset.pattern.permute.xlu1 %v4261_v22  ;;  %v2776_v43 = vmul.f32 %v4122_v21, %v4111_v42 }
0x1b14   :  { %3144 = vperm.xlu1 %3978, %v4883_v53   ;;  %v2720_v53 = vmul.f32 %v4122_v21, %v4109_v7 }
0x1b17   :  { %v5224_v41 = vpop.permute.xlu0 %3123 }
0x1b18   :  { %3152 = vperm.xlu1 %3978, %v4888_v54  }
0x1b1c   :  { %v5227_v63 = vpop.permute.xlu0 %3193  ;;  %3156 = vperm.xlu1 %3978, %v4956_v15  }
0x1b20   :  { %v2736_v3 = vpop.permute.xlu0 %2735  ;;  %3164 = vperm.xlu1 %3978, %v4963_v20  }
0x1b21   :  { %v2753_v25 = vsub.f32 %v2720_v53, %v2736_v3 }
0x1b23   :  { %v2761_v15 = vmul.f32 %v2753_v25, %v5077_v35 }
0x1b24   :  { %v2792_v47 = vpop.permute.xlu0 %2791  ;;  %3172 = vperm.xlu1 %3978, %v5175_v27  }
0x1b25   :  { %v2809_v40 = vsub.f32 %v2776_v43, %v2792_v47 }
0x1b27   :  { %v2849_v57 = vmul.f32 %v3973_v44, %v2809_v40 }
0x1b28   :  { %3980 = vset.pattern.permute.xlu1 %v4260_v36  ;;  %v5245_v35 = vpop.permute.xlu0 %3205 }
0x1b29   :  { %v2857_v29 = vadd.f32 %v2849_v57, %v2761_v15  ;;  %3197 = vperm.xlu1 %3980, %v4950_v14  }
0x1b2b   :  { %v2993_v20 = vadd.f32 %v2976_v10, %v2857_v29 }
0x1b2d   :  { %3201 = vperm.xlu1 %3980, %v4888_v54   ;;  %3028 = vperm.xlu0 %3986, %v2993_v20   ;;  %v5247_v56 = vpop.permute.xlu0 %3148 }
0x1b31   :  { %3982 = vset.pattern.permute.xlu1 %v4259_v6  ;;  %3987 = vset.pattern.permute.xlu0 %v4260_v36  ;;  %v5249_v58 = vpop.permute.xlu0 %3160 }
0x1b32   :  { %3119 = vperm.xlu1 %3982, %v5170_v34   ;;  %3221 = vperm.xlu0 %3987, %v5175_v27  }
0x1b35   :  { %v5251_v14 = vpop.permute.xlu0 %3168 }
0x1b36   :  { %3983 = vset.pattern.permute.xlu1 %v4249_v4 }
0x1b3a   :  { %v5253_v54 = vpop.permute.xlu0 %3213 }
0x1b58   :  { %v5255_v6 = vpop.permute.xlu0 %2998 }
0x1b5c   :  { %v5257_v48 = vpop.permute.xlu1 %3003  ;;  %v5259_v62 = vpop.permute.xlu0 %3008 }
0x1b60   :  { %v2698_v46 = vpop.permute.xlu1 %2697  ;;  %v3019_v52 = vpop.permute.xlu0 %3018 }
0x1b61   :  { %4112 = vrcp.f32 %v2698_v46  ;;  %v3040_v33 = vsel %vm2995_vm5, %v3019_v52, 0.0 }
0x1b62   :  { %4114 = vrcp.f32 %v5175_v27 }
0x1b64   :  { %v5262_v4 = vpop.permute.xlu1 %3013  ;;  %v5264_v45 = vpop.permute.xlu0 %3046 }
0x1b68   :  { %v5266_v49 = vpop.permute.xlu1 %3023  ;;  %v5268_v16 = vpop.permute.xlu0 %3054 }
0x1b6b   :  { %v4113_v19 = vpop.eup %4112 }
0x1b6c   :  { %v4115_v50 = vpop.eup %4114  ;;  %v2722_v23 = vmul.f32 %v4123_v0, %v4113_v19  ;;  %v2738_v28 = vpop.permute.xlu1 %2737 }
0x1b6d   :  { %v3063_v30 = vpop.permute.xlu0 %3062  ;;  %v2778_v51 = vmul.f32 %v4123_v0, %v4115_v50 }
0x1b6e   :  { %v3081_v18 = vsel %vm3044_vm6, %v3063_v30, 0.0  ;;  %v2754_v22 = vsub.f32 %v2722_v23, %v2738_v28 }
0x1b6f   :  { %v3089_v27 = vadd.f32 %v3081_v18, %v3040_v33 }
0x1b70   :  { %v2794_v38 = vpop.permute.xlu1 %2793  ;;  %v2762_v61 = vmul.f32 %v2754_v22, %v5085_v39 }
0x1b71   :  { %v2810_v59 = vsub.f32 %v2778_v51, %v2794_v38 }
0x1b73   :  { %v2850_v13 = vmul.f32 %v3974_v37, %v2810_v59 }
0x1b74   :  { %v5281_v11 = vpop.permute.xlu1 %3050 }
0x1b75   :  { %v2858_v24 = vadd.f32 %v2850_v13, %v2762_v61 }
0x1b77   :  { %v2994_v17 = vadd.f32 %v2978_v60, %v2858_v24 }
0x1b78   :  { %v3059_v31 = vpop.permute.xlu1 %3058 }
0x1b79   :  { %3033 = vperm.xlu1 %3983, %v2994_v17  }
0x1b7c   :  { %v3067_v9 = vpop.permute.xlu1 %3066 }
0x1b7d   :  { %3984 = vset.pattern.permute.xlu1 %v4260_v36 }
0x1b7e   :  { %3209 = vperm.xlu1 %3984, %v4893_v55  }
0x1b81   :  { %v5285_v26 = vpop.permute.xlu1 %3099 }
0x1b82   :  { %3217 = vperm.xlu1 %3984, %v5170_v34  }
0x1b85   :  { %v5288_v12 = vpop.permute.xlu1 %3103 }
0x1b86   :  { %4179 = shalt.err (!%p4176_p6)
}
0x1b87   :  { %s4180_s26 = scalar_lea.hbm %s5452_s12, 256 }
0x1b88   :  { %p4181_p7 = scmp.ne.s32.totalorder %s5452_s12, %s4180_s26  ;;  %p4184_p8 = scmp.lt.u32.totalorder %s4180_s26, %s5452_s12 }
0x1b8a   :  { %p4186_p9 = pnand %p4184_p8, %p4181_p7 }
0x1b8c   :  { %4189 = shalt.err (!%p4186_p9)
}
0x1b8d   :  { %3271 = dma.vmem_to_hbm [thread:$0]  %s3266_s5, 256, %s5452_s12, [#allocation10], %s4243_s18, %s4243_s18, %s4244_s19   ;;  %vm3093_vm7 = vcmp.eq.s32.totalorder %v4367_v2, 2  ;;  %v3112_v55 = vpop.permute.xlu1 %3111 }
0x1b8e   :  { %s4263_s22 = smov [#allocation11]   ;;  %v3130_v39 = vsel %vm3093_vm7, %v3112_v55, 0.0 }
0x1b8f   :  { %s3277_s28 = sshll.u32 %s4263_s22, 4  ;;  %s3278_s28 = int_to_ptr.vmem [resolvable:$true] %s3277_s28 }
0x1b90   :  { %s4190_s23 = scalar_lea.vmem %s3278_s28, 256  ;;  %p4195_p11 = scmp.lt.s32.totalorder %s3278_s28, %s3278_s28 }
0x1b91   :  { %p4191_p10 = scmp.ne.s32.totalorder %s3278_s28, %s4190_s23  ;;  %p4196_p12 = scmp.lt.s32.totalorder %s4190_s23, %s4190_s23 }
0x1b93   :  { %p4197_p13 = por %p4196_p12, %p4195_p11 }
0x1b95   :  { %p4198_p0 = pnand %p4197_p13, %p4191_p10 }
0x1b97   :  { %4201 = shalt.err (!%p4198_p0)
}
0x1b98   :  { %s4202_s12 = scalar_lea.hbm %s5453_s13, 256 }
0x1b99   :  { %p4203_p1 = scmp.ne.s32.totalorder %s5453_s13, %s4202_s12  ;;  %p4206_p2 = scmp.lt.u32.totalorder %s4202_s12, %s5453_s13 }
0x1b9b   :  { %p4208_p3 = pnand %p4206_p2, %p4203_p1 }
0x1b9d   :  { %4211 = shalt.err (!%p4208_p3)
}
0x1b9e   :  { %3283 = dma.vmem_to_hbm [thread:$0]  %s3278_s28, 256, %s5453_s13, [#allocation10], %s4243_s18, %s4243_s18, %s4244_s19   ;;  %vm3142_vm8 = vcmp.eq.s32.totalorder %v4367_v2, 3  ;;  %v3138_v34 = vadd.f32 %v3130_v39, %v3089_v27  ;;  %v3077_v10 = vsel %vm3044_vm6, %v5264_v45, 0.0  ;;  %v3036_v7 = vsel %vm2995_vm5, %v5255_v6, 0.0  ;;  %v3075_v42 = vpop.permute.xlu1 %3074  ;;  %v3071_v61 = vpop.permute.xlu0 %3070 }
0x1b9f   :  { %v3179_v36 = vsel %vm3142_vm8, %v5249_v58, 0.0  ;;  %v3085_v3 = vadd.f32 %v3077_v10, %v3036_v7  ;;  %v5337_v21 = vsel %vm3044_vm6, %v3075_v42, 0.0  ;;  %v3126_v53 = vsel %vm3093_vm7, %v5210_v5, 0.0  ;;  %s4264_s13 = smov [#allocation8]  }
0x1ba0   :  { %v5330_v8 = vadd.f32 %v3179_v36, %v3138_v34  ;;  %vm3191_vm9 = vcmp.eq.s32.totalorder %v4367_v2, 4  ;;  %v3080_v47 = vsel %vm3044_vm6, %v3059_v31, 0.0  ;;  %v3039_v57 = vsel %vm2995_vm5, %v5262_v4, 0.0  ;;  %s3253_s9 = sshll.u32 %s4264_s13, 4  ;;  %s3254_s9 = int_to_ptr.vmem [resolvable:$true] %s3253_s9 }
0x1ba1   :  { %v3134_v43 = vadd.f32 %v3126_v53, %v3085_v3  ;;  %v3224_v15 = vsel %vm3191_vm9, %v5227_v63, 0.0  ;;  %v3088_v5 = vadd.f32 %v3080_v47, %v3039_v57  ;;  %v3082_v58 = vsel %vm3044_vm6, %v3067_v9, 0.0  ;;  %s4212_s14 = scalar_lea.vmem %s3254_s9, 1024  ;;  %p4217_p5 = scmp.lt.s32.totalorder %s3254_s9, %s3254_s9 }
0x1ba2   :  { %v3145_v25 = vpop.permute.xlu1 %3144  ;;  %v3129_v60 = vsel %vm3093_vm7, %v5215_v32, 0.0  ;;  %v3041_v6 = vsel %vm2995_vm5, %v5266_v49, 0.0  ;;  %v3131_v19 = vsel %vm3093_vm7, %v5218_v1, 0.0  ;;  %v3227_v50 = vsel %vm3191_vm9, %v5245_v35, 0.0  ;;  %p4213_p4 = scmp.ne.s32.totalorder %s3254_s9, %s4212_s14  ;;  %p4218_p6 = scmp.lt.s32.totalorder %s4212_s14, %s4212_s14 }
0x1ba3   :  { %v3175_v44 = vsel %vm3142_vm8, %v3145_v25, 0.0  ;;  %v3090_v63 = vadd.f32 %v3082_v58, %v3041_v6  ;;  %v3137_v46 = vadd.f32 %v3129_v60, %v3088_v5  ;;  %v3078_v32 = vsel %vm3044_vm6, %v5281_v11, 0.0 }
0x1ba4   :  { %v3183_v40 = vadd.f32 %v3175_v44, %v3134_v43  ;;  %v3037_v30 = vsel %vm2995_vm5, %v5257_v48, 0.0  ;;  %v3127_v1 = vsel %vm3093_vm7, %v5285_v26, 0.0  ;;  %v3229_v33 = vsel %vm3191_vm9, %v5253_v54, 0.0  ;;  %p4219_p7 = por %p4218_p6, %p4217_p5 }
0x1ba5   :  { %v3139_v0 = vadd.f32 %v3131_v19, %v3090_v63  ;;  %v3086_v18 = vadd.f32 %v3078_v32, %v3037_v30  ;;  %v3079_v38 = vsel %vm3044_vm6, %v5268_v16, 0.0  ;;  %v3176_v48 = vsel %vm3142_vm8, %v5247_v56, 0.0 }
0x1ba6   :  { %v3232_v29 = vadd.f32 %v3224_v15, %v3183_v40  ;;  %v3153_v20 = vpop.permute.xlu1 %3152  ;;  %v3038_v37 = vsel %vm2995_vm5, %v5259_v62, 0.0  ;;  %v3128_v54 = vsel %vm3093_vm7, %v5288_v12, 0.0  ;;  %v3083_v39 = vsel %vm3044_vm6, %v3071_v61, 0.0  ;;  %p4220_p8 = pnand %p4219_p7, %p4213_p4 }
0x1ba7   :  { %v3135_v51 = vadd.f32 %v3127_v1, %v3086_v18  ;;  %v3087_v59 = vadd.f32 %v3079_v38, %v3038_v37  ;;  %v3177_v16 = vsel %vm3142_vm8, %v3153_v20, 0.0  ;;  %v3181_v42 = vsel %vm3142_vm8, %v5251_v14, 0.0 }
0x1ba8   :  { %3240 = vst [vmem:[#allocation8] sm:$0xff] %v3232_v29  ;;  %v3133_v47 = vsel %vm3093_vm7, %v5224_v41, 0.0 }
0x1ba9   :  { %v3184_v13 = vadd.f32 %v3176_v48, %v3135_v51  ;;  %v3136_v17 = vadd.f32 %v3128_v54, %v3087_v59 }
0x1baa   :  { %v3157_v52 = vpop.permute.xlu1 %3156 }
0x1bab   :  { %v3178_v4 = vsel %vm3142_vm8, %v3157_v52, 0.0  ;;  %v3185_v31 = vadd.f32 %v3177_v16, %v3136_v17 }
0x1bac   :  { %v3186_v45 = vadd.f32 %v3178_v4, %v3137_v46  ;;  %v3029_v62 = vpop.permute.xlu0 %3028 }
0x1bad   :  { %v3042_v55 = vsel %vm2995_vm5, %v3029_v62, 0.0 }
0x1bae   :  { %v3235_v49 = vadd.f32 %v3227_v50, %v3186_v45  ;;  %v3165_v23 = vpop.permute.xlu1 %3164  ;;  %v3091_v34 = vadd.f32 %v3083_v39, %v3042_v55 }
0x1baf   :  { %v3180_v28 = vsel %vm3142_vm8, %v3165_v23, 0.0 }
0x1bb0   :  { %3243 = vst [vmem:[#allocation8 + $0x18] sm:$0xff] %v3235_v49  ;;  %v3188_v35 = vadd.f32 %v3180_v28, %v3139_v0 }
0x1bb1   :  { %v3222_v44 = vpop.permute.xlu0 %3221 }
0x1bb2   :  { %v3237_v27 = vadd.f32 %v3229_v33, %v3188_v35  ;;  %v3173_v22 = vpop.permute.xlu1 %3172  ;;  %v3231_v29 = vsel %vm3191_vm9, %v3222_v44, 0.0 }
0x1bb3   :  { %v3182_v15 = vsel %vm3142_vm8, %v3173_v22, 0.0 }
0x1bb4   :  { %3245 = vst [vmem:[#allocation8 + $0x28] sm:$0xff] %v3237_v27 }
0x1bb6   :  { %v3198_v11 = vpop.permute.xlu1 %3197 }
0x1bb7   :  { %v3225_v24 = vsel %vm3191_vm9, %v3198_v11, 0.0 }
0x1bb8   :  { %v3233_v56 = vadd.f32 %v3225_v24, %v3184_v13 }
0x1bba   :  { %3241 = vst [vmem:[#allocation8 + $0x8] sm:$0xff] %v3233_v56  ;;  %v3202_v9 = vpop.permute.xlu1 %3201 }
0x1bbb   :  { %v3226_v26 = vsel %vm3191_vm9, %v3202_v9, 0.0 }
0x1bbc   :  { %v3234_v12 = vadd.f32 %v3226_v26, %v3185_v31 }
0x1bbe   :  { %3242 = vst [vmem:[#allocation8 + $0x10] sm:$0xff] %v3234_v12  ;;  %v3120_v36 = vpop.permute.xlu1 %3119 }
0x1bbf   :  { %v3132_v10 = vsel %vm3093_vm7, %v3120_v36, 0.0 }
0x1bc0   :  { %v3140_v7 = vadd.f32 %v3132_v10, %v3091_v34 }
0x1bc2   :  { %v3189_v3 = vadd.f32 %v3181_v42, %v3140_v7 }
0x1bf8   :  { %v3034_v53 = vpop.permute.xlu1 %3033 }
0x1bf9   :  { %v3043_v25 = vsel %vm2995_vm5, %v3034_v53, 0.0 }
0x1bfa   :  { %v3092_v43 = vadd.f32 %v5337_v21, %v3043_v25 }
0x1bfc   :  { %v3141_v40 = vadd.f32 %v3133_v47, %v3092_v43 }
0x1bfd   :  { %v3210_v57 = vpop.permute.xlu1 %3209 }
0x1bfe   :  { %v3190_v5 = vadd.f32 %v3182_v15, %v3141_v40  ;;  %v3228_v14 = vsel %vm3191_vm9, %v3210_v57, 0.0 }
0x1bff   :  { %v3236_v20 = vadd.f32 %v3228_v14, %v5330_v8 }
0x1c00   :  { %v3239_v21 = vadd.f32 %v3231_v29, %v3190_v5 }
0x1c01   :  { %3244 = vst [vmem:[#allocation8 + $0x20] sm:$0xff] %v3236_v20  ;;  %v3218_v41 = vpop.permute.xlu1 %3217 }
0x1c02   :  { %3247 = vst [vmem:[#allocation8 + $0x38] sm:$0xff] %v3239_v21  ;;  %v3230_v58 = vsel %vm3191_vm9, %v3218_v41, 0.0 }
0x1c03   :  { %v3238_v60 = vadd.f32 %v3230_v58, %v3189_v3 }
0x1c05   :  { %3246 = vst [vmem:[#allocation8 + $0x30] sm:$0xff] %v3238_v60 }
0x1c06   :  { %4223 = shalt.err (!%p4220_p8)
}
0x1c07   :  { %s4224_s5 = scalar_lea.hbm %s5451_s11, 1024 }
0x1c08   :  { %p4225_p9 = scmp.ne.s32.totalorder %s5451_s11, %s4224_s5  ;;  %p4228_p10 = scmp.lt.u32.totalorder %s4224_s5, %s5451_s11 }
0x1c0a   :  { %p4230_p11 = pnand %p4228_p10, %p4225_p9 }
0x1c0c   :  { %4233 = shalt.err (!%p4230_p11)
}
0x1c0d   :  { %3259 = dma.vmem_to_hbm [thread:$0]  %s3254_s9, 1024, %s5451_s11, [#allocation5], %s4243_s18, %s4243_s18, %s4244_s19  }
0x1c0e   :  { %4238 = dma.done.wait [#allocation5], 1024  }
0x1c0f   :  { %4239 = vsyncadd [#allocation5], 4294966272 }
0x1c10   :  { %4240 = dma.done.wait [#allocation10], 512  }
0x1c11   :  { %4241 = vsyncadd [#allocation10], 4294966784 }
0x1c12   :  { %3293 = vsyncpa [#allocation4], 1 }
0x1c13   :  { %3294 = vsyncpa [#allocation7], 1 }
0x1c14   :  { %3295 = vsyncpa [#allocation5], 1 }
0x1c15   :  { %3296 = vsyncpa [#allocation10], 1 }

</bundles_post_ra>
